<compile_context>
chip_gen: v7x
topology: tpu7x:2x2x1
jax: 0.10.0
libtpu: 0.0.40
codegen_flags: <defaults>
</compile_context>

<pallas_src>
import jax
import jax.numpy as jnp
from jax.experimental import pallas as pl
from jax.experimental.pallas import tpu as pltpu


def _make_classifier_kernel(n_hidden: int, head_reduction: bool):
    """Kernel for `n_hidden` (Linear + ReLU) layers followed by a Linear head."""

    def kernel(*refs):
        # refs = (x, w1, b1, ..., w_n, b_n, wp, bp, out)
        x_ref, o_ref = refs[0], refs[-1]
        h = x_ref[...]                 # native dtype; cast per-matmul below (VPU)
        idx = 1
        for _ in range(n_hidden):
            w_ref, b_ref = refs[idx], refs[idx + 1]
            idx += 2
            h = jnp.dot(h.astype(w_ref.dtype), w_ref[...],
                        preferred_element_type=jnp.float32)
            h = jnp.maximum(h + b_ref[...], 0.0)          # bias + ReLU in f32
        wp_ref, bp_ref = refs[idx], refs[idx + 1]
        if head_reduction:
            # out_dim == 1: keep the 1-lane-wide matmul off the MXU
            # (VPU multiply + XLU lane reduce), then relayout the (TB, 1)
            # column into a lane-dense (TB//128, 128) block so stores are
            # full-width (unmasked) vst's.
            y = jnp.sum(h * wp_ref[...], axis=-1, keepdims=True)   # (TB, 1) f32
            y = y.reshape(o_ref.shape) + bp_ref[...]               # lane-dense
        else:
            y = jnp.dot(h.astype(wp_ref.dtype), wp_ref[...],
                        preferred_element_type=jnp.float32) + bp_ref[...]
        o_ref[...] = y.astype(o_ref.dtype)

    return kernel


def _round_up(n, m):
    return ((n + m - 1) // m) * m


def _cdiv(a, b):
    return (a + b - 1) // b


def classifier_forward(x, params, n_hidden, *, tile_b=8192,
                       compute_dtype=jnp.bfloat16,
                       vmem_budget_bytes=20 * 1024 * 1024):
    """x: [B, in_dim]; params: w1,b1,...,wn,bn,wp,bp with W stored [fan_in, fan_out]."""
    B, in_dim = x.shape
    out_dim = params["bp"].shape[-1]
    head_reduction = (out_dim == 1)
    out_dtype = x.dtype
    hidden_dims = [params[f"b{i}"].shape[-1] for i in range(1, n_hidden + 1)]

    # ---- batch tile selection ----------------------------------------------
    # Lane-dense head output needs TB % 1024 == 0 (so the (TB//128, 128) output
    # block keeps an (8,128)-aligned second-minor dim); otherwise TB % 128.
    quantum = 1024 if head_reduction else 128
    # Rough per-row VMEM footprint: double-buffered x + in-kernel bf16 copy,
    # f32 + bf16 activations per hidden layer, double-buffered output.
    bytes_per_row = in_dim * (4 * 2 + 2)
    for d in hidden_dims:
        bytes_per_row += d * (4 + 2)
    bytes_per_row += max(out_dim, 1) * 4 * 2
    cap = max(quantum, (vmem_budget_bytes // bytes_per_row) // quantum * quantum)
    TB = max(quantum, min(_round_up(tile_b, quantum), cap, _round_up(B, quantum)))

    grid = (_cdiv(B, TB),)

    # ---- operands ------------------------------------------------------------
    # x stays in its native dtype (the kernel casts on the VPU). Weights are
    # tiny and one-time, so casting them here is negligible.
    operands = [x]
    for i in range(1, n_hidden + 1):
        operands.append(params[f"w{i}"].astype(compute_dtype))
        operands.append(params[f"b{i}"].astype(jnp.float32))
    if head_reduction:
        operands.append(params["wp"].T.astype(jnp.float32))    # (1, fan_in) row
    else:
        operands.append(params["wp"].astype(compute_dtype))
    operands.append(params["bp"].astype(jnp.float32))

    # x / out tiled over the batch; weights & biases are full, VMEM-resident
    # blocks (constant index map -> fetched once across the whole grid).
    in_specs = [pl.BlockSpec((TB, in_dim), lambda i: (i, 0))]
    # TODO(synk): if xprof shows exposed input DMA at very large B, add
    # pipeline_mode=pl.Buffered(3) to the x BlockSpec only.
    for a in operands[1:]:
        in_specs.append(pl.BlockSpec(a.shape, lambda i: (0, 0)))

    if head_reduction:
        n_out_rows = _cdiv(B, 128)
        out_shape = jax.ShapeDtypeStruct((n_out_rows, 128), out_dtype)
        out_specs = pl.BlockSpec((TB // 128, 128), lambda i: (i, 0))
    else:
        out_shape = jax.ShapeDtypeStruct((B, out_dim), out_dtype)
        out_specs = pl.BlockSpec((TB, out_dim), lambda i: (i, 0))

    kernel = _make_classifier_kernel(n_hidden, head_reduction)

    out = pl.pallas_call(
        kernel,
        out_shape=out_shape,
        grid=grid,
        in_specs=in_specs,
        out_specs=out_specs,
        compiler_params=pltpu.CompilerParams(
            # TODO(synk): on v7x, verify in a trace that the batch axis shards
            # across both TensorCores; if not, switch to pltpu.CORE_PARALLEL.
            dimension_semantics=("parallel",)),
    )(*operands)

    if head_reduction:
        # Fold the lane-dense (ceil(B/128), 128) result back to (B, 1);
        # rows/lanes beyond B are garbage (unwritten or from OOB input rows)
        # and are sliced off here.
        return out.reshape(-1)[:B].reshape(B, out_dim)
    return out


def init_params(key, in_dim, dims, out_dim=1):
    """Deterministic synthetic init (torch.nn.Linear-style). W stored [fan_in, fan_out]."""
    keys = jax.random.split(key, 2 * (len(dims) + 1))
    params = {}
    fan_in = in_dim
    ks = iter(keys)
    for i, d in enumerate(dims, start=1):
        scale = 1.0 / jnp.sqrt(fan_in)
        params[f"w{i}"] = jax.random.uniform(next(ks), (fan_in, d), jnp.float32, -scale, scale)
        params[f"b{i}"] = jax.random.uniform(next(ks), (1, d), jnp.float32, -scale, scale)
        fan_in = d
    scale = 1.0 / jnp.sqrt(fan_in)
    params["wp"] = jax.random.uniform(next(ks), (fan_in, out_dim), jnp.float32, -scale, scale)
    params["bp"] = jax.random.uniform(next(ks), (1, out_dim), jnp.float32, -scale, scale)
    return params


def classifier_ref(x, params, n_hidden, *, compute_dtype=jnp.float32):
    """Pure-JAX reference. compute_dtype=bf16 mirrors the kernel's casts."""
    h = x.astype(compute_dtype)
    for i in range(1, n_hidden + 1):
        w = params[f"w{i}"].astype(compute_dtype)
        h = jnp.dot(h.astype(compute_dtype), w, preferred_element_type=jnp.float32)
        h = jnp.maximum(h + params[f"b{i}"].astype(jnp.float32), 0.0)
    y = jnp.dot(h, params["wp"].astype(jnp.float32), preferred_element_type=jnp.float32)
    return y + params["bp"].astype(jnp.float32)


if __name__ == "__main__":
    # Small shapes consistent with the module: in_dim=32, dims=[64, 32], out_dim=1
    B, IN_DIM, DIMS, OUT_DIM = 8, 32, (64, 32), 1

    key = jax.random.PRNGKey(0)
    kx, kp, kx2 = jax.random.split(key, 3)
    x = jax.random.normal(kx, (B, IN_DIM), dtype=jnp.float32)
    params = init_params(kp, IN_DIM, DIMS, OUT_DIM)

    out = classifier_forward(x, params, n_hidden=len(DIMS))
    out = jax.block_until_ready(out)
    assert out.shape == (B, OUT_DIM)

    # Tight check against a bf16-consistent reference (same casts as the kernel).
    ref_bf16 = classifier_ref(x, params, len(DIMS), compute_dtype=jnp.bfloat16)
    assert jnp.allclose(out, ref_bf16, atol=1e-3, rtol=1e-3)

    # Loose check against the full-f32 reference (bf16 input/weight rounding).
    ref_f32 = classifier_ref(x, params, len(DIMS), compute_dtype=jnp.float32)
    assert jnp.allclose(out, ref_f32, atol=5e-2, rtol=5e-2)

    # Exercise the unpadded partial-block path (B not a multiple of 128 or TB).
    B2 = 300
    x2 = jax.random.normal(kx2, (B2, IN_DIM), dtype=jnp.float32)
    out2 = jax.block_until_ready(classifier_forward(x2, params, n_hidden=len(DIMS)))
    assert out2.shape == (B2, OUT_DIM)
    ref2 = classifier_ref(x2, params, len(DIMS), compute_dtype=jnp.bfloat16)
    assert jnp.allclose(out2, ref2, atol=1e-3, rtol=1e-3)

    print("KERNEL_OK")
</pallas_src>

<mosaic_0001>
module attributes {stable_mosaic.version = 11 : i64} {
  func.func @kernel(%arg0: i32, %arg1: memref<1024x32xf32, #tpu.memory_space<vmem>>, %arg2: memref<32x64xbf16, #tpu.memory_space<vmem>>, %arg3: memref<1x64xf32, #tpu.memory_space<vmem>>, %arg4: memref<64x32xbf16, #tpu.memory_space<vmem>>, %arg5: memref<1x32xf32, #tpu.memory_space<vmem>>, %arg6: memref<1x32xf32, #tpu.memory_space<vmem>>, %arg7: memref<1x1xf32, #tpu.memory_space<vmem>>, %arg8: memref<8x128xf32, #tpu.memory_space<vmem>>) attributes {dimension_semantics = [#tpu.dimension_semantics<parallel>], iteration_bounds = array<i64: 1>, scalar_prefetch = 0 : i64, scratch_operands = 0 : i64, tpu.core_type = #tpu.core_type<tc>, window_params = [{transform_indices = @transform_0, window_bounds = array<i64: 1024, 32>}, {pipeline_mode = #tpu.pipeline_mode<synchronous>, transform_indices = @transform_1, window_bounds = array<i64: 32, 64>}, {pipeline_mode = #tpu.pipeline_mode<synchronous>, transform_indices = @transform_2, window_bounds = array<i64: 1, 64>}, {pipeline_mode = #tpu.pipeline_mode<synchronous>, transform_indices = @transform_3, window_bounds = array<i64: 64, 32>}, {pipeline_mode = #tpu.pipeline_mode<synchronous>, transform_indices = @transform_4, window_bounds = array<i64: 1, 32>}, {pipeline_mode = #tpu.pipeline_mode<synchronous>, transform_indices = @transform_5, window_bounds = array<i64: 1, 32>}, {pipeline_mode = #tpu.pipeline_mode<synchronous>, transform_indices = @transform_6, window_bounds = array<i64: 1, 1>}, {transform_indices = @transform_7, window_bounds = array<i64: 8, 128>}]} {
    %c0 = arith.constant 0 : index
    %c0_0 = arith.constant 0 : index
    %0 = vector.load %arg1[%c0, %c0_0] : memref<1024x32xf32, #tpu.memory_space<vmem>>, vector<1024x32xf32>
    %1 = arith.truncf %0 : vector<1024x32xf32> to vector<1024x32xbf16>
    %c0_1 = arith.constant 0 : index
    %c0_2 = arith.constant 0 : index
    %2 = vector.load %arg2[%c0_1, %c0_2] : memref<32x64xbf16, #tpu.memory_space<vmem>>, vector<32x64xbf16>
    %cst = arith.constant dense<0.000000e+00> : vector<1024x64xf32>
    %3 = tpu.matmul %1, %2, %cst {dimension_numbers = #tpu.dot_dimension_numbers<[1], [0], [0], [1], [0, 0, 1, 1], [], []>} : vector<1024x32xbf16>, vector<32x64xbf16>, vector<1024x64xf32> -> vector<1024x64xf32>
    %c0_3 = arith.constant 0 : index
    %c0_4 = arith.constant 0 : index
    %4 = vector.load %arg3[%c0_3, %c0_4] : memref<1x64xf32, #tpu.memory_space<vmem>>, vector<1x64xf32>
    %5 = vector.broadcast %4 : vector<1x64xf32> to vector<1024x64xf32>
    %6 = arith.addf %3, %5 : vector<1024x64xf32>
    %cst_5 = arith.constant 0.000000e+00 : f32
    %7 = vector.broadcast %cst_5 : f32 to vector<1024x64xf32>
    %8 = arith.maximumf %6, %7 : vector<1024x64xf32>
    %9 = arith.truncf %8 : vector<1024x64xf32> to vector<1024x64xbf16>
    %c0_6 = arith.constant 0 : index
    %c0_7 = arith.constant 0 : index
    %10 = vector.load %arg4[%c0_6, %c0_7] : memref<64x32xbf16, #tpu.memory_space<vmem>>, vector<64x32xbf16>
    %cst_8 = arith.constant dense<0.000000e+00> : vector<1024x32xf32>
    %11 = tpu.matmul %9, %10, %cst_8 {dimension_numbers = #tpu.dot_dimension_numbers<[1], [0], [0], [1], [0, 0, 1, 1], [], []>} : vector<1024x64xbf16>, vector<64x32xbf16>, vector<1024x32xf32> -> vector<1024x32xf32>
    %c0_9 = arith.constant 0 : index
    %c0_10 = arith.constant 0 : index
    %12 = vector.load %arg5[%c0_9, %c0_10] : memref<1x32xf32, #tpu.memory_space<vmem>>, vector<1x32xf32>
    %13 = vector.broadcast %12 : vector<1x32xf32> to vector<1024x32xf32>
    %14 = arith.addf %11, %13 : vector<1024x32xf32>
    %cst_11 = arith.constant 0.000000e+00 : f32
    %15 = vector.broadcast %cst_11 : f32 to vector<1024x32xf32>
    %16 = arith.maximumf %14, %15 : vector<1024x32xf32>
    %c0_12 = arith.constant 0 : index
    %c0_13 = arith.constant 0 : index
    %17 = vector.load %arg6[%c0_12, %c0_13] : memref<1x32xf32, #tpu.memory_space<vmem>>, vector<1x32xf32>
    %18 = vector.broadcast %17 : vector<1x32xf32> to vector<1024x32xf32>
    %19 = arith.mulf %16, %18 : vector<1024x32xf32>
    %cst_14 = arith.constant dense<0.000000e+00> : vector<1024xf32>
    %20 = vector.multi_reduction <add>, %19, %cst_14 [1] : vector<1024x32xf32> to vector<1024xf32>
    %21 = vector.shape_cast %20 : vector<1024xf32> to vector<1024x1xf32>
    %22 = vector.shape_cast %21 : vector<1024x1xf32> to vector<8x128xf32>
    %c0_15 = arith.constant 0 : index
    %c0_16 = arith.constant 0 : index
    %23 = vector.load %arg7[%c0_15, %c0_16] : memref<1x1xf32, #tpu.memory_space<vmem>>, vector<1x1xf32>
    %24 = vector.broadcast %23 : vector<1x1xf32> to vector<8x128xf32>
    %25 = arith.addf %22, %24 : vector<8x128xf32>
    %c0_17 = arith.constant 0 : index
    %c0_18 = arith.constant 0 : index
    %26 = vector.load %arg8[%c0_17, %c0_18] : memref<8x128xf32, #tpu.memory_space<vmem>>, vector<8x128xf32>
    tpu.vector_store %arg8[%c0_17, %c0_18], %25 {strides = array<i32>} : memref<8x128xf32, #tpu.memory_space<vmem>>, vector<8x128xf32>,
    return
  }
  func.func @transform_0(%arg0: i32) -> (i32, i32) {
    %c0_i32 = arith.constant 0 : i32
    %c0_i32_0 = arith.constant 0 : i32
    return %arg0, %c0_i32 : i32, i32
  }
  func.func @transform_1(%arg0: i32) -> (i32, i32) {
    %c0_i32 = arith.constant 0 : i32
    %c0_i32_0 = arith.constant 0 : i32
    %c0_i32_1 = arith.constant 0 : i32
    return %c0_i32, %c0_i32_0 : i32, i32
  }
  func.func @transform_2(%arg0: i32) -> (i32, i32) {
    %c0_i32 = arith.constant 0 : i32
    %c0_i32_0 = arith.constant 0 : i32
    %c0_i32_1 = arith.constant 0 : i32
    return %c0_i32, %c0_i32_0 : i32, i32
  }
  func.func @transform_3(%arg0: i32) -> (i32, i32) {
    %c0_i32 = arith.constant 0 : i32
    %c0_i32_0 = arith.constant 0 : i32
    %c0_i32_1 = arith.constant 0 : i32
    return %c0_i32, %c0_i32_0 : i32, i32
  }
  func.func @transform_4(%arg0: i32) -> (i32, i32) {
    %c0_i32 = arith.constant 0 : i32
    %c0_i32_0 = arith.constant 0 : i32
    %c0_i32_1 = arith.constant 0 : i32
    return %c0_i32, %c0_i32_0 : i32, i32
  }
  func.func @transform_5(%arg0: i32) -> (i32, i32) {
    %c0_i32 = arith.constant 0 : i32
    %c0_i32_0 = arith.constant 0 : i32
    %c0_i32_1 = arith.constant 0 : i32
    return %c0_i32, %c0_i32_0 : i32, i32
  }
  func.func @transform_6(%arg0: i32) -> (i32, i32) {
    %c0_i32 = arith.constant 0 : i32
    %c0_i32_0 = arith.constant 0 : i32
    %c0_i32_1 = arith.constant 0 : i32
    return %c0_i32, %c0_i32_0 : i32, i32
  }
  func.func @transform_7(%arg0: i32) -> (i32, i32) {
    %c0_i32 = arith.constant 0 : i32
    %c0_i32_0 = arith.constant 0 : i32
    return %arg0, %c0_i32 : i32, i32
  }
}

</mosaic_0001>

<bundles_post_ra>
// kernel: tpu_custom_call.1
= control target key start
LH: loop header
LB: loop body
LE: loop exit
PB: predicated region body
PF: predicated region fallthrough
CT: control target
= control target key end

     0   :  { %s5789_s0 = inlined_call_operand.vmem [shape: f32[8,32], index: 0, kind: input, shape index: {}]   ;;  %s5790_s1 = inlined_call_operand.vmem [shape: bf16[32,64], index: 1, kind: input, shape index: {}]   ;;  %s5791_s2 = inlined_call_operand.vmem [shape: f32[1,64], index: 2, kind: input, shape index: {}]   ;;  %s5792_s3 = inlined_call_operand.vmem [shape: bf16[64,32], index: 3, kind: input, shape index: {}]   ;;  %s5793_s4 = inlined_call_operand.vmem [shape: f32[1,32], index: 4, kind: input, shape index: {}]   ;;  %s5794_s5 = inlined_call_operand.vmem [shape: f32[1,32], index: 5, kind: input, shape index: {}]   ;;  %s5795_s6 = inlined_call_operand.<no memory space> [shape: f32[1,1], index: 6, kind: input, shape index: {}]   ;;  %s5796_s7 = inlined_call_operand.hbm [shape: f32[1,128], index: 7, kind: output, shape index: {}]  }
   0x1   :  { %v12_v0 = vstv %s5795_s6 }
   0x2   :  { %13 = vst [vmem:[#allocation2] sm:$0x1] %v12_v0 }
   0x3   :  { %14 = vsyncpa [#allocation4], 0  ;;  %v4106_v1 = vld [vmem:[%s5790_s1] sm:$0xff]   ;;  %v4107_v2 = vld [vmem:[%s5790_s1 + $0x8] sm:$0xff]   ;;  %vm245_vm0 = vcmask 261120   ;;  %vm1214_vm1 = vcmask 523264  }
   0x4   :  { %v30_v3 = vld [vmem:[%s5789_s0] sm:$0xff]  ;;  %v31_v4 = vld [vmem:[%s5789_s0 + $0x8] sm:$0xff]  ;;  %3833 = vmatprep.subr.bf16.mxu0 %v4106_v1  ;;  %v32_v6 = vld [vmem:[%s5789_s0 + $0x10] sm:$0xff]  ;;  %vm2876_vm2 = vcmask 130112   ;;  %vm2883_vm3 = vcmask 195712   ;;  %vm2890_vm4 = vcmask 261312  }
   0x5   :  { %v158_v5 = vpack.c.bf16 %v31_v4, %v30_v3  ;;  %3834 = vmatpush3.bf16.msra.mxu0 %v4106_v1  ;;  %v33_v7 = vld [vmem:[%s5789_s0 + $0x18] sm:$0xff]  ;;  %v34_v8 = vld [vmem:[%s5789_s0 + $0x20] sm:$0xff]  ;;  %v35_v9 = vld [vmem:[%s5789_s0 + $0x28] sm:$0xff]  ;;  %vm2897_vm5 = vcmask 326912   ;;  %vm2904_vm6 = vcmask 392512   ;;  %vm2911_vm7 = vcmask 458112  }
   0x6   :  { %3835 = vmatprep.subr.bf16.mxu0 %v4107_v2  ;;  %v159_v10 = vpack.c.bf16 %v33_v7, %v32_v6  ;;  %v160_v11 = vpack.c.bf16 %v35_v9, %v34_v8  ;;  %v36_v12 = vld [vmem:[%s5789_s0 + $0x30] sm:$0xff]  ;;  %v37_v13 = vld [vmem:[%s5789_s0 + $0x38] sm:$0xff]  ;;  %v38_v14 = vld [vmem:[%s5789_s0 + $0x40] sm:$0xff]  ;;  %vm2918_vm8 = vcmask 523712   ;;  %vm2925_vm9 = vcmask 589312  }
   0x7   :  { %3837 = vmatprep.mubr.msk.bf16.mxu0 %vm245_vm0, %v158_v5  ;;  %v39_v15 = vld [vmem:[%s5789_s0 + $0x48] sm:$0xff]  ;;  %v161_v16 = vpack.c.bf16 %v37_v13, %v36_v12  ;;  %v40_v18 = vld [vmem:[%s5789_s0 + $0x50] sm:$0xff]  ;;  %v41_v19 = vld [vmem:[%s5789_s0 + $0x58] sm:$0xff]  ;;  %vm2932_vm10 = vcmask 654912   ;;  %vm2939_vm11 = vcmask 720512   ;;  %vm5797_vm12 = vcmask 786112  }
   0x8   :  { %v162_v17 = vpack.c.bf16 %v39_v15, %v38_v14  ;;  %v42_v20 = vld [vmem:[%s5789_s0 + $0x60] sm:$0xff]  ;;  %v43_v21 = vld [vmem:[%s5789_s0 + $0x68] sm:$0xff]  ;;  %v163_v22 = vpack.c.bf16 %v41_v19, %v40_v18  ;;  %v44_v24 = vld [vmem:[%s5789_s0 + $0x70] sm:$0xff]  ;;  %vm2953_vm13 = vcmask 851712   ;;  %vm2960_vm14 = vcmask 917312  }
   0x9   :  { %3836 = vmatpush3.bf16.msra.mxu0 %v4107_v2  ;;  %v164_v23 = vpack.c.bf16 %v43_v21, %v42_v20  ;;  %v45_v25 = vld [vmem:[%s5789_s0 + $0x78] sm:$0xff]  ;;  %v46_v26 = vld [vmem:[%s5789_s0 + $0x80] sm:$0xff]  ;;  %v47_v27 = vld [vmem:[%s5789_s0 + $0x88] sm:$0xff]  ;;  %vm2967_vm15 = vcmask 982912  }
   0xa   :  { %v165_v28 = vpack.c.bf16 %v45_v25, %v44_v24  ;;  %v166_v29 = vpack.c.bf16 %v47_v27, %v46_v26  ;;  %v48_v30 = vld [vmem:[%s5789_s0 + $0x90] sm:$0xff]  ;;  %v49_v31 = vld [vmem:[%s5789_s0 + $0x98] sm:$0xff]  ;;  %v50_v32 = vld [vmem:[%s5789_s0 + $0xa0] sm:$0xff] }
   0xb   :  { %v51_v33 = vld [vmem:[%s5789_s0 + $0xa8] sm:$0xff]  ;;  %v167_v34 = vpack.c.bf16 %v49_v31, %v48_v30  ;;  %v52_v36 = vld [vmem:[%s5789_s0 + $0xb0] sm:$0xff]  ;;  %v53_v37 = vld [vmem:[%s5789_s0 + $0xb8] sm:$0xff] }
   0xc   :  { %3838 = vmatmul.mubr.msk.bf16.vlgmr.msra.gmra.mrb[0].mxu0 %vm245_vm0, %v159_v10  ;;  %v168_v35 = vpack.c.bf16 %v51_v33, %v50_v32  ;;  %v54_v38 = vld [vmem:[%s5789_s0 + $0xc0] sm:$0xff]  ;;  %v55_v39 = vld [vmem:[%s5789_s0 + $0xc8] sm:$0xff]  ;;  %v169_v40 = vpack.c.bf16 %v53_v37, %v52_v36  ;;  %v56_v42 = vld [vmem:[%s5789_s0 + $0xd0] sm:$0xff] }
   0xd   :  { %3841 = vmatprep.mubr.msk.bf16.mxu0 %vm245_vm0, %v160_v11  ;;  %v170_v41 = vpack.c.bf16 %v55_v39, %v54_v38  ;;  %v57_v43 = vld [vmem:[%s5789_s0 + $0xd8] sm:$0xff]  ;;  %v58_v44 = vld [vmem:[%s5789_s0 + $0xe0] sm:$0xff]  ;;  %v59_v45 = vld [vmem:[%s5789_s0 + $0xe8] sm:$0xff] }
   0xe   :  { %v171_v46 = vpack.c.bf16 %v57_v43, %v56_v42  ;;  %v172_v47 = vpack.c.bf16 %v59_v45, %v58_v44  ;;  %v60_v48 = vld [vmem:[%s5789_s0 + $0xf0] sm:$0xff]  ;;  %v61_v49 = vld [vmem:[%s5789_s0 + $0xf8] sm:$0xff]  ;;  %v62_v50 = vld [vmem:[%s5789_s0 + $0x100] sm:$0xff] }
   0xf   :  { %v63_v51 = vld [vmem:[%s5789_s0 + $0x108] sm:$0xff]  ;;  %v173_v52 = vpack.c.bf16 %v61_v49, %v60_v48  ;;  %v64_v54 = vld [vmem:[%s5789_s0 + $0x110] sm:$0xff]  ;;  %v65_v55 = vld [vmem:[%s5789_s0 + $0x118] sm:$0xff] }
  0x10   :  { %v174_v53 = vpack.c.bf16 %v63_v51, %v62_v50  ;;  %v66_v56 = vld [vmem:[%s5789_s0 + $0x120] sm:$0xff]  ;;  %v67_v57 = vld [vmem:[%s5789_s0 + $0x128] sm:$0xff]  ;;  %v175_v58 = vpack.c.bf16 %v65_v55, %v64_v54  ;;  %v68_v60 = vld [vmem:[%s5789_s0 + $0x130] sm:$0xff] }
  0x11   :  { %v176_v59 = vpack.c.bf16 %v67_v57, %v66_v56  ;;  %v69_v61 = vld [vmem:[%s5789_s0 + $0x138] sm:$0xff]  ;;  %v70_v62 = vld [vmem:[%s5789_s0 + $0x140] sm:$0xff]  ;;  %v71_v63 = vld [vmem:[%s5789_s0 + $0x148] sm:$0xff] }
  0x12   :  { %v177_v0 = vpack.c.bf16 %v69_v61, %v68_v60  ;;  %v178_v1 = vpack.c.bf16 %v71_v63, %v70_v62  ;;  %v4108_v2 = vld [vmem:[%s5792_s3] sm:$0xff]   ;;  %v72_v3 = vld [vmem:[%s5789_s0 + $0x150] sm:$0xff]  ;;  %v73_v4 = vld [vmem:[%s5789_s0 + $0x158] sm:$0xff] }
  0x13   :  { %v74_v5 = vld [vmem:[%s5789_s0 + $0x160] sm:$0xff]  ;;  %v75_v6 = vld [vmem:[%s5789_s0 + $0x168] sm:$0xff]  ;;  %3965 = vmatprep.subr.bf16.mxu1 %v4108_v2  ;;  %v179_v7 = vpack.c.bf16 %v73_v4, %v72_v3  ;;  %v76_v10 = vld [vmem:[%s5789_s0 + $0x170] sm:$0xff] }
  0x14   :  { %3842 = vmatmul.mubr.msk.bf16.gmra.mrb[4].mxu0 %vm245_vm0, %v161_v16  ;;  %3966 = vmatpush3.bf16.msra.mxu1 %v4108_v2  ;;  %v180_v8 = vpack.c.bf16 %v75_v6, %v74_v5  ;;  %v4109_v9 = vld [vmem:[%s5792_s3 + $0x8] sm:$0xff]   ;;  %v77_v11 = vld [vmem:[%s5789_s0 + $0x178] sm:$0xff]  ;;  %v78_v12 = vld [vmem:[%s5789_s0 + $0x180] sm:$0xff] }
  0x15   :  { %3845 = vmatprep.mubr.msk.bf16.mxu0 %vm245_vm0, %v162_v17  ;;  %v79_v13 = vld [vmem:[%s5789_s0 + $0x188] sm:$0xff]  ;;  %3967 = vmatprep.subr.bf16.mxu1 %v4109_v9  ;;  %v181_v14 = vpack.c.bf16 %v77_v11, %v76_v10  ;;  %v4110_v15 = vld [vmem:[%s5792_s3 + $0x10] sm:$0xff]   ;;  %v4111_v17 = vld [vmem:[%s5792_s3 + $0x18] sm:$0xff]  }
  0x16   :  { %v182_v16 = vpack.c.bf16 %v79_v13, %v78_v12  ;;  %v80_v18 = vld [vmem:[%s5789_s0 + $0x190] sm:$0xff]  ;;  %v81_v19 = vld [vmem:[%s5789_s0 + $0x198] sm:$0xff]  ;;  %v82_v20 = vld [vmem:[%s5789_s0 + $0x1a0] sm:$0xff] }
  0x17   :  { %v83_v21 = vld [vmem:[%s5789_s0 + $0x1a8] sm:$0xff]  ;;  %v84_v24 = vld [vmem:[%s5789_s0 + $0x1b0] sm:$0xff]  ;;  %v85_v25 = vld [vmem:[%s5789_s0 + $0x1b8] sm:$0xff] }
  0x18   :  { %3968 = vmatpush3.bf16.msra.mxu1 %v4109_v9  ;;  %v86_v26 = vld [vmem:[%s5789_s0 + $0x1c0] sm:$0xff]  ;;  %v87_v27 = vld [vmem:[%s5789_s0 + $0x1c8] sm:$0xff]  ;;  %v88_v30 = vld [vmem:[%s5789_s0 + $0x1d0] sm:$0xff] }
  0x19   :  { %3969 = vmatprep.subr.bf16.mxu1 %v4110_v15  ;;  %v89_v31 = vld [vmem:[%s5789_s0 + $0x1d8] sm:$0xff]  ;;  %v90_v32 = vld [vmem:[%s5789_s0 + $0x1e0] sm:$0xff]  ;;  %v91_v33 = vld [vmem:[%s5789_s0 + $0x1e8] sm:$0xff] }
  0x1a   :  { %v92_v36 = vld [vmem:[%s5789_s0 + $0x1f0] sm:$0xff]  ;;  %v93_v37 = vld [vmem:[%s5789_s0 + $0x1f8] sm:$0xff]  ;;  %v94_v38 = vld [vmem:[%s5789_s0 + $0x200] sm:$0xff] }
  0x1b   :  { %v95_v39 = vld [vmem:[%s5789_s0 + $0x208] sm:$0xff]  ;;  %v96_v42 = vld [vmem:[%s5789_s0 + $0x210] sm:$0xff]  ;;  %v97_v43 = vld [vmem:[%s5789_s0 + $0x218] sm:$0xff] }
  0x1c   :  { %3846 = vmatmul.mubr.msk.bf16.gmra.mrb[8].mxu0 %vm245_vm0, %v163_v22  ;;  %3970 = vmatpush3.bf16.msra.mxu1 %v4110_v15  ;;  %v183_v22 = vpack.c.bf16 %v81_v19, %v80_v18  ;;  %v98_v44 = vld [vmem:[%s5789_s0 + $0x220] sm:$0xff]  ;;  %v99_v45 = vld [vmem:[%s5789_s0 + $0x228] sm:$0xff]  ;;  %v100_v48 = vld [vmem:[%s5789_s0 + $0x230] sm:$0xff] }
  0x1d   :  { %3849 = vmatprep.mubr.msk.bf16.mxu0 %vm245_vm0, %v164_v23  ;;  %3971 = vmatprep.subr.bf16.mxu1 %v4111_v17  ;;  %v184_v23 = vpack.c.bf16 %v83_v21, %v82_v20  ;;  %v101_v49 = vld [vmem:[%s5789_s0 + $0x238] sm:$0xff]  ;;  %v102_v50 = vld [vmem:[%s5789_s0 + $0x240] sm:$0xff]  ;;  %v103_v51 = vld [vmem:[%s5789_s0 + $0x248] sm:$0xff] }
  0x1e   :  { %v104_v54 = vld [vmem:[%s5789_s0 + $0x250] sm:$0xff]  ;;  %v105_v55 = vld [vmem:[%s5789_s0 + $0x258] sm:$0xff]  ;;  %v106_v56 = vld [vmem:[%s5789_s0 + $0x260] sm:$0xff] }
  0x1f   :  { %v107_v57 = vld [vmem:[%s5789_s0 + $0x268] sm:$0xff]  ;;  %v108_v60 = vld [vmem:[%s5789_s0 + $0x270] sm:$0xff]  ;;  %v109_v61 = vld [vmem:[%s5789_s0 + $0x278] sm:$0xff] }
  0x20   :  { %3972 = vmatpush3.bf16.msra.mxu1 %v4111_v17  ;;  %v110_v62 = vld [vmem:[%s5789_s0 + $0x280] sm:$0xff]  ;;  %v111_v63 = vld [vmem:[%s5789_s0 + $0x288] sm:$0xff]  ;;  %v112_v2 = vld [vmem:[%s5789_s0 + $0x290] sm:$0xff] }
  0x21   :  { %v113_v3 = vld [vmem:[%s5789_s0 + $0x298] sm:$0xff]  ;;  %v114_v4 = vld [vmem:[%s5789_s0 + $0x2a0] sm:$0xff]  ;;  %v115_v5 = vld [vmem:[%s5789_s0 + $0x2a8] sm:$0xff] }
  0x22   :  { %v199_v6 = vpack.c.bf16 %v113_v3, %v112_v2  ;;  %v117_v9 = vld [vmem:[%s5789_s0 + $0x2b8] sm:$0xff]  ;;  %v118_v10 = vld [vmem:[%s5789_s0 + $0x2c0] sm:$0xff]  ;;  %v119_v11 = vld [vmem:[%s5789_s0 + $0x2c8] sm:$0xff] }
  0x23   :  { %v202_v13 = vpack.c.bf16 %v119_v11, %v118_v10  ;;  %v121_v15 = vld [vmem:[%s5789_s0 + $0x2d8] sm:$0xff]  ;;  %v123_v17 = vld [vmem:[%s5789_s0 + $0x2e8] sm:$0xff]  ;;  %v124_v20 = vld [vmem:[%s5789_s0 + $0x2f0] sm:$0xff] }
  0x24   :  { %3850 = vmatmul.mubr.msk.bf16.gmra.mrb[12].mxu0 %vm245_vm0, %v165_v28  ;;  %v185_v28 = vpack.c.bf16 %v85_v25, %v84_v24  ;;  %v125_v21 = vld [vmem:[%s5789_s0 + $0x2f8] sm:$0xff]  ;;  %v146_v2 = vld [vmem:[%s5789_s0 + $0x3a0] sm:$0xff]  ;;  %v147_v3 = vld [vmem:[%s5789_s0 + $0x3a8] sm:$0xff] }
  0x25   :  { %3853 = vmatprep.mubr.msk.bf16.mxu0 %vm245_vm0, %v166_v29  ;;  %v186_v29 = vpack.c.bf16 %v87_v27, %v86_v26  ;;  %v205_v24 = vpack.c.bf16 %v125_v21, %v124_v20  ;;  %v128_v26 = vld [vmem:[%s5789_s0 + $0x310] sm:$0xff]  ;;  %v129_v27 = vld [vmem:[%s5789_s0 + $0x318] sm:$0xff]  ;;  %v216_v11 = vpack.c.bf16 %v147_v3, %v146_v2 }
  0x26   :  { %v149_v20 = vld [vmem:[%s5789_s0 + $0x3b8] sm:$0xff] }
  0x2c   :  { %3854 = vmatmul.mubr.msk.bf16.gmra.mrb[16].mxu0 %vm245_vm0, %v167_v34  ;;  %v187_v34 = vpack.c.bf16 %v89_v31, %v88_v30  ;;  %v207_v30 = vpack.c.bf16 %v129_v27, %v128_v26 }
  0x2d   :  { %3857 = vmatprep.mubr.msk.bf16.mxu0 %vm245_vm0, %v168_v35  ;;  %v188_v35 = vpack.c.bf16 %v91_v33, %v90_v32  ;;  %v132_v32 = vld [vmem:[%s5789_s0 + $0x330] sm:$0xff]  ;;  %v133_v33 = vld [vmem:[%s5789_s0 + $0x338] sm:$0xff] }
  0x34   :  { %3858 = vmatmul.mubr.msk.bf16.gmra.mrb[20].mxu0 %vm245_vm0, %v169_v40  ;;  %v189_v40 = vpack.c.bf16 %v93_v37, %v92_v36  ;;  %v209_v36 = vpack.c.bf16 %v133_v33, %v132_v32 }
  0x35   :  { %3861 = vmatprep.mubr.msk.bf16.mxu0 %vm245_vm0, %v170_v41  ;;  %v190_v41 = vpack.c.bf16 %v95_v39, %v94_v38  ;;  %v136_v38 = vld [vmem:[%s5789_s0 + $0x350] sm:$0xff]  ;;  %v137_v39 = vld [vmem:[%s5789_s0 + $0x358] sm:$0xff] }
  0x3c   :  { %3862 = vmatmul.mubr.msk.bf16.gmra.mrb[24].mxu0 %vm245_vm0, %v171_v46  ;;  %v191_v46 = vpack.c.bf16 %v97_v43, %v96_v42  ;;  %v211_v42 = vpack.c.bf16 %v137_v39, %v136_v38  ;;  %v152_v39 = vld [vmem:[%s5789_s0 + $0x3d0] sm:$0xff] }
  0x3d   :  { %3865 = vmatprep.mubr.msk.bf16.mxu0 %vm245_vm0, %v172_v47  ;;  %v192_v47 = vpack.c.bf16 %v99_v45, %v98_v44  ;;  %v4593_v44 = vld [vmem:[%s5791_s2] ss:$0 sm:$0xff]  ;;  %v140_v45 = vld [vmem:[%s5789_s0 + $0x370] sm:$0xff] }
  0x44   :  { %3866 = vmatmul.mubr.msk.bf16.gmra.mrb[28].mxu0 %vm245_vm0, %v173_v52  ;;  %v193_v52 = vpack.c.bf16 %v101_v49, %v100_v48  ;;  %v143_v48 = vld [vmem:[%s5789_s0 + $0x388] sm:$0xff] }
  0x45   :  { %3869 = vmatprep.mubr.msk.bf16.mxu0 %vm245_vm0, %v174_v53  ;;  %v194_v53 = vpack.c.bf16 %v103_v51, %v102_v50 }
  0x4c   :  { %3870 = vmatmul.mubr.msk.bf16.gmra.mrb[32].mxu0 %vm245_vm0, %v175_v58  ;;  %v195_v58 = vpack.c.bf16 %v105_v55, %v104_v54 }
  0x4d   :  { %3873 = vmatprep.mubr.msk.bf16.mxu0 %vm245_vm0, %v176_v59  ;;  %v196_v59 = vpack.c.bf16 %v107_v57, %v106_v56 }
  0x54   :  { %3874 = vmatmul.mubr.msk.bf16.gmra.mrb[36].mxu0 %vm245_vm0, %v177_v0  ;;  %v197_v0 = vpack.c.bf16 %v109_v61, %v108_v60 }
  0x55   :  { %3877 = vmatprep.mubr.msk.bf16.mxu0 %vm245_vm0, %v178_v1  ;;  %v198_v1 = vpack.c.bf16 %v111_v63, %v110_v62  ;;  %v144_v63 = vld [vmem:[%s5789_s0 + $0x390] sm:$0xff] }
  0x5c   :  { %3878 = vmatmul.mubr.msk.bf16.gmra.mrb[40].mxu0 %vm245_vm0, %v179_v7  ;;  %v200_v7 = vpack.c.bf16 %v115_v5, %v114_v4 }
  0x5d   :  { %3881 = vmatprep.mubr.msk.bf16.mxu0 %vm245_vm0, %v180_v8  ;;  %v116_v8 = vld [vmem:[%s5789_s0 + $0x2b0] sm:$0xff] }
  0x5e   :  { %v201_v12 = vpack.c.bf16 %v117_v9, %v116_v8 }
  0x64   :  { %3882 = vmatmul.mubr.msk.bf16.gmra.mrb[44].mxu0 %vm245_vm0, %v181_v14  ;;  %v120_v14 = vld [vmem:[%s5789_s0 + $0x2d0] sm:$0xff] }
  0x65   :  { %3885 = vmatprep.mubr.msk.bf16.mxu0 %vm245_vm0, %v182_v16  ;;  %v122_v16 = vld [vmem:[%s5789_s0 + $0x2e0] sm:$0xff]  ;;  %v203_v18 = vpack.c.bf16 %v121_v15, %v120_v14 }
  0x66   :  { %v204_v19 = vpack.c.bf16 %v123_v17, %v122_v16 }
  0x6c   :  { %3886 = vmatmul.mubr.msk.bf16.gmra.mrb[48].mxu0 %vm245_vm0, %v183_v22  ;;  %v126_v22 = vld [vmem:[%s5789_s0 + $0x300] sm:$0xff] }
  0x6d   :  { %3889 = vmatprep.mubr.msk.bf16.mxu0 %vm245_vm0, %v184_v23  ;;  %v127_v23 = vld [vmem:[%s5789_s0 + $0x308] sm:$0xff] }
  0x6e   :  { %v206_v25 = vpack.c.bf16 %v127_v23, %v126_v22  ;;  %v150_v22 = vld [vmem:[%s5789_s0 + $0x3c0] sm:$0xff]  ;;  %v151_v23 = vld [vmem:[%s5789_s0 + $0x3c8] sm:$0xff] }
  0x74   :  { %3890 = vmatmul.mubr.msk.bf16.gmra.mrb[52].mxu0 %vm245_vm0, %v185_v28  ;;  %v130_v28 = vld [vmem:[%s5789_s0 + $0x320] sm:$0xff] }
  0x75   :  { %3893 = vmatprep.mubr.msk.bf16.mxu0 %vm245_vm0, %v186_v29  ;;  %v131_v29 = vld [vmem:[%s5789_s0 + $0x328] sm:$0xff] }
  0x76   :  { %v208_v31 = vpack.c.bf16 %v131_v29, %v130_v28 }
  0x7c   :  { %3894 = vmatmul.mubr.msk.bf16.gmra.mrb[56].mxu0 %vm245_vm0, %v187_v34  ;;  %v134_v34 = vld [vmem:[%s5789_s0 + $0x340] sm:$0xff] }
  0x7d   :  { %3897 = vmatprep.mubr.msk.bf16.mxu0 %vm245_vm0, %v188_v35  ;;  %v135_v35 = vld [vmem:[%s5789_s0 + $0x348] sm:$0xff] }
  0x7e   :  { %v210_v37 = vpack.c.bf16 %v135_v35, %v134_v34 }
  0x84   :  { %3898 = vmatmul.mubr.msk.bf16.gmra.mrb[60].mxu0 %vm245_vm0, %v189_v40  ;;  %v138_v40 = vld [vmem:[%s5789_s0 + $0x360] sm:$0xff] }
  0x85   :  { %3901 = vmatprep.mubr.msk.bf16.mxu0 %vm245_vm0, %v190_v41  ;;  %v139_v41 = vld [vmem:[%s5789_s0 + $0x368] sm:$0xff] }
  0x86   :  { %v212_v43 = vpack.c.bf16 %v139_v41, %v138_v40  ;;  %v153_v40 = vld [vmem:[%s5789_s0 + $0x3d8] sm:$0xff] }
  0x8c   :  { %3902 = vmatmul.mubr.msk.bf16.gmra.mrb[64].mxu0 %vm245_vm0, %v191_v46  ;;  %v141_v46 = vld [vmem:[%s5789_s0 + $0x378] sm:$0xff] }
  0x8d   :  { %3905 = vmatprep.mubr.msk.bf16.mxu0 %vm245_vm0, %v192_v47  ;;  %v142_v47 = vld [vmem:[%s5789_s0 + $0x380] sm:$0xff] }
  0x8e   :  { %v214_v55 = vpack.c.bf16 %v143_v48, %v142_v47 }
  0x94   :  { %3906 = vmatmul.mubr.msk.bf16.gmra.mrb[68].mxu0 %vm245_vm0, %v193_v52  ;;  %v213_v52 = vpack.c.bf16 %v141_v46, %v140_v45 }
  0x95   :  { %3909 = vmatprep.mubr.msk.bf16.mxu0 %vm245_vm0, %v194_v53 }
  0x9c   :  { %3910 = vmatmul.mubr.msk.bf16.gmra.mrb[72].mxu0 %vm245_vm0, %v195_v58 }
  0x9d   :  { %3913 = vmatprep.mubr.msk.bf16.mxu0 %vm245_vm0, %v196_v59 }
  0xa4   :  { %3914 = vmatmul.mubr.msk.bf16.gmra.mrb[76].mxu0 %vm245_vm0, %v197_v0  ;;  %v145_v0 = vld [vmem:[%s5789_s0 + $0x398] sm:$0xff] }
  0xa5   :  { %3917 = vmatprep.mubr.msk.bf16.mxu0 %vm245_vm0, %v198_v1  ;;  %v215_v8 = vpack.c.bf16 %v145_v0, %v144_v63 }
  0xac   :  { %3918 = vmatmul.mubr.msk.bf16.gmra.mrb[80].mxu0 %vm245_vm0, %v199_v6 }
  0xad   :  { %3921 = vmatprep.mubr.msk.bf16.mxu0 %vm245_vm0, %v200_v7 }
  0xb4   :  { %3922 = vmatmul.mubr.msk.bf16.gmra.mrb[84].mxu0 %vm245_vm0, %v201_v12 }
  0xb5   :  { %3925 = vmatprep.mubr.msk.bf16.mxu0 %vm245_vm0, %v202_v13 }
  0xbc   :  { %3926 = vmatmul.mubr.msk.bf16.gmra.mrb[88].mxu0 %vm245_vm0, %v203_v18 }
  0xbd   :  { %3929 = vmatprep.mubr.msk.bf16.mxu0 %vm245_vm0, %v204_v19  ;;  %v148_v19 = vld [vmem:[%s5789_s0 + $0x3b0] sm:$0xff] }
  0xbe   :  { %v217_v28 = vpack.c.bf16 %v149_v20, %v148_v19 }
  0xc4   :  { %3930 = vmatmul.mubr.msk.bf16.gmra.mrb[92].mxu0 %vm245_vm0, %v205_v24 }
  0xc5   :  { %3933 = vmatprep.mubr.msk.bf16.mxu0 %vm245_vm0, %v206_v25 }
  0xcc   :  { %3934 = vmatmul.mubr.msk.bf16.gmra.mrb[96].mxu0 %vm245_vm0, %v207_v30 }
  0xcd   :  { %3937 = vmatprep.mubr.msk.bf16.mxu0 %vm245_vm0, %v208_v31  ;;  %v218_v31 = vpack.c.bf16 %v151_v23, %v150_v22 }
  0xd4   :  { %3938 = vmatmul.mubr.msk.bf16.gmra.mrb[100].mxu0 %vm245_vm0, %v209_v36 }
  0xd5   :  { %3941 = vmatprep.mubr.msk.bf16.mxu0 %vm245_vm0, %v210_v37 }
  0xdc   :  { %3942 = vmatmul.mubr.msk.bf16.gmra.mrb[104].mxu0 %vm245_vm0, %v211_v42  ;;  %v154_v42 = vld [vmem:[%s5789_s0 + $0x3e0] sm:$0xff] }
  0xdd   :  { %3945 = vmatprep.mubr.msk.bf16.mxu0 %vm245_vm0, %v212_v43  ;;  %v155_v43 = vld [vmem:[%s5789_s0 + $0x3e8] sm:$0xff] }
  0xdf   :  { %v3839_v49 = vpop.f32.mrb[0].mxu0 }
  0xe0   :  { %v481_v50 = vadd.f32 %v3839_v49, %v4593_v44  ;;  %v472_v51 = vpop.f32.mrb[1].mxu0  ;;  %v219_v49 = vpack.c.bf16 %v153_v40, %v152_v39 }
  0xe1   :  { %v473_v53 = vadd.f32 %v4593_v44, %v472_v51  ;;  %v3840_v54 = vpop.f32.mrb[2].mxu0 }
  0xe2   :  { %v484_v56 = vadd.f32 %v3840_v54, %v4593_v44  ;;  %v475_v57 = vpop.f32.mrb[3].mxu0  ;;  %v985_v59 = vmax.f32 %v481_v50, 0.0 }
  0xe3   :  { %v476_v58 = vadd.f32 %v4593_v44, %v475_v57  ;;  %v983_v61 = vmax.f32 %v473_v53, 0.0 }
  0xe4   :  { %v986_v60 = vmax.f32 %v484_v56, 0.0  ;;  %3946 = vmatmul.mubr.msk.bf16.gmra.mrb[108].mxu0 %vm245_vm0, %v213_v52  ;;  %v220_v52 = vpack.c.bf16 %v155_v43, %v154_v42 }
  0xe5   :  { %v984_v62 = vmax.f32 %v476_v58, 0.0  ;;  %3949 = vmatprep.mubr.msk.bf16.mxu0 %vm245_vm0, %v214_v55 }
  0xe6   :  { %v1112_v1 = vpack.c.bf16 %v986_v60, %v985_v59  ;;  %v156_v60 = vld [vmem:[%s5789_s0 + $0x3f0] sm:$0xff] }
  0xe7   :  { %v3843_v4 = vpop.f32.mrb[4].mxu0  ;;  %v1111_v5 = vpack.c.bf16 %v984_v62, %v983_v61  ;;  %v157_v61 = vld [vmem:[%s5789_s0 + $0x3f8] sm:$0xff] }
  0xe8   :  { %v497_v6 = vadd.f32 %v3843_v4, %v4593_v44  ;;  %v488_v7 = vpop.f32.mrb[5].mxu0  ;;  %v221_v3 = vpack.c.bf16 %v157_v61, %v156_v60 }
  0xe9   :  { %v489_v9 = vadd.f32 %v4593_v44, %v488_v7  ;;  %v3844_v10 = vpop.f32.mrb[6].mxu0  ;;  %3973 = vmatprep.mubr.msk.bf16.mxu1 %vm1214_vm1, %v1111_v5 }
  0xea   :  { %v500_v12 = vadd.f32 %v3844_v10, %v4593_v44  ;;  %v491_v13 = vpop.f32.mrb[7].mxu0  ;;  %3974 = vmatmul.mubr.msk.bf16.vlgmr.msra.gmra.mrb[0].mxu1 %vm1214_vm1, %v1112_v1  ;;  %v989_v15 = vmax.f32 %v497_v6, 0.0 }
  0xeb   :  { %v492_v14 = vadd.f32 %v4593_v44, %v491_v13  ;;  %v987_v17 = vmax.f32 %v489_v9, 0.0 }
  0xec   :  { %v990_v16 = vmax.f32 %v500_v12, 0.0  ;;  %3950 = vmatmul.mubr.msk.bf16.gmra.mrb[112].mxu0 %vm245_vm0, %v215_v8 }
  0xed   :  { %v988_v18 = vmax.f32 %v492_v14, 0.0  ;;  %3953 = vmatprep.mubr.msk.bf16.mxu0 %vm245_vm0, %v216_v11 }
  0xee   :  { %v1114_v21 = vpack.c.bf16 %v990_v16, %v989_v15 }
  0xef   :  { %v1113_v24 = vpack.c.bf16 %v988_v18, %v987_v17  ;;  %v3847_v25 = vpop.f32.mrb[8].mxu0 }
  0xf0   :  { %v513_v26 = vadd.f32 %v3847_v25, %v4593_v44  ;;  %v504_v27 = vpop.f32.mrb[9].mxu0 }
  0xf1   :  { %v505_v29 = vadd.f32 %v4593_v44, %v504_v27  ;;  %v3848_v30 = vpop.f32.mrb[10].mxu0  ;;  %3977 = vmatprep.mubr.msk.bf16.mxu1 %vm1214_vm1, %v1113_v24 }
  0xf2   :  { %v516_v32 = vadd.f32 %v3848_v30, %v4593_v44  ;;  %v507_v33 = vpop.f32.mrb[11].mxu0  ;;  %3978 = vmatmul.mubr.msk.bf16.gmra.mrb[4].mxu1 %vm1214_vm1, %v1114_v21  ;;  %v993_v35 = vmax.f32 %v513_v26, 0.0 }
  0xf3   :  { %v508_v34 = vadd.f32 %v4593_v44, %v507_v33  ;;  %v991_v37 = vmax.f32 %v505_v29, 0.0 }
  0xf4   :  { %v994_v36 = vmax.f32 %v516_v32, 0.0  ;;  %3954 = vmatmul.mubr.msk.bf16.gmra.mrb[116].mxu0 %vm245_vm0, %v217_v28 }
  0xf5   :  { %v992_v38 = vmax.f32 %v508_v34, 0.0  ;;  %3957 = vmatprep.mubr.msk.bf16.mxu0 %vm245_vm0, %v218_v31 }
  0xf6   :  { %v1116_v41 = vpack.c.bf16 %v994_v36, %v993_v35 }
  0xf7   :  { %v1115_v45 = vpack.c.bf16 %v992_v38, %v991_v37  ;;  %v3851_v46 = vpop.f32.mrb[12].mxu0 }
  0xf8   :  { %v529_v47 = vadd.f32 %v3851_v46, %v4593_v44  ;;  %v520_v48 = vpop.f32.mrb[13].mxu0 }
  0xf9   :  { %v521_v50 = vadd.f32 %v4593_v44, %v520_v48  ;;  %v3852_v51 = vpop.f32.mrb[14].mxu0  ;;  %3981 = vmatprep.mubr.msk.bf16.mxu1 %vm1214_vm1, %v1115_v45 }
  0xfa   :  { %v532_v53 = vadd.f32 %v3852_v51, %v4593_v44  ;;  %v523_v54 = vpop.f32.mrb[15].mxu0  ;;  %3982 = vmatmul.mubr.msk.bf16.gmra.mrb[8].mxu1 %vm1214_vm1, %v1116_v41  ;;  %v997_v56 = vmax.f32 %v529_v47, 0.0 }
  0xfb   :  { %v524_v55 = vadd.f32 %v4593_v44, %v523_v54  ;;  %v995_v58 = vmax.f32 %v521_v50, 0.0 }
  0xfc   :  { %v998_v57 = vmax.f32 %v532_v53, 0.0  ;;  %3958 = vmatmul.mubr.msk.bf16.gmra.mrb[120].mxu0 %vm245_vm0, %v219_v49 }
  0xfd   :  { %v996_v59 = vmax.f32 %v524_v55, 0.0  ;;  %3961 = vmatprep.mubr.msk.bf16.mxu0 %vm245_vm0, %v220_v52 }
  0xfe   :  { %v1118_v62 = vpack.c.bf16 %v998_v57, %v997_v56 }
  0xff   :  { %v1117_v63 = vpack.c.bf16 %v996_v59, %v995_v58  ;;  %v3855_v0 = vpop.f32.mrb[16].mxu0 }
 0x100   :  { %v545_v1 = vadd.f32 %v3855_v0, %v4593_v44  ;;  %v536_v2 = vpop.f32.mrb[17].mxu0 }
 0x101   :  { %v537_v4 = vadd.f32 %v4593_v44, %v536_v2  ;;  %v3856_v5 = vpop.f32.mrb[18].mxu0  ;;  %3985 = vmatprep.mubr.msk.bf16.mxu1 %vm1214_vm1, %v1117_v63 }
 0x102   :  { %v548_v6 = vadd.f32 %v3856_v5, %v4593_v44  ;;  %v539_v7 = vpop.f32.mrb[19].mxu0  ;;  %3986 = vmatmul.mubr.msk.bf16.gmra.mrb[12].mxu1 %vm1214_vm1, %v1118_v62  ;;  %v1001_v9 = vmax.f32 %v545_v1, 0.0 }
 0x103   :  { %v540_v8 = vadd.f32 %v4593_v44, %v539_v7  ;;  %v999_v11 = vmax.f32 %v537_v4, 0.0  ;;  %v4141_v7 = vmov 0  }
 0x104   :  { %v1002_v10 = vmax.f32 %v548_v6, 0.0  ;;  %3962 = vmatmul.mubr.msk.bf16.gmra.mrb[124].mxu0 %vm245_vm0, %v221_v3  ;;  %4105 = vset.pattern.permute.xlu0 %v4141_v7 }
 0x105   :  { %v1000_v12 = vmax.f32 %v540_v8, 0.0  ;;  %v3698_v8 = vld [vmem:[#allocation2] ss:$0 sm:$0xff] }
 0x106   :  { %v1120_v13 = vpack.c.bf16 %v1002_v10, %v1001_v9  ;;  %2606 = vperm.xlu0 %4105, %v3698_v8  }
 0x107   :  { %v1119_v14 = vpack.c.bf16 %v1000_v12, %v999_v11  ;;  %v3859_v15 = vpop.f32.mrb[20].mxu0 }
 0x108   :  { %v561_v16 = vadd.f32 %v3859_v15, %v4593_v44  ;;  %v552_v17 = vpop.f32.mrb[21].mxu0 }
 0x109   :  { %v553_v18 = vadd.f32 %v4593_v44, %v552_v17  ;;  %v3860_v19 = vpop.f32.mrb[22].mxu0  ;;  %3989 = vmatprep.mubr.msk.bf16.mxu1 %vm1214_vm1, %v1119_v14 }
 0x10a   :  { %v564_v20 = vadd.f32 %v3860_v19, %v4593_v44  ;;  %v555_v21 = vpop.f32.mrb[23].mxu0  ;;  %3990 = vmatmul.mubr.msk.bf16.gmra.mrb[16].mxu1 %vm1214_vm1, %v1120_v13  ;;  %v1005_v23 = vmax.f32 %v561_v16, 0.0 }
 0x10b   :  { %v556_v22 = vadd.f32 %v4593_v44, %v555_v21  ;;  %v1003_v25 = vmax.f32 %v553_v18, 0.0 }
 0x10c   :  { %v1006_v24 = vmax.f32 %v564_v20, 0.0 }
 0x10d   :  { %v1004_v26 = vmax.f32 %v556_v22, 0.0 }
 0x10e   :  { %v1122_v27 = vpack.c.bf16 %v1006_v24, %v1005_v23 }
 0x10f   :  { %v1121_v28 = vpack.c.bf16 %v1004_v26, %v1003_v25  ;;  %v3863_v29 = vpop.f32.mrb[24].mxu0 }
 0x110   :  { %v577_v30 = vadd.f32 %v3863_v29, %v4593_v44  ;;  %v568_v31 = vpop.f32.mrb[25].mxu0 }
 0x111   :  { %v569_v32 = vadd.f32 %v4593_v44, %v568_v31  ;;  %v3864_v33 = vpop.f32.mrb[26].mxu0  ;;  %3993 = vmatprep.mubr.msk.bf16.mxu1 %vm1214_vm1, %v1121_v28 }
 0x112   :  { %v580_v34 = vadd.f32 %v3864_v33, %v4593_v44  ;;  %v571_v35 = vpop.f32.mrb[27].mxu0  ;;  %3994 = vmatmul.mubr.msk.bf16.gmra.mrb[20].mxu1 %vm1214_vm1, %v1122_v27  ;;  %v1009_v37 = vmax.f32 %v577_v30, 0.0 }
 0x113   :  { %v572_v36 = vadd.f32 %v4593_v44, %v571_v35  ;;  %v1007_v39 = vmax.f32 %v569_v32, 0.0 }
 0x114   :  { %v1010_v38 = vmax.f32 %v580_v34, 0.0 }
 0x115   :  { %v1008_v40 = vmax.f32 %v572_v36, 0.0 }
 0x116   :  { %v1124_v41 = vpack.c.bf16 %v1010_v38, %v1009_v37 }
 0x117   :  { %v1123_v42 = vpack.c.bf16 %v1008_v40, %v1007_v39  ;;  %v3867_v43 = vpop.f32.mrb[28].mxu0 }
 0x118   :  { %v593_v45 = vadd.f32 %v3867_v43, %v4593_v44  ;;  %v584_v46 = vpop.f32.mrb[29].mxu0 }
 0x119   :  { %v585_v47 = vadd.f32 %v4593_v44, %v584_v46  ;;  %v3868_v48 = vpop.f32.mrb[30].mxu0  ;;  %3997 = vmatprep.mubr.msk.bf16.mxu1 %vm1214_vm1, %v1123_v42 }
 0x11a   :  { %v596_v49 = vadd.f32 %v3868_v48, %v4593_v44  ;;  %v587_v50 = vpop.f32.mrb[31].mxu0  ;;  %3998 = vmatmul.mubr.msk.bf16.gmra.mrb[24].mxu1 %vm1214_vm1, %v1124_v41  ;;  %v1013_v52 = vmax.f32 %v593_v45, 0.0 }
 0x11b   :  { %v588_v51 = vadd.f32 %v4593_v44, %v587_v50  ;;  %v1011_v54 = vmax.f32 %v585_v47, 0.0 }
 0x11c   :  { %v1014_v53 = vmax.f32 %v596_v49, 0.0 }
 0x11d   :  { %v1012_v55 = vmax.f32 %v588_v51, 0.0 }
 0x11e   :  { %v1126_v56 = vpack.c.bf16 %v1014_v53, %v1013_v52 }
 0x11f   :  { %v1125_v57 = vpack.c.bf16 %v1012_v55, %v1011_v54  ;;  %v3871_v58 = vpop.f32.mrb[32].mxu0 }
 0x120   :  { %v609_v59 = vadd.f32 %v3871_v58, %v4593_v44  ;;  %v600_v60 = vpop.f32.mrb[33].mxu0 }
 0x121   :  { %v601_v61 = vadd.f32 %v4593_v44, %v600_v60  ;;  %v3872_v62 = vpop.f32.mrb[34].mxu0  ;;  %4001 = vmatprep.mubr.msk.bf16.mxu1 %vm1214_vm1, %v1125_v57 }
 0x122   :  { %v612_v63 = vadd.f32 %v3872_v62, %v4593_v44  ;;  %v603_v0 = vpop.f32.mrb[35].mxu0  ;;  %4002 = vmatmul.mubr.msk.bf16.gmra.mrb[28].mxu1 %vm1214_vm1, %v1126_v56  ;;  %v1017_v2 = vmax.f32 %v609_v59, 0.0 }
 0x123   :  { %v604_v1 = vadd.f32 %v4593_v44, %v603_v0  ;;  %v1015_v4 = vmax.f32 %v601_v61, 0.0 }
 0x124   :  { %v1018_v3 = vmax.f32 %v612_v63, 0.0 }
 0x125   :  { %v1016_v5 = vmax.f32 %v604_v1, 0.0 }
 0x126   :  { %v1128_v6 = vpack.c.bf16 %v1018_v3, %v1017_v2 }
 0x127   :  { %v1127_v9 = vpack.c.bf16 %v1016_v5, %v1015_v4  ;;  %v3875_v10 = vpop.f32.mrb[36].mxu0 }
 0x128   :  { %v625_v11 = vadd.f32 %v3875_v10, %v4593_v44  ;;  %v616_v12 = vpop.f32.mrb[37].mxu0 }
 0x129   :  { %v617_v13 = vadd.f32 %v4593_v44, %v616_v12  ;;  %v3876_v14 = vpop.f32.mrb[38].mxu0  ;;  %4005 = vmatprep.mubr.msk.bf16.mxu1 %vm1214_vm1, %v1127_v9 }
 0x12a   :  { %v628_v15 = vadd.f32 %v3876_v14, %v4593_v44  ;;  %v619_v16 = vpop.f32.mrb[39].mxu0  ;;  %4006 = vmatmul.mubr.msk.bf16.gmra.mrb[32].mxu1 %vm1214_vm1, %v1128_v6  ;;  %v1021_v18 = vmax.f32 %v625_v11, 0.0 }
 0x12b   :  { %v620_v17 = vadd.f32 %v4593_v44, %v619_v16  ;;  %v1019_v20 = vmax.f32 %v617_v13, 0.0 }
 0x12c   :  { %v1022_v19 = vmax.f32 %v628_v15, 0.0 }
 0x12d   :  { %v1020_v21 = vmax.f32 %v620_v17, 0.0 }
 0x12e   :  { %v1130_v22 = vpack.c.bf16 %v1022_v19, %v1021_v18 }
 0x12f   :  { %v1129_v23 = vpack.c.bf16 %v1020_v21, %v1019_v20  ;;  %v3879_v24 = vpop.f32.mrb[40].mxu0 }
 0x130   :  { %v641_v25 = vadd.f32 %v3879_v24, %v4593_v44  ;;  %v632_v26 = vpop.f32.mrb[41].mxu0 }
 0x131   :  { %v633_v27 = vadd.f32 %v4593_v44, %v632_v26  ;;  %v3880_v28 = vpop.f32.mrb[42].mxu0  ;;  %4009 = vmatprep.mubr.msk.bf16.mxu1 %vm1214_vm1, %v1129_v23 }
 0x132   :  { %v644_v29 = vadd.f32 %v3880_v28, %v4593_v44  ;;  %v635_v30 = vpop.f32.mrb[43].mxu0  ;;  %4010 = vmatmul.mubr.msk.bf16.gmra.mrb[36].mxu1 %vm1214_vm1, %v1130_v22  ;;  %v1025_v32 = vmax.f32 %v641_v25, 0.0 }
 0x133   :  { %v636_v31 = vadd.f32 %v4593_v44, %v635_v30  ;;  %v1023_v34 = vmax.f32 %v633_v27, 0.0 }
 0x134   :  { %v1026_v33 = vmax.f32 %v644_v29, 0.0 }
 0x135   :  { %v1024_v35 = vmax.f32 %v636_v31, 0.0 }
 0x136   :  { %v1132_v36 = vpack.c.bf16 %v1026_v33, %v1025_v32 }
 0x137   :  { %v1131_v37 = vpack.c.bf16 %v1024_v35, %v1023_v34  ;;  %v3883_v38 = vpop.f32.mrb[44].mxu0 }
 0x138   :  { %v657_v39 = vadd.f32 %v3883_v38, %v4593_v44  ;;  %v648_v40 = vpop.f32.mrb[45].mxu0 }
 0x139   :  { %v649_v41 = vadd.f32 %v4593_v44, %v648_v40  ;;  %v3884_v42 = vpop.f32.mrb[46].mxu0  ;;  %4013 = vmatprep.mubr.msk.bf16.mxu1 %vm1214_vm1, %v1131_v37 }
 0x13a   :  { %v660_v43 = vadd.f32 %v3884_v42, %v4593_v44  ;;  %v651_v45 = vpop.f32.mrb[47].mxu0  ;;  %4014 = vmatmul.mubr.msk.bf16.gmra.mrb[40].mxu1 %vm1214_vm1, %v1132_v36  ;;  %v1029_v47 = vmax.f32 %v657_v39, 0.0 }
 0x13b   :  { %v652_v46 = vadd.f32 %v4593_v44, %v651_v45  ;;  %v1027_v49 = vmax.f32 %v649_v41, 0.0 }
 0x13c   :  { %v1030_v48 = vmax.f32 %v660_v43, 0.0 }
 0x13d   :  { %v1028_v50 = vmax.f32 %v652_v46, 0.0 }
 0x13e   :  { %v1134_v51 = vpack.c.bf16 %v1030_v48, %v1029_v47 }
 0x13f   :  { %v1133_v52 = vpack.c.bf16 %v1028_v50, %v1027_v49  ;;  %v3887_v53 = vpop.f32.mrb[48].mxu0 }
 0x140   :  { %v673_v54 = vadd.f32 %v3887_v53, %v4593_v44  ;;  %v664_v55 = vpop.f32.mrb[49].mxu0 }
 0x141   :  { %v665_v56 = vadd.f32 %v4593_v44, %v664_v55  ;;  %v3888_v57 = vpop.f32.mrb[50].mxu0  ;;  %4017 = vmatprep.mubr.msk.bf16.mxu1 %vm1214_vm1, %v1133_v52 }
 0x142   :  { %v676_v58 = vadd.f32 %v3888_v57, %v4593_v44  ;;  %v667_v59 = vpop.f32.mrb[51].mxu0  ;;  %4018 = vmatmul.mubr.msk.bf16.gmra.mrb[44].mxu1 %vm1214_vm1, %v1134_v51  ;;  %v1033_v61 = vmax.f32 %v673_v54, 0.0 }
 0x143   :  { %v668_v60 = vadd.f32 %v4593_v44, %v667_v59  ;;  %v1031_v63 = vmax.f32 %v665_v56, 0.0 }
 0x144   :  { %v1034_v62 = vmax.f32 %v676_v58, 0.0 }
 0x145   :  { %v1032_v0 = vmax.f32 %v668_v60, 0.0 }
 0x146   :  { %v1136_v1 = vpack.c.bf16 %v1034_v62, %v1033_v61 }
 0x147   :  { %v1135_v2 = vpack.c.bf16 %v1032_v0, %v1031_v63  ;;  %v3891_v3 = vpop.f32.mrb[52].mxu0 }
 0x148   :  { %v689_v4 = vadd.f32 %v3891_v3, %v4593_v44  ;;  %v680_v5 = vpop.f32.mrb[53].mxu0 }
 0x149   :  { %v681_v6 = vadd.f32 %v4593_v44, %v680_v5  ;;  %v3892_v7 = vpop.f32.mrb[54].mxu0  ;;  %4021 = vmatprep.mubr.msk.bf16.mxu1 %vm1214_vm1, %v1135_v2 }
 0x14a   :  { %v692_v8 = vadd.f32 %v3892_v7, %v4593_v44  ;;  %v683_v9 = vpop.f32.mrb[55].mxu0  ;;  %4022 = vmatmul.mubr.msk.bf16.gmra.mrb[48].mxu1 %vm1214_vm1, %v1136_v1  ;;  %v1037_v11 = vmax.f32 %v689_v4, 0.0 }
 0x14b   :  { %v684_v10 = vadd.f32 %v4593_v44, %v683_v9  ;;  %v1035_v13 = vmax.f32 %v681_v6, 0.0 }
 0x14c   :  { %v1038_v12 = vmax.f32 %v692_v8, 0.0 }
 0x14d   :  { %v1036_v14 = vmax.f32 %v684_v10, 0.0 }
 0x14e   :  { %v1138_v15 = vpack.c.bf16 %v1038_v12, %v1037_v11 }
 0x14f   :  { %v1137_v16 = vpack.c.bf16 %v1036_v14, %v1035_v13  ;;  %v3895_v17 = vpop.f32.mrb[56].mxu0 }
 0x150   :  { %v705_v18 = vadd.f32 %v3895_v17, %v4593_v44  ;;  %v696_v19 = vpop.f32.mrb[57].mxu0 }
 0x151   :  { %v697_v20 = vadd.f32 %v4593_v44, %v696_v19  ;;  %v3896_v21 = vpop.f32.mrb[58].mxu0  ;;  %4025 = vmatprep.mubr.msk.bf16.mxu1 %vm1214_vm1, %v1137_v16 }
 0x152   :  { %v708_v22 = vadd.f32 %v3896_v21, %v4593_v44  ;;  %v699_v23 = vpop.f32.mrb[59].mxu0  ;;  %4026 = vmatmul.mubr.msk.bf16.gmra.mrb[52].mxu1 %vm1214_vm1, %v1138_v15  ;;  %v1041_v25 = vmax.f32 %v705_v18, 0.0 }
 0x153   :  { %v700_v24 = vadd.f32 %v4593_v44, %v699_v23  ;;  %v1039_v27 = vmax.f32 %v697_v20, 0.0 }
 0x154   :  { %v1042_v26 = vmax.f32 %v708_v22, 0.0 }
 0x155   :  { %v1040_v28 = vmax.f32 %v700_v24, 0.0 }
 0x156   :  { %v1140_v29 = vpack.c.bf16 %v1042_v26, %v1041_v25 }
 0x157   :  { %v1139_v30 = vpack.c.bf16 %v1040_v28, %v1039_v27  ;;  %v3899_v31 = vpop.f32.mrb[60].mxu0 }
 0x158   :  { %v721_v32 = vadd.f32 %v3899_v31, %v4593_v44  ;;  %v712_v33 = vpop.f32.mrb[61].mxu0 }
 0x159   :  { %v713_v34 = vadd.f32 %v4593_v44, %v712_v33  ;;  %v3900_v35 = vpop.f32.mrb[62].mxu0  ;;  %4029 = vmatprep.mubr.msk.bf16.mxu1 %vm1214_vm1, %v1139_v30 }
 0x15a   :  { %v724_v36 = vadd.f32 %v3900_v35, %v4593_v44  ;;  %v715_v37 = vpop.f32.mrb[63].mxu0  ;;  %4030 = vmatmul.mubr.msk.bf16.gmra.mrb[56].mxu1 %vm1214_vm1, %v1140_v29  ;;  %v1045_v39 = vmax.f32 %v721_v32, 0.0 }
 0x15b   :  { %v716_v38 = vadd.f32 %v4593_v44, %v715_v37  ;;  %v1043_v41 = vmax.f32 %v713_v34, 0.0 }
 0x15c   :  { %v1046_v40 = vmax.f32 %v724_v36, 0.0 }
 0x15d   :  { %v1044_v42 = vmax.f32 %v716_v38, 0.0 }
 0x15e   :  { %v1142_v43 = vpack.c.bf16 %v1046_v40, %v1045_v39 }
 0x15f   :  { %v1141_v45 = vpack.c.bf16 %v1044_v42, %v1043_v41  ;;  %v3903_v46 = vpop.f32.mrb[64].mxu0 }
 0x160   :  { %v737_v47 = vadd.f32 %v3903_v46, %v4593_v44  ;;  %v728_v48 = vpop.f32.mrb[65].mxu0 }
 0x161   :  { %v729_v49 = vadd.f32 %v4593_v44, %v728_v48  ;;  %v3904_v50 = vpop.f32.mrb[66].mxu0  ;;  %4033 = vmatprep.mubr.msk.bf16.mxu1 %vm1214_vm1, %v1141_v45 }
 0x162   :  { %v740_v51 = vadd.f32 %v3904_v50, %v4593_v44  ;;  %v731_v52 = vpop.f32.mrb[67].mxu0  ;;  %4034 = vmatmul.mubr.msk.bf16.gmra.mrb[60].mxu1 %vm1214_vm1, %v1142_v43  ;;  %v1049_v54 = vmax.f32 %v737_v47, 0.0 }
 0x163   :  { %v732_v53 = vadd.f32 %v4593_v44, %v731_v52  ;;  %v1047_v56 = vmax.f32 %v729_v49, 0.0 }
 0x164   :  { %v1050_v55 = vmax.f32 %v740_v51, 0.0 }
 0x165   :  { %v1048_v57 = vmax.f32 %v732_v53, 0.0 }
 0x166   :  { %v1144_v58 = vpack.c.bf16 %v1050_v55, %v1049_v54 }
 0x167   :  { %v1143_v59 = vpack.c.bf16 %v1048_v57, %v1047_v56  ;;  %v3907_v60 = vpop.f32.mrb[68].mxu0 }
 0x168   :  { %v753_v61 = vadd.f32 %v3907_v60, %v4593_v44  ;;  %v744_v62 = vpop.f32.mrb[69].mxu0 }
 0x169   :  { %v745_v63 = vadd.f32 %v4593_v44, %v744_v62  ;;  %v3908_v0 = vpop.f32.mrb[70].mxu0  ;;  %4037 = vmatprep.mubr.msk.bf16.mxu1 %vm1214_vm1, %v1143_v59 }
 0x16a   :  { %v756_v1 = vadd.f32 %v3908_v0, %v4593_v44  ;;  %v747_v2 = vpop.f32.mrb[71].mxu0  ;;  %4038 = vmatmul.mubr.msk.bf16.gmra.mrb[64].mxu1 %vm1214_vm1, %v1144_v58  ;;  %v1053_v4 = vmax.f32 %v753_v61, 0.0 }
 0x16b   :  { %v748_v3 = vadd.f32 %v4593_v44, %v747_v2  ;;  %v1051_v6 = vmax.f32 %v745_v63, 0.0 }
 0x16c   :  { %v1054_v5 = vmax.f32 %v756_v1, 0.0 }
 0x16d   :  { %v1052_v7 = vmax.f32 %v748_v3, 0.0 }
 0x16e   :  { %v1146_v8 = vpack.c.bf16 %v1054_v5, %v1053_v4 }
 0x16f   :  { %v1145_v9 = vpack.c.bf16 %v1052_v7, %v1051_v6  ;;  %v3911_v10 = vpop.f32.mrb[72].mxu0 }
 0x170   :  { %v769_v11 = vadd.f32 %v3911_v10, %v4593_v44  ;;  %v760_v12 = vpop.f32.mrb[73].mxu0 }
 0x171   :  { %v761_v13 = vadd.f32 %v4593_v44, %v760_v12  ;;  %v3912_v14 = vpop.f32.mrb[74].mxu0  ;;  %4041 = vmatprep.mubr.msk.bf16.mxu1 %vm1214_vm1, %v1145_v9 }
 0x172   :  { %v772_v15 = vadd.f32 %v3912_v14, %v4593_v44  ;;  %v763_v16 = vpop.f32.mrb[75].mxu0  ;;  %4042 = vmatmul.mubr.msk.bf16.gmra.mrb[68].mxu1 %vm1214_vm1, %v1146_v8  ;;  %v1057_v18 = vmax.f32 %v769_v11, 0.0 }
 0x173   :  { %v764_v17 = vadd.f32 %v4593_v44, %v763_v16  ;;  %v1055_v20 = vmax.f32 %v761_v13, 0.0 }
 0x174   :  { %v1058_v19 = vmax.f32 %v772_v15, 0.0 }
 0x175   :  { %v1056_v21 = vmax.f32 %v764_v17, 0.0 }
 0x176   :  { %v1148_v22 = vpack.c.bf16 %v1058_v19, %v1057_v18 }
 0x177   :  { %v1147_v23 = vpack.c.bf16 %v1056_v21, %v1055_v20  ;;  %v3915_v24 = vpop.f32.mrb[76].mxu0 }
 0x178   :  { %v785_v25 = vadd.f32 %v3915_v24, %v4593_v44  ;;  %v776_v26 = vpop.f32.mrb[77].mxu0 }
 0x179   :  { %v777_v27 = vadd.f32 %v4593_v44, %v776_v26  ;;  %v3916_v28 = vpop.f32.mrb[78].mxu0  ;;  %4045 = vmatprep.mubr.msk.bf16.mxu1 %vm1214_vm1, %v1147_v23 }
 0x17a   :  { %v788_v29 = vadd.f32 %v3916_v28, %v4593_v44  ;;  %v779_v30 = vpop.f32.mrb[79].mxu0  ;;  %4046 = vmatmul.mubr.msk.bf16.gmra.mrb[72].mxu1 %vm1214_vm1, %v1148_v22  ;;  %v1061_v32 = vmax.f32 %v785_v25, 0.0 }
 0x17b   :  { %v780_v31 = vadd.f32 %v4593_v44, %v779_v30  ;;  %v1059_v34 = vmax.f32 %v777_v27, 0.0 }
 0x17c   :  { %v1062_v33 = vmax.f32 %v788_v29, 0.0 }
 0x17d   :  { %v1060_v35 = vmax.f32 %v780_v31, 0.0 }
 0x17e   :  { %v1150_v36 = vpack.c.bf16 %v1062_v33, %v1061_v32 }
 0x17f   :  { %v1149_v37 = vpack.c.bf16 %v1060_v35, %v1059_v34  ;;  %v3919_v38 = vpop.f32.mrb[80].mxu0 }
 0x180   :  { %v801_v39 = vadd.f32 %v3919_v38, %v4593_v44  ;;  %v792_v40 = vpop.f32.mrb[81].mxu0 }
 0x181   :  { %v793_v41 = vadd.f32 %v4593_v44, %v792_v40  ;;  %v3920_v42 = vpop.f32.mrb[82].mxu0  ;;  %4049 = vmatprep.mubr.msk.bf16.mxu1 %vm1214_vm1, %v1149_v37 }
 0x182   :  { %v804_v43 = vadd.f32 %v3920_v42, %v4593_v44  ;;  %v795_v45 = vpop.f32.mrb[83].mxu0  ;;  %4050 = vmatmul.mubr.msk.bf16.gmra.mrb[76].mxu1 %vm1214_vm1, %v1150_v36  ;;  %v1065_v47 = vmax.f32 %v801_v39, 0.0 }
 0x183   :  { %v796_v46 = vadd.f32 %v4593_v44, %v795_v45  ;;  %v1063_v49 = vmax.f32 %v793_v41, 0.0 }
 0x184   :  { %v1066_v48 = vmax.f32 %v804_v43, 0.0 }
 0x185   :  { %v1064_v50 = vmax.f32 %v796_v46, 0.0 }
 0x186   :  { %v1152_v51 = vpack.c.bf16 %v1066_v48, %v1065_v47 }
 0x187   :  { %v1151_v52 = vpack.c.bf16 %v1064_v50, %v1063_v49  ;;  %v3923_v53 = vpop.f32.mrb[84].mxu0 }
 0x188   :  { %v817_v54 = vadd.f32 %v3923_v53, %v4593_v44  ;;  %v808_v55 = vpop.f32.mrb[85].mxu0 }
 0x189   :  { %v809_v56 = vadd.f32 %v4593_v44, %v808_v55  ;;  %v3924_v57 = vpop.f32.mrb[86].mxu0  ;;  %4053 = vmatprep.mubr.msk.bf16.mxu1 %vm1214_vm1, %v1151_v52 }
 0x18a   :  { %v820_v58 = vadd.f32 %v3924_v57, %v4593_v44  ;;  %v811_v59 = vpop.f32.mrb[87].mxu0  ;;  %4054 = vmatmul.mubr.msk.bf16.gmra.mrb[80].mxu1 %vm1214_vm1, %v1152_v51  ;;  %v1069_v61 = vmax.f32 %v817_v54, 0.0 }
 0x18b   :  { %v812_v60 = vadd.f32 %v4593_v44, %v811_v59  ;;  %v1067_v63 = vmax.f32 %v809_v56, 0.0 }
 0x18c   :  { %v1070_v62 = vmax.f32 %v820_v58, 0.0 }
 0x18d   :  { %v1068_v0 = vmax.f32 %v812_v60, 0.0 }
 0x18e   :  { %v1154_v1 = vpack.c.bf16 %v1070_v62, %v1069_v61 }
 0x18f   :  { %v1153_v2 = vpack.c.bf16 %v1068_v0, %v1067_v63  ;;  %v3927_v3 = vpop.f32.mrb[88].mxu0 }
 0x190   :  { %v833_v4 = vadd.f32 %v3927_v3, %v4593_v44  ;;  %v824_v5 = vpop.f32.mrb[89].mxu0 }
 0x191   :  { %v825_v6 = vadd.f32 %v4593_v44, %v824_v5  ;;  %v3928_v7 = vpop.f32.mrb[90].mxu0  ;;  %4057 = vmatprep.mubr.msk.bf16.mxu1 %vm1214_vm1, %v1153_v2 }
 0x192   :  { %v836_v8 = vadd.f32 %v3928_v7, %v4593_v44  ;;  %v827_v9 = vpop.f32.mrb[91].mxu0  ;;  %4058 = vmatmul.mubr.msk.bf16.gmra.mrb[84].mxu1 %vm1214_vm1, %v1154_v1  ;;  %v1073_v11 = vmax.f32 %v833_v4, 0.0 }
 0x193   :  { %v828_v10 = vadd.f32 %v4593_v44, %v827_v9  ;;  %v1071_v13 = vmax.f32 %v825_v6, 0.0 }
 0x194   :  { %v1074_v12 = vmax.f32 %v836_v8, 0.0 }
 0x195   :  { %v1072_v14 = vmax.f32 %v828_v10, 0.0 }
 0x196   :  { %v1156_v15 = vpack.c.bf16 %v1074_v12, %v1073_v11 }
 0x197   :  { %v1155_v16 = vpack.c.bf16 %v1072_v14, %v1071_v13  ;;  %v3931_v17 = vpop.f32.mrb[92].mxu0 }
 0x198   :  { %v849_v18 = vadd.f32 %v3931_v17, %v4593_v44  ;;  %v840_v19 = vpop.f32.mrb[93].mxu0 }
 0x199   :  { %v841_v20 = vadd.f32 %v4593_v44, %v840_v19  ;;  %v3932_v21 = vpop.f32.mrb[94].mxu0  ;;  %4061 = vmatprep.mubr.msk.bf16.mxu1 %vm1214_vm1, %v1155_v16 }
 0x19a   :  { %v1077_v22 = vmax.f32 %v849_v18, 0.0  ;;  %v852_v23 = vadd.f32 %v3932_v21, %v4593_v44  ;;  %v843_v24 = vpop.f32.mrb[95].mxu0  ;;  %4062 = vmatmul.mubr.msk.bf16.gmra.mrb[88].mxu1 %vm1214_vm1, %v1156_v15 }
 0x19b   :  { %v1075_v25 = vmax.f32 %v841_v20, 0.0  ;;  %v844_v26 = vadd.f32 %v4593_v44, %v843_v24  ;;  %v4828_v20 = vld [vmem:[%s5793_s4] ss:$0 sm:$0xff] }
 0x19c   :  { %v1078_v27 = vmax.f32 %v852_v23, 0.0 }
 0x19d   :  { %v1076_v28 = vmax.f32 %v844_v26, 0.0 }
 0x19e   :  { %v1158_v29 = vpack.c.bf16 %v1078_v27, %v1077_v22 }
 0x19f   :  { %v1157_v30 = vpack.c.bf16 %v1076_v28, %v1075_v25  ;;  %v3935_v31 = vpop.f32.mrb[96].mxu0 }
 0x1a0   :  { %v865_v32 = vadd.f32 %v3935_v31, %v4593_v44  ;;  %v856_v33 = vpop.f32.mrb[97].mxu0  ;;  %v4835_v31 = vld [vmem:[%s5794_s5] ss:$0 sm:$0xff] }
 0x1a1   :  { %v857_v34 = vadd.f32 %v4593_v44, %v856_v33  ;;  %v3936_v35 = vpop.f32.mrb[98].mxu0  ;;  %4065 = vmatprep.mubr.msk.bf16.mxu1 %vm1214_vm1, %v1157_v30 }
 0x1a2   :  { %v1081_v36 = vmax.f32 %v865_v32, 0.0  ;;  %v868_v37 = vadd.f32 %v3936_v35, %v4593_v44  ;;  %v859_v38 = vpop.f32.mrb[99].mxu0  ;;  %4066 = vmatmul.mubr.msk.bf16.gmra.mrb[92].mxu1 %vm1214_vm1, %v1158_v29 }
 0x1a3   :  { %v1079_v39 = vmax.f32 %v857_v34, 0.0  ;;  %v860_v40 = vadd.f32 %v4593_v44, %v859_v38 }
 0x1a4   :  { %v1082_v41 = vmax.f32 %v868_v37, 0.0 }
 0x1a5   :  { %v1080_v42 = vmax.f32 %v860_v40, 0.0 }
 0x1a6   :  { %v1160_v43 = vpack.c.bf16 %v1082_v41, %v1081_v36 }
 0x1a7   :  { %v1159_v45 = vpack.c.bf16 %v1080_v42, %v1079_v39  ;;  %v3939_v46 = vpop.f32.mrb[100].mxu0 }
 0x1a8   :  { %v881_v47 = vadd.f32 %v3939_v46, %v4593_v44  ;;  %v872_v48 = vpop.f32.mrb[101].mxu0 }
 0x1a9   :  { %v873_v49 = vadd.f32 %v4593_v44, %v872_v48  ;;  %v3940_v50 = vpop.f32.mrb[102].mxu0  ;;  %4069 = vmatprep.mubr.msk.bf16.mxu1 %vm1214_vm1, %v1159_v45 }
 0x1aa   :  { %v1085_v51 = vmax.f32 %v881_v47, 0.0  ;;  %v884_v52 = vadd.f32 %v3940_v50, %v4593_v44  ;;  %v875_v53 = vpop.f32.mrb[103].mxu0  ;;  %4070 = vmatmul.mubr.msk.bf16.gmra.mrb[96].mxu1 %vm1214_vm1, %v1160_v43 }
 0x1ab   :  { %v1083_v54 = vmax.f32 %v873_v49, 0.0  ;;  %v876_v55 = vadd.f32 %v4593_v44, %v875_v53  ;;  %v4848_v49 = vld [vmem:[%s5791_s2] ss:$0 sm:$0xff] }
 0x1ac   :  { %v1086_v56 = vmax.f32 %v884_v52, 0.0 }
 0x1ad   :  { %v1084_v57 = vmax.f32 %v876_v55, 0.0 }
 0x1ae   :  { %v1162_v58 = vpack.c.bf16 %v1086_v56, %v1085_v51 }
 0x1af   :  { %v1161_v59 = vpack.c.bf16 %v1084_v57, %v1083_v54  ;;  %v3943_v60 = vpop.f32.mrb[104].mxu0 }
 0x1b0   :  { %v897_v61 = vadd.f32 %v3943_v60, %v4593_v44  ;;  %v888_v62 = vpop.f32.mrb[105].mxu0 }
 0x1b1   :  { %v889_v63 = vadd.f32 %v4593_v44, %v888_v62  ;;  %v3944_v0 = vpop.f32.mrb[106].mxu0  ;;  %4073 = vmatprep.mubr.msk.bf16.mxu1 %vm1214_vm1, %v1161_v59 }
 0x1b2   :  { %v1089_v1 = vmax.f32 %v897_v61, 0.0  ;;  %v900_v2 = vadd.f32 %v3944_v0, %v4593_v44  ;;  %v891_v3 = vpop.f32.mrb[107].mxu0  ;;  %4074 = vmatmul.mubr.msk.bf16.gmra.mrb[100].mxu1 %vm1214_vm1, %v1162_v58 }
 0x1b3   :  { %v1087_v4 = vmax.f32 %v889_v63, 0.0  ;;  %v892_v5 = vadd.f32 %v4593_v44, %v891_v3 }
 0x1b4   :  { %v1090_v6 = vmax.f32 %v900_v2, 0.0 }
 0x1b5   :  { %v1088_v7 = vmax.f32 %v892_v5, 0.0 }
 0x1b6   :  { %v1164_v8 = vpack.c.bf16 %v1090_v6, %v1089_v1 }
 0x1b7   :  { %v1163_v9 = vpack.c.bf16 %v1088_v7, %v1087_v4  ;;  %v3947_v10 = vpop.f32.mrb[108].mxu0 }
 0x1b8   :  { %v913_v11 = vadd.f32 %v3947_v10, %v4593_v44  ;;  %v904_v12 = vpop.f32.mrb[109].mxu0 }
 0x1b9   :  { %v905_v13 = vadd.f32 %v4593_v44, %v904_v12  ;;  %v3948_v14 = vpop.f32.mrb[110].mxu0  ;;  %4077 = vmatprep.mubr.msk.bf16.mxu1 %vm1214_vm1, %v1163_v9 }
 0x1ba   :  { %v1093_v15 = vmax.f32 %v913_v11, 0.0  ;;  %v916_v16 = vadd.f32 %v3948_v14, %v4593_v44  ;;  %v907_v17 = vpop.f32.mrb[111].mxu0  ;;  %4078 = vmatmul.mubr.msk.bf16.gmra.mrb[104].mxu1 %vm1214_vm1, %v1164_v8 }
 0x1bb   :  { %v1091_v18 = vmax.f32 %v905_v13, 0.0  ;;  %v908_v19 = vadd.f32 %v4593_v44, %v907_v17 }
 0x1bc   :  { %v1094_v21 = vmax.f32 %v916_v16, 0.0 }
 0x1bd   :  { %v1092_v22 = vmax.f32 %v908_v19, 0.0  ;;  %v3975_v23 = vpop.f32.mrb[0].mxu1 }
 0x1be   :  { %v1166_v24 = vpack.c.bf16 %v1094_v21, %v1093_v15  ;;  %v1450_v25 = vadd.f32 %v3975_v23, %v4828_v20  ;;  %v1441_v26 = vpop.f32.mrb[1].mxu1 }
 0x1bf   :  { %v1165_v27 = vpack.c.bf16 %v1092_v22, %v1091_v18  ;;  %v1442_v28 = vadd.f32 %v4828_v20, %v1441_v26  ;;  %v3951_v29 = vpop.f32.mrb[112].mxu0  ;;  %v3976_v30 = vpop.f32.mrb[2].mxu1 }
 0x1c0   :  { %v1954_v32 = vmax.f32 %v1450_v25, 0.0  ;;  %v929_v33 = vadd.f32 %v3951_v29, %v4593_v44  ;;  %v1453_v34 = vadd.f32 %v3976_v30, %v4828_v20  ;;  %v920_v35 = vpop.f32.mrb[113].mxu0  ;;  %v1444_v36 = vpop.f32.mrb[3].mxu1 }
 0x1c1   :  { %v1952_v37 = vmax.f32 %v1442_v28, 0.0  ;;  %v921_v38 = vadd.f32 %v4593_v44, %v920_v35  ;;  %v1445_v39 = vadd.f32 %v4828_v20, %v1444_v36  ;;  %v3952_v40 = vpop.f32.mrb[114].mxu0  ;;  %4081 = vmatprep.mubr.msk.bf16.mxu1 %vm1214_vm1, %v1165_v27 }
 0x1c2   :  { %v1097_v41 = vmax.f32 %v929_v33, 0.0  ;;  %v1955_v42 = vmax.f32 %v1453_v34, 0.0  ;;  %v932_v43 = vadd.f32 %v3952_v40, %v4593_v44  ;;  %v923_v45 = vpop.f32.mrb[115].mxu0  ;;  %4082 = vmatmul.mubr.msk.bf16.gmra.mrb[108].mxu1 %vm1214_vm1, %v1166_v24  ;;  %v2089_v46 = vmul.f32 %v4835_v31, %v1954_v32 }
 0x1c3   :  { %v1095_v47 = vmax.f32 %v921_v38, 0.0  ;;  %v1953_v48 = vmax.f32 %v1445_v39, 0.0  ;;  %v924_v50 = vadd.f32 %v4848_v49, %v923_v45  ;;  %v2087_v51 = vmul.f32 %v4835_v31, %v1952_v37 }
 0x1c4   :  { %v1098_v52 = vmax.f32 %v932_v43, 0.0  ;;  %v2221_v53 = vsel %vm245_vm0, %v2089_v46, 0.0  ;;  %v2090_v44 = vmul.f32 %v4835_v31, %v1955_v42 }
 0x1c5   :  { %v1096_v54 = vmax.f32 %v924_v50, 0.0  ;;  %2222 = vadd.xlane.f32.xlu1 %v2221_v53  ;;  %v3979_v55 = vpop.f32.mrb[4].mxu1  ;;  %v2215_v56 = vsel %vm245_vm0, %v2087_v51, 0.0  ;;  %v2088_v57 = vmul.f32 %v4835_v31, %v1953_v48 }
 0x1c6   :  { %v1168_v58 = vpack.c.bf16 %v1098_v52, %v1097_v41  ;;  %v1466_v59 = vadd.f32 %v3979_v55, %v4828_v20  ;;  %v1457_v60 = vpop.f32.mrb[5].mxu1  ;;  %2216 = vadd.xlane.f32.xlu0 %v2215_v56  ;;  %v2224_v6 = vsel %vm245_vm0, %v2090_v44, 0.0 }
 0x1c7   :  { %v1167_v61 = vpack.c.bf16 %v1096_v54, %v1095_v47  ;;  %v1458_v62 = vadd.f32 %v4828_v20, %v1457_v60  ;;  %v3955_v63 = vpop.f32.mrb[116].mxu0  ;;  %v3980_v0 = vpop.f32.mrb[6].mxu1  ;;  %v2218_v11 = vsel %vm245_vm0, %v2088_v57, 0.0 }
 0x1c8   :  { %v1958_v1 = vmax.f32 %v1466_v59, 0.0  ;;  %v945_v2 = vadd.f32 %v4848_v49, %v3955_v63  ;;  %v1469_v3 = vadd.f32 %v3980_v0, %v4828_v20  ;;  %v936_v4 = vpop.f32.mrb[117].mxu0  ;;  %v1460_v5 = vpop.f32.mrb[7].mxu1 }
 0x1c9   :  { %v1956_v7 = vmax.f32 %v1458_v62, 0.0  ;;  %v937_v8 = vadd.f32 %v4848_v49, %v936_v4  ;;  %v1461_v9 = vadd.f32 %v4828_v20, %v1460_v5  ;;  %v3956_v10 = vpop.f32.mrb[118].mxu0  ;;  %4085 = vmatprep.mubr.msk.bf16.mxu1 %vm1214_vm1, %v1167_v61  ;;  %2225 = vadd.xlane.f32.xlu1 %v2224_v6 }
 0x1ca   :  { %v1101_v12 = vmax.f32 %v945_v2, 0.0  ;;  %v1959_v13 = vmax.f32 %v1469_v3, 0.0  ;;  %v948_v14 = vadd.f32 %v4848_v49, %v3956_v10  ;;  %v939_v15 = vpop.f32.mrb[119].mxu0  ;;  %4086 = vmatmul.mubr.msk.bf16.gmra.mrb[112].mxu1 %vm1214_vm1, %v1168_v58  ;;  %2219 = vadd.xlane.f32.xlu0 %v2218_v11  ;;  %v2093_v16 = vmul.f32 %v4835_v31, %v1958_v1 }
 0x1cb   :  { %v1099_v17 = vmax.f32 %v937_v8, 0.0  ;;  %v1957_v18 = vmax.f32 %v1461_v9, 0.0  ;;  %v940_v19 = vadd.f32 %v4848_v49, %v939_v15  ;;  %v2091_v24 = vmul.f32 %v4835_v31, %v1956_v7 }
 0x1cc   :  { %v1102_v21 = vmax.f32 %v948_v14, 0.0  ;;  %v2233_v22 = vsel %vm245_vm0, %v2093_v16, 0.0  ;;  %v2094_v23 = vmul.f32 %v4835_v31, %v1959_v13 }
 0x1cd   :  { %v1100_v25 = vmax.f32 %v940_v19, 0.0  ;;  %v3983_v26 = vpop.f32.mrb[8].mxu1  ;;  %v2092_v27 = vmul.f32 %v4835_v31, %v1957_v18  ;;  %v2227_v42 = vsel %vm245_vm0, %v2091_v24, 0.0 }
 0x1ce   :  { %v1170_v28 = vpack.c.bf16 %v1102_v21, %v1101_v12  ;;  %v1482_v29 = vadd.f32 %v3983_v26, %v4828_v20  ;;  %v1473_v30 = vpop.f32.mrb[9].mxu1  ;;  %2234 = vadd.xlane.f32.xlu0 %v2233_v22  ;;  %v2236_v32 = vsel %vm245_vm0, %v2094_v23, 0.0 }
 0x1cf   :  { %v1169_v33 = vpack.c.bf16 %v1100_v25, %v1099_v17  ;;  %v1474_v34 = vadd.f32 %v4828_v20, %v1473_v30  ;;  %v3959_v35 = vpop.f32.mrb[120].mxu0  ;;  %2237 = vadd.xlane.f32.xlu1 %v2236_v32  ;;  %v3984_v36 = vpop.f32.mrb[10].mxu1  ;;  %v2230_v48 = vsel %vm245_vm0, %v2092_v27, 0.0 }
 0x1d0   :  { %v1962_v37 = vmax.f32 %v1482_v29, 0.0  ;;  %v961_v38 = vadd.f32 %v4848_v49, %v3959_v35  ;;  %v1485_v39 = vadd.f32 %v3984_v36, %v4828_v20  ;;  %v952_v40 = vpop.f32.mrb[121].mxu0  ;;  %v1476_v41 = vpop.f32.mrb[11].mxu1 }
 0x1d1   :  { %v1960_v43 = vmax.f32 %v1474_v34, 0.0  ;;  %v953_v45 = vadd.f32 %v4848_v49, %v952_v40  ;;  %v1477_v46 = vadd.f32 %v4828_v20, %v1476_v41  ;;  %v3960_v47 = vpop.f32.mrb[122].mxu0  ;;  %4089 = vmatprep.mubr.msk.bf16.mxu1 %vm1214_vm1, %v1169_v33 }
 0x1d2   :  { %v1105_v50 = vmax.f32 %v961_v38, 0.0  ;;  %v1963_v51 = vmax.f32 %v1485_v39, 0.0  ;;  %v964_v52 = vadd.f32 %v4848_v49, %v3960_v47  ;;  %v955_v53 = vpop.f32.mrb[123].mxu0  ;;  %4090 = vmatmul.mubr.msk.bf16.gmra.mrb[116].mxu1 %vm1214_vm1, %v1170_v28  ;;  %2228 = vadd.xlane.f32.xlu0 %v2227_v42  ;;  %v2097_v44 = vmul.f32 %v4835_v31, %v1962_v37 }
 0x1d3   :  { %v1103_v54 = vmax.f32 %v953_v45, 0.0  ;;  %v1961_v55 = vmax.f32 %v1477_v46, 0.0  ;;  %v956_v56 = vadd.f32 %v4848_v49, %v955_v53  ;;  %2231 = vadd.xlane.f32.xlu1 %v2230_v48  ;;  %v2095_v60 = vmul.f32 %v4835_v31, %v1960_v43 }
 0x1d4   :  { %v1106_v57 = vmax.f32 %v964_v52, 0.0  ;;  %v2245_v58 = vsel %vm245_vm0, %v2097_v44, 0.0  ;;  %v2098_v59 = vmul.f32 %v4835_v31, %v1963_v51 }
 0x1d5   :  { %v1104_v61 = vmax.f32 %v956_v56, 0.0  ;;  %v3987_v62 = vpop.f32.mrb[12].mxu1  ;;  %v2096_v63 = vmul.f32 %v4835_v31, %v1961_v55  ;;  %v2239_v13 = vsel %vm245_vm0, %v2095_v60, 0.0 }
 0x1d6   :  { %v1172_v0 = vpack.c.bf16 %v1106_v57, %v1105_v50  ;;  %v1498_v1 = vadd.f32 %v3987_v62, %v4828_v20  ;;  %v1489_v2 = vpop.f32.mrb[13].mxu1  ;;  %2246 = vadd.xlane.f32.xlu0 %v2245_v58  ;;  %v2248_v3 = vsel %vm245_vm0, %v2098_v59, 0.0 }
 0x1d7   :  { %v1171_v4 = vpack.c.bf16 %v1104_v61, %v1103_v54  ;;  %v1490_v5 = vadd.f32 %v4828_v20, %v1489_v2  ;;  %v3963_v6 = vpop.f32.mrb[124].mxu0  ;;  %v3988_v7 = vpop.f32.mrb[14].mxu1  ;;  %2249 = vadd.xlane.f32.xlu1 %v2248_v3  ;;  %v2242_v18 = vsel %vm245_vm0, %v2096_v63, 0.0 }
 0x1d8   :  { %v1966_v8 = vmax.f32 %v1498_v1, 0.0  ;;  %v977_v9 = vadd.f32 %v4848_v49, %v3963_v6  ;;  %v1501_v10 = vadd.f32 %v3988_v7, %v4828_v20  ;;  %v968_v11 = vpop.f32.mrb[125].mxu0  ;;  %v1492_v12 = vpop.f32.mrb[15].mxu1 }
 0x1d9   :  { %v1964_v14 = vmax.f32 %v1490_v5, 0.0  ;;  %v969_v15 = vadd.f32 %v4848_v49, %v968_v11  ;;  %v1493_v16 = vadd.f32 %v4828_v20, %v1492_v12  ;;  %v3964_v17 = vpop.f32.mrb[126].mxu0  ;;  %4093 = vmatprep.mubr.msk.bf16.mxu1 %vm1214_vm1, %v1171_v4 }
 0x1da   :  { %v1109_v19 = vmax.f32 %v977_v9, 0.0  ;;  %v1967_v21 = vmax.f32 %v1501_v10, 0.0  ;;  %v980_v22 = vadd.f32 %v4848_v49, %v3964_v17  ;;  %v971_v23 = vpop.f32.mrb[127].mxu0  ;;  %4094 = vmatmul.mubr.msk.bf16.gmra.mrb[120].mxu1 %vm1214_vm1, %v1172_v0  ;;  %2240 = vadd.xlane.f32.xlu0 %v2239_v13  ;;  %v2101_v24 = vmul.f32 %v4835_v31, %v1966_v8 }
 0x1db   :  { %v1107_v25 = vmax.f32 %v969_v15, 0.0  ;;  %v1965_v26 = vmax.f32 %v1493_v16, 0.0  ;;  %v972_v27 = vadd.f32 %v4848_v49, %v971_v23  ;;  %2243 = vadd.xlane.f32.xlu1 %v2242_v18  ;;  %v2099_v34 = vmul.f32 %v4835_v31, %v1964_v14 }
 0x1dc   :  { %v1110_v28 = vmax.f32 %v980_v22, 0.0  ;;  %v2257_v29 = vsel %vm245_vm0, %v2101_v24, 0.0  ;;  %v2102_v30 = vmul.f32 %v4835_v31, %v1967_v21 }
 0x1dd   :  { %v1108_v32 = vmax.f32 %v972_v27, 0.0  ;;  %v3991_v33 = vpop.f32.mrb[16].mxu1  ;;  %v2100_v39 = vmul.f32 %v4835_v31, %v1965_v26  ;;  %v2251_v48 = vsel %vm245_vm0, %v2099_v34, 0.0 }
 0x1de   :  { %v1174_v35 = vpack.c.bf16 %v1110_v28, %v1109_v19  ;;  %v1514_v36 = vadd.f32 %v3991_v33, %v4828_v20  ;;  %v1505_v37 = vpop.f32.mrb[17].mxu1  ;;  %2258 = vadd.xlane.f32.xlu0 %v2257_v29  ;;  %v2260_v38 = vsel %vm245_vm0, %v2102_v30, 0.0 }
 0x1df   :  { %v1173_v49 = vpack.c.bf16 %v1108_v32, %v1107_v25  ;;  %v1506_v40 = vadd.f32 %v4828_v20, %v1505_v37  ;;  %v3992_v41 = vpop.f32.mrb[18].mxu1  ;;  %2261 = vadd.xlane.f32.xlu1 %v2260_v38  ;;  %v2254_v51 = vsel %vm245_vm0, %v2100_v39, 0.0 }
 0x1e0   :  { %v1970_v42 = vmax.f32 %v1514_v36, 0.0  ;;  %v1517_v43 = vadd.f32 %v3992_v41, %v4828_v20  ;;  %v1508_v45 = vpop.f32.mrb[19].mxu1 }
 0x1e1   :  { %v1968_v46 = vmax.f32 %v1506_v40, 0.0  ;;  %v1509_v47 = vadd.f32 %v4828_v20, %v1508_v45  ;;  %4097 = vmatprep.mubr.msk.bf16.mxu1 %vm1214_vm1, %v1173_v49 }
 0x1e2   :  { %v1971_v50 = vmax.f32 %v1517_v43, 0.0  ;;  %4098 = vmatmul.mubr.msk.bf16.gmra.mrb[124].mxu1 %vm1214_vm1, %v1174_v35  ;;  %2252 = vadd.xlane.f32.xlu0 %v2251_v48  ;;  %v2105_v52 = vmul.f32 %v4835_v31, %v1970_v42  ;;  %vm2974_vm1 = vcmask 1048512  }
 0x1e3   :  { %v1969_v53 = vmax.f32 %v1509_v47, 0.0  ;;  %2255 = vadd.xlane.f32.xlu1 %v2254_v51  ;;  %v2103_v56 = vmul.f32 %v4835_v31, %v1968_v46 }
 0x1e4   :  { %v2269_v44 = vsel %vm245_vm0, %v2105_v52, 0.0  ;;  %v2106_v54 = vmul.f32 %v4835_v31, %v1971_v50 }
 0x1e5   :  { %v3995_v55 = vpop.f32.mrb[20].mxu1  ;;  %v2104_v60 = vmul.f32 %v4835_v31, %v1969_v53  ;;  %v2263_v4 = vsel %vm245_vm0, %v2103_v56, 0.0 }
 0x1e6   :  { %v1530_v57 = vadd.f32 %v3995_v55, %v4828_v20  ;;  %v1521_v58 = vpop.f32.mrb[21].mxu1  ;;  %2270 = vadd.xlane.f32.xlu0 %v2269_v44  ;;  %v2272_v59 = vsel %vm245_vm0, %v2106_v54, 0.0 }
 0x1e7   :  { %v1522_v61 = vadd.f32 %v4828_v20, %v1521_v58  ;;  %v3996_v62 = vpop.f32.mrb[22].mxu1  ;;  %2273 = vadd.xlane.f32.xlu1 %v2272_v59  ;;  %v2266_v6 = vsel %vm245_vm0, %v2104_v60, 0.0 }
 0x1e8   :  { %v1974_v63 = vmax.f32 %v1530_v57, 0.0  ;;  %v1533_v0 = vadd.f32 %v3996_v62, %v4828_v20  ;;  %v1524_v1 = vpop.f32.mrb[23].mxu1 }
 0x1e9   :  { %v1972_v2 = vmax.f32 %v1522_v61, 0.0  ;;  %v1525_v3 = vadd.f32 %v4828_v20, %v1524_v1 }
 0x1ea   :  { %v1975_v5 = vmax.f32 %v1533_v0, 0.0  ;;  %2264 = vadd.xlane.f32.xlu0 %v2263_v4  ;;  %v2109_v7 = vmul.f32 %v4835_v31, %v1974_v63 }
 0x1eb   :  { %v1973_v8 = vmax.f32 %v1525_v3, 0.0  ;;  %2267 = vadd.xlane.f32.xlu1 %v2266_v6  ;;  %v2107_v12 = vmul.f32 %v4835_v31, %v1972_v2 }
 0x1ec   :  { %v2281_v9 = vsel %vm245_vm0, %v2109_v7, 0.0  ;;  %v2110_v10 = vmul.f32 %v4835_v31, %v1975_v5 }
 0x1ed   :  { %v3999_v11 = vpop.f32.mrb[24].mxu1  ;;  %v2108_v16 = vmul.f32 %v4835_v31, %v1973_v8  ;;  %v2275_v25 = vsel %vm245_vm0, %v2107_v12, 0.0 }
 0x1ee   :  { %v1546_v13 = vadd.f32 %v3999_v11, %v4828_v20  ;;  %v1537_v14 = vpop.f32.mrb[25].mxu1  ;;  %2282 = vadd.xlane.f32.xlu0 %v2281_v9  ;;  %v2284_v15 = vsel %vm245_vm0, %v2110_v10, 0.0 }
 0x1ef   :  { %v1538_v17 = vadd.f32 %v4828_v20, %v1537_v14  ;;  %v4000_v18 = vpop.f32.mrb[26].mxu1  ;;  %2285 = vadd.xlane.f32.xlu1 %v2284_v15  ;;  %v2278_v27 = vsel %vm245_vm0, %v2108_v16, 0.0 }
 0x1f0   :  { %v1978_v19 = vmax.f32 %v1546_v13, 0.0  ;;  %v1549_v21 = vadd.f32 %v4000_v18, %v4828_v20  ;;  %v1540_v22 = vpop.f32.mrb[27].mxu1 }
 0x1f1   :  { %v1976_v23 = vmax.f32 %v1538_v17, 0.0  ;;  %v1541_v24 = vadd.f32 %v4828_v20, %v1540_v22 }
 0x1f2   :  { %v1979_v26 = vmax.f32 %v1549_v21, 0.0  ;;  %2276 = vadd.xlane.f32.xlu0 %v2275_v25  ;;  %v2113_v28 = vmul.f32 %v4835_v31, %v1978_v19 }
 0x1f3   :  { %v1977_v29 = vmax.f32 %v1541_v24, 0.0  ;;  %2279 = vadd.xlane.f32.xlu1 %v2278_v27  ;;  %v2111_v34 = vmul.f32 %v4835_v31, %v1976_v23 }
 0x1f4   :  { %v2293_v30 = vsel %vm245_vm0, %v2113_v28, 0.0  ;;  %v2114_v32 = vmul.f32 %v4835_v31, %v1979_v26 }
 0x1f5   :  { %v4003_v33 = vpop.f32.mrb[28].mxu1  ;;  %v2112_v38 = vmul.f32 %v4835_v31, %v1977_v29  ;;  %v2287_v46 = vsel %vm245_vm0, %v2111_v34, 0.0 }
 0x1f6   :  { %v1562_v35 = vadd.f32 %v4003_v33, %v4828_v20  ;;  %v1553_v36 = vpop.f32.mrb[29].mxu1  ;;  %2294 = vadd.xlane.f32.xlu0 %v2293_v30  ;;  %v2296_v37 = vsel %vm245_vm0, %v2114_v32, 0.0 }
 0x1f7   :  { %v1554_v39 = vadd.f32 %v4828_v20, %v1553_v36  ;;  %v4004_v49 = vpop.f32.mrb[30].mxu1  ;;  %2297 = vadd.xlane.f32.xlu1 %v2296_v37  ;;  %v2290_v48 = vsel %vm245_vm0, %v2112_v38, 0.0 }
 0x1f8   :  { %v1982_v40 = vmax.f32 %v1562_v35, 0.0  ;;  %v1565_v41 = vadd.f32 %v4004_v49, %v4828_v20  ;;  %v1556_v42 = vpop.f32.mrb[31].mxu1 }
 0x1f9   :  { %v1980_v43 = vmax.f32 %v1554_v39, 0.0  ;;  %v1557_v45 = vadd.f32 %v4828_v20, %v1556_v42 }
 0x1fa   :  { %v1983_v47 = vmax.f32 %v1565_v41, 0.0  ;;  %2288 = vadd.xlane.f32.xlu0 %v2287_v46  ;;  %v2117_v50 = vmul.f32 %v4835_v31, %v1982_v40 }
 0x1fb   :  { %v1981_v51 = vmax.f32 %v1557_v45, 0.0  ;;  %2291 = vadd.xlane.f32.xlu1 %v2290_v48  ;;  %v2115_v54 = vmul.f32 %v4835_v31, %v1980_v43 }
 0x1fc   :  { %v2305_v52 = vsel %vm245_vm0, %v2117_v50, 0.0  ;;  %v2118_v53 = vmul.f32 %v4835_v31, %v1983_v47 }
 0x1fd   :  { %v4007_v44 = vpop.f32.mrb[32].mxu1  ;;  %v2116_v58 = vmul.f32 %v4835_v31, %v1981_v51  ;;  %v2299_v2 = vsel %vm245_vm0, %v2115_v54, 0.0 }
 0x1fe   :  { %v1578_v55 = vadd.f32 %v4007_v44, %v4828_v20  ;;  %v1569_v56 = vpop.f32.mrb[33].mxu1  ;;  %2306 = vadd.xlane.f32.xlu0 %v2305_v52  ;;  %v2308_v57 = vsel %vm245_vm0, %v2118_v53, 0.0 }
 0x1ff   :  { %v1570_v59 = vadd.f32 %v4828_v20, %v1569_v56  ;;  %v4008_v60 = vpop.f32.mrb[34].mxu1  ;;  %2309 = vadd.xlane.f32.xlu1 %v2308_v57  ;;  %v2302_v4 = vsel %vm245_vm0, %v2116_v58, 0.0 }
 0x200   :  { %v1986_v61 = vmax.f32 %v1578_v55, 0.0  ;;  %v1581_v62 = vadd.f32 %v4008_v60, %v4828_v20  ;;  %v1572_v63 = vpop.f32.mrb[35].mxu1 }
 0x201   :  { %v1984_v0 = vmax.f32 %v1570_v59, 0.0  ;;  %v1573_v1 = vadd.f32 %v4828_v20, %v1572_v63 }
 0x202   :  { %v1987_v3 = vmax.f32 %v1581_v62, 0.0  ;;  %2300 = vadd.xlane.f32.xlu0 %v2299_v2  ;;  %v2121_v5 = vmul.f32 %v4835_v31, %v1986_v61 }
 0x203   :  { %v1985_v6 = vmax.f32 %v1573_v1, 0.0  ;;  %2303 = vadd.xlane.f32.xlu1 %v2302_v4  ;;  %v2119_v10 = vmul.f32 %v4835_v31, %v1984_v0 }
 0x204   :  { %v2317_v7 = vsel %vm245_vm0, %v2121_v5, 0.0  ;;  %v2122_v8 = vmul.f32 %v4835_v31, %v1987_v3 }
 0x205   :  { %v4011_v9 = vpop.f32.mrb[36].mxu1  ;;  %v2120_v14 = vmul.f32 %v4835_v31, %v1985_v6  ;;  %v2311_v23 = vsel %vm245_vm0, %v2119_v10, 0.0 }
 0x206   :  { %v1594_v11 = vadd.f32 %v4011_v9, %v4828_v20  ;;  %v1585_v12 = vpop.f32.mrb[37].mxu1  ;;  %2318 = vadd.xlane.f32.xlu0 %v2317_v7  ;;  %v2320_v13 = vsel %vm245_vm0, %v2122_v8, 0.0 }
 0x207   :  { %v1586_v15 = vadd.f32 %v4828_v20, %v1585_v12  ;;  %v4012_v16 = vpop.f32.mrb[38].mxu1  ;;  %2321 = vadd.xlane.f32.xlu1 %v2320_v13  ;;  %v2314_v25 = vsel %vm245_vm0, %v2120_v14, 0.0 }
 0x208   :  { %v1990_v17 = vmax.f32 %v1594_v11, 0.0  ;;  %v1597_v18 = vadd.f32 %v4012_v16, %v4828_v20  ;;  %v1588_v19 = vpop.f32.mrb[39].mxu1 }
 0x209   :  { %v1988_v21 = vmax.f32 %v1586_v15, 0.0  ;;  %v1589_v22 = vadd.f32 %v4828_v20, %v1588_v19 }
 0x20a   :  { %v1991_v24 = vmax.f32 %v1597_v18, 0.0  ;;  %2312 = vadd.xlane.f32.xlu0 %v2311_v23  ;;  %v2125_v26 = vmul.f32 %v4835_v31, %v1990_v17 }
 0x20b   :  { %v1989_v27 = vmax.f32 %v1589_v22, 0.0  ;;  %2315 = vadd.xlane.f32.xlu1 %v2314_v25  ;;  %v2123_v32 = vmul.f32 %v4835_v31, %v1988_v21 }
 0x20c   :  { %v2329_v28 = vsel %vm245_vm0, %v2125_v26, 0.0  ;;  %v2126_v29 = vmul.f32 %v4835_v31, %v1991_v24 }
 0x20d   :  { %v4015_v30 = vpop.f32.mrb[40].mxu1  ;;  %v2124_v36 = vmul.f32 %v4835_v31, %v1989_v27  ;;  %v2323_v43 = vsel %vm245_vm0, %v2123_v32, 0.0 }
 0x20e   :  { %v1610_v33 = vadd.f32 %v4015_v30, %v4828_v20  ;;  %v1601_v34 = vpop.f32.mrb[41].mxu1  ;;  %2330 = vadd.xlane.f32.xlu0 %v2329_v28  ;;  %v2332_v35 = vsel %vm245_vm0, %v2126_v29, 0.0 }
 0x20f   :  { %v1602_v37 = vadd.f32 %v4828_v20, %v1601_v34  ;;  %v4016_v38 = vpop.f32.mrb[42].mxu1  ;;  %2333 = vadd.xlane.f32.xlu1 %v2332_v35  ;;  %v2326_v46 = vsel %vm245_vm0, %v2124_v36, 0.0 }
 0x210   :  { %v1994_v39 = vmax.f32 %v1610_v33, 0.0  ;;  %v1613_v49 = vadd.f32 %v4016_v38, %v4828_v20  ;;  %v1604_v40 = vpop.f32.mrb[43].mxu1 }
 0x211   :  { %v1992_v41 = vmax.f32 %v1602_v37, 0.0  ;;  %v1605_v42 = vadd.f32 %v4828_v20, %v1604_v40 }
 0x212   :  { %v1995_v45 = vmax.f32 %v1613_v49, 0.0  ;;  %2324 = vadd.xlane.f32.xlu0 %v2323_v43  ;;  %v2129_v47 = vmul.f32 %v4835_v31, %v1994_v39 }
 0x213   :  { %v1993_v48 = vmax.f32 %v1605_v42, 0.0  ;;  %2327 = vadd.xlane.f32.xlu1 %v2326_v46  ;;  %v2127_v53 = vmul.f32 %v4835_v31, %v1992_v41 }
 0x214   :  { %v2341_v50 = vsel %vm245_vm0, %v2129_v47, 0.0  ;;  %v2130_v51 = vmul.f32 %v4835_v31, %v1995_v45 }
 0x215   :  { %v4019_v52 = vpop.f32.mrb[44].mxu1  ;;  %v2128_v56 = vmul.f32 %v4835_v31, %v1993_v48  ;;  %v2335_v0 = vsel %vm245_vm0, %v2127_v53, 0.0 }
 0x216   :  { %v1626_v44 = vadd.f32 %v4019_v52, %v4828_v20  ;;  %v1617_v54 = vpop.f32.mrb[45].mxu1  ;;  %2342 = vadd.xlane.f32.xlu0 %v2341_v50  ;;  %v2344_v55 = vsel %vm245_vm0, %v2130_v51, 0.0 }
 0x217   :  { %v1618_v57 = vadd.f32 %v4828_v20, %v1617_v54  ;;  %v4020_v58 = vpop.f32.mrb[46].mxu1  ;;  %2345 = vadd.xlane.f32.xlu1 %v2344_v55  ;;  %v2338_v2 = vsel %vm245_vm0, %v2128_v56, 0.0 }
 0x218   :  { %v1998_v59 = vmax.f32 %v1626_v44, 0.0  ;;  %v1629_v60 = vadd.f32 %v4020_v58, %v4828_v20  ;;  %v1620_v61 = vpop.f32.mrb[47].mxu1 }
 0x219   :  { %v1996_v62 = vmax.f32 %v1618_v57, 0.0  ;;  %v1621_v63 = vadd.f32 %v4828_v20, %v1620_v61 }
 0x21a   :  { %v1999_v1 = vmax.f32 %v1629_v60, 0.0  ;;  %2336 = vadd.xlane.f32.xlu0 %v2335_v0  ;;  %v2133_v3 = vmul.f32 %v4835_v31, %v1998_v59 }
 0x21b   :  { %v1997_v4 = vmax.f32 %v1621_v63, 0.0  ;;  %2339 = vadd.xlane.f32.xlu1 %v2338_v2  ;;  %v2131_v8 = vmul.f32 %v4835_v31, %v1996_v62 }
 0x21c   :  { %v2353_v5 = vsel %vm245_vm0, %v2133_v3, 0.0  ;;  %v2134_v6 = vmul.f32 %v4835_v31, %v1999_v1 }
 0x21d   :  { %v4023_v7 = vpop.f32.mrb[48].mxu1  ;;  %v2132_v12 = vmul.f32 %v4835_v31, %v1997_v4  ;;  %v2347_v21 = vsel %vm245_vm0, %v2131_v8, 0.0 }
 0x21e   :  { %v1642_v9 = vadd.f32 %v4023_v7, %v4828_v20  ;;  %v1633_v10 = vpop.f32.mrb[49].mxu1  ;;  %2354 = vadd.xlane.f32.xlu0 %v2353_v5  ;;  %v2356_v11 = vsel %vm245_vm0, %v2134_v6, 0.0 }
 0x21f   :  { %v1634_v13 = vadd.f32 %v4828_v20, %v1633_v10  ;;  %v4024_v14 = vpop.f32.mrb[50].mxu1  ;;  %2357 = vadd.xlane.f32.xlu1 %v2356_v11  ;;  %v2350_v23 = vsel %vm245_vm0, %v2132_v12, 0.0 }
 0x220   :  { %v2002_v15 = vmax.f32 %v1642_v9, 0.0  ;;  %v1645_v16 = vadd.f32 %v4024_v14, %v4828_v20  ;;  %v1636_v17 = vpop.f32.mrb[51].mxu1 }
 0x221   :  { %v2000_v18 = vmax.f32 %v1634_v13, 0.0  ;;  %v1637_v19 = vadd.f32 %v4828_v20, %v1636_v17 }
 0x222   :  { %v2003_v22 = vmax.f32 %v1645_v16, 0.0  ;;  %2348 = vadd.xlane.f32.xlu0 %v2347_v21  ;;  %v2137_v24 = vmul.f32 %v4835_v31, %v2002_v15 }
 0x223   :  { %v2001_v25 = vmax.f32 %v1637_v19, 0.0  ;;  %2351 = vadd.xlane.f32.xlu1 %v2350_v23  ;;  %v2135_v29 = vmul.f32 %v4835_v31, %v2000_v18 }
 0x224   :  { %v2365_v26 = vsel %vm245_vm0, %v2137_v24, 0.0  ;;  %v2138_v27 = vmul.f32 %v4835_v31, %v2003_v22 }
 0x225   :  { %v4027_v28 = vpop.f32.mrb[52].mxu1  ;;  %v2136_v34 = vmul.f32 %v4835_v31, %v2001_v25  ;;  %v2359_v41 = vsel %vm245_vm0, %v2135_v29, 0.0 }
 0x226   :  { %v1658_v30 = vadd.f32 %v4027_v28, %v4828_v20  ;;  %v1649_v32 = vpop.f32.mrb[53].mxu1  ;;  %2366 = vadd.xlane.f32.xlu0 %v2365_v26  ;;  %v2368_v33 = vsel %vm245_vm0, %v2138_v27, 0.0 }
 0x227   :  { %v1650_v35 = vadd.f32 %v4828_v20, %v1649_v32  ;;  %v4028_v36 = vpop.f32.mrb[54].mxu1  ;;  %2369 = vadd.xlane.f32.xlu1 %v2368_v33  ;;  %v2362_v43 = vsel %vm245_vm0, %v2136_v34, 0.0 }
 0x228   :  { %v2006_v37 = vmax.f32 %v1658_v30, 0.0  ;;  %v1661_v38 = vadd.f32 %v4028_v36, %v4828_v20  ;;  %v1652_v39 = vpop.f32.mrb[55].mxu1 }
 0x229   :  { %v2004_v49 = vmax.f32 %v1650_v35, 0.0  ;;  %v1653_v40 = vadd.f32 %v4828_v20, %v1652_v39 }
 0x22a   :  { %v2007_v42 = vmax.f32 %v1661_v38, 0.0  ;;  %2360 = vadd.xlane.f32.xlu0 %v2359_v41  ;;  %v2141_v45 = vmul.f32 %v4835_v31, %v2006_v37 }
 0x22b   :  { %v2005_v46 = vmax.f32 %v1653_v40, 0.0  ;;  %2363 = vadd.xlane.f32.xlu1 %v2362_v43  ;;  %v2139_v51 = vmul.f32 %v4835_v31, %v2004_v49  ;;  %v2865_v43 = vlaneseq }
 0x22c   :  { %v2377_v47 = vsel %vm245_vm0, %v2141_v45, 0.0  ;;  %v2142_v48 = vmul.f32 %v4835_v31, %v2007_v42 }
 0x22d   :  { %v4031_v50 = vpop.f32.mrb[56].mxu1  ;;  %v2140_v54 = vmul.f32 %v4835_v31, %v2005_v46  ;;  %v2371_v62 = vsel %vm245_vm0, %v2139_v51, 0.0 }
 0x22e   :  { %v1674_v52 = vadd.f32 %v4031_v50, %v4828_v20  ;;  %v1665_v53 = vpop.f32.mrb[57].mxu1  ;;  %2378 = vadd.xlane.f32.xlu0 %v2377_v47  ;;  %v2380_v44 = vsel %vm245_vm0, %v2142_v48, 0.0 }
 0x22f   :  { %v1666_v55 = vadd.f32 %v4828_v20, %v1665_v53  ;;  %v4032_v56 = vpop.f32.mrb[58].mxu1  ;;  %2381 = vadd.xlane.f32.xlu1 %v2380_v44  ;;  %v2374_v0 = vsel %vm245_vm0, %v2140_v54, 0.0  ;;  %v5069_v54 = vand.u32 127, %v2865_v43 }
 0x230   :  { %v2010_v57 = vmax.f32 %v1674_v52, 0.0  ;;  %v1677_v58 = vadd.f32 %v4032_v56, %v4828_v20  ;;  %v1668_v59 = vpop.f32.mrb[59].mxu1 }
 0x231   :  { %v2008_v60 = vmax.f32 %v1666_v55, 0.0  ;;  %v1669_v61 = vadd.f32 %v4828_v20, %v1668_v59 }
 0x232   :  { %v2011_v63 = vmax.f32 %v1677_v58, 0.0  ;;  %2372 = vadd.xlane.f32.xlu0 %v2371_v62  ;;  %v2145_v1 = vmul.f32 %v4835_v31, %v2010_v57 }
 0x233   :  { %v2009_v2 = vmax.f32 %v1669_v61, 0.0  ;;  %2375 = vadd.xlane.f32.xlu1 %v2374_v0  ;;  %v2143_v6 = vmul.f32 %v4835_v31, %v2008_v60 }
 0x234   :  { %v2389_v3 = vsel %vm245_vm0, %v2145_v1, 0.0  ;;  %v2146_v4 = vmul.f32 %v4835_v31, %v2011_v63  ;;  %v5075_v63 = vshrl.u32 %v2865_v43, 7 }
 0x235   :  { %v4035_v5 = vpop.f32.mrb[60].mxu1  ;;  %v2144_v10 = vmul.f32 %v4835_v31, %v2009_v2  ;;  %v2383_v18 = vsel %vm245_vm0, %v2143_v6, 0.0  ;;  %v2871_v6 = vadd.s32 4294967288, %v5069_v54 }
 0x236   :  { %v1690_v7 = vadd.f32 %v4035_v5, %v4828_v20  ;;  %v1681_v8 = vpop.f32.mrb[61].mxu1  ;;  %2390 = vadd.xlane.f32.xlu0 %v2389_v3  ;;  %v2392_v9 = vsel %vm245_vm0, %v2146_v4, 0.0  ;;  %v2878_v3 = vadd.s32 4294967280, %v5069_v54  ;;  %v2885_v5 = vadd.s32 4294967272, %v5069_v54 }
 0x237   :  { %v1682_v11 = vadd.f32 %v4828_v20, %v1681_v8  ;;  %v4036_v12 = vpop.f32.mrb[62].mxu1  ;;  %2393 = vadd.xlane.f32.xlu1 %v2392_v9  ;;  %v2386_v21 = vsel %vm245_vm0, %v2144_v10, 0.0  ;;  %v5084_v10 = vpop.permute.xlu0 %2606 }
 0x238   :  { %v2014_v13 = vmax.f32 %v1690_v7, 0.0  ;;  %v1693_v14 = vadd.f32 %v4036_v12, %v4828_v20  ;;  %v1684_v15 = vpop.f32.mrb[63].mxu1  ;;  %v5089_v12 = vsub.s32 %v5069_v54, %v5075_v63 }
 0x239   :  { %v2012_v16 = vmax.f32 %v1682_v11, 0.0  ;;  %v1685_v17 = vadd.f32 %v4828_v20, %v1684_v15 }
 0x23a   :  { %v2015_v19 = vmax.f32 %v1693_v14, 0.0  ;;  %2384 = vadd.xlane.f32.xlu0 %v2383_v18  ;;  %v2149_v22 = vmul.f32 %v4835_v31, %v2014_v13 }
 0x23b   :  { %v2013_v23 = vmax.f32 %v1685_v17, 0.0  ;;  %2387 = vadd.xlane.f32.xlu1 %v2386_v21  ;;  %v2147_v27 = vmul.f32 %v4835_v31, %v2012_v16  ;;  %v5094_v16 = vsub.s32 %v2878_v3, %v5075_v63  ;;  %v5099_v21 = vsub.s32 %v2885_v5, %v5075_v63 }
 0x23c   :  { %v2401_v24 = vsel %vm245_vm0, %v2149_v22, 0.0  ;;  %v2150_v25 = vmul.f32 %v4835_v31, %v2015_v19  ;;  %v5102_v22 = vsub.s32 %v2871_v6, %v5075_v63 }
 0x23d   :  { %v4039_v26 = vpop.f32.mrb[64].mxu1  ;;  %v2148_v32 = vmul.f32 %v4835_v31, %v2013_v23  ;;  %v2395_v49 = vsel %vm245_vm0, %v2147_v27, 0.0  ;;  %v2906_v23 = vadd.s32 4294967248, %v5069_v54  ;;  %v2892_v27 = vadd.s32 4294967264, %v5069_v54 }
 0x23e   :  { %v1706_v28 = vadd.f32 %v4039_v26, %v4828_v20  ;;  %v1697_v29 = vpop.f32.mrb[65].mxu1  ;;  %2402 = vadd.xlane.f32.xlu0 %v2401_v24  ;;  %v2404_v30 = vsel %vm245_vm0, %v2150_v25, 0.0  ;;  %v5108_v25 = vld [vmem:[%s5793_s4] ss:$0 sm:$0xff] }
 0x23f   :  { %v1698_v33 = vadd.f32 %v4828_v20, %v1697_v29  ;;  %v4040_v34 = vpop.f32.mrb[66].mxu1  ;;  %2405 = vadd.xlane.f32.xlu1 %v2404_v30  ;;  %v2398_v41 = vsel %vm245_vm0, %v2148_v32, 0.0  ;;  %v2899_v32 = vadd.s32 4294967256, %v5069_v54  ;;  %v5132_v43 = vsub.s32 %v2892_v27, %v5075_v63 }
 0x240   :  { %v2018_v35 = vmax.f32 %v1706_v28, 0.0  ;;  %v1709_v36 = vadd.f32 %v4040_v34, %v4828_v20  ;;  %v1700_v37 = vpop.f32.mrb[67].mxu1 }
 0x241   :  { %v2016_v38 = vmax.f32 %v1698_v33, 0.0  ;;  %v1701_v39 = vadd.f32 %v4828_v20, %v1700_v37 }
 0x242   :  { %v2019_v40 = vmax.f32 %v1709_v36, 0.0  ;;  %2396 = vadd.xlane.f32.xlu0 %v2395_v49  ;;  %v2153_v42 = vmul.f32 %v4835_v31, %v2018_v35  ;;  %v5120_v36 = vld [vmem:[%s5794_s5] ss:$0 sm:$0xff]  ;;  %v5124_v49 = vsub.s32 %v2906_v23, %v5075_v63 }
 0x243   :  { %v2017_v45 = vmax.f32 %v1701_v39, 0.0  ;;  %2399 = vadd.xlane.f32.xlu1 %v2398_v41  ;;  %v2151_v50 = vmul.f32 %v4835_v31, %v2016_v38 }
 0x244   :  { %v2413_v46 = vsel %vm245_vm0, %v2153_v42, 0.0  ;;  %v2154_v47 = vmul.f32 %v4835_v31, %v2019_v40 }
 0x245   :  { %v4043_v48 = vpop.f32.mrb[68].mxu1  ;;  %v2152_v44 = vmul.f32 %v4835_v31, %v2017_v45  ;;  %v2407_v62 = vsel %vm245_vm0, %v2151_v50, 0.0  ;;  %v2934_v50 = vadd.s32 4294967216, %v5069_v54 }
 0x246   :  { %v1722_v51 = vadd.f32 %v4043_v48, %v4828_v20  ;;  %v1713_v52 = vpop.f32.mrb[69].mxu1  ;;  %2414 = vadd.xlane.f32.xlu0 %v2413_v46  ;;  %v2416_v53 = vsel %vm245_vm0, %v2154_v47, 0.0  ;;  %v5137_v48 = vsub.s32 %v2899_v32, %v5075_v63 }
 0x247   :  { %v1714_v55 = vadd.f32 %v4828_v20, %v1713_v52  ;;  %v4044_v56 = vpop.f32.mrb[70].mxu1  ;;  %2417 = vadd.xlane.f32.xlu1 %v2416_v53  ;;  %v2410_v1 = vsel %vm245_vm0, %v2152_v44, 0.0 }
 0x248   :  { %v2022_v57 = vmax.f32 %v1722_v51, 0.0  ;;  %v1725_v58 = vadd.f32 %v4044_v56, %v4828_v20  ;;  %v1716_v59 = vpop.f32.mrb[71].mxu1  ;;  %v2941_v56 = vadd.s32 4294967208, %v5069_v54 }
 0x249   :  { %v2020_v60 = vmax.f32 %v1714_v55, 0.0  ;;  %v1717_v61 = vadd.f32 %v4828_v20, %v1716_v59 }
 0x24a   :  { %v2023_v0 = vmax.f32 %v1725_v58, 0.0  ;;  %2408 = vadd.xlane.f32.xlu0 %v2407_v62  ;;  %v2157_v2 = vmul.f32 %v4835_v31, %v2022_v57  ;;  %v2927_v62 = vadd.s32 4294967224, %v5069_v54  ;;  %v5162_v23 = vsub.s32 %v2941_v56, %v5075_v63 }
 0x24b   :  { %v2021_v4 = vmax.f32 %v1717_v61, 0.0  ;;  %2411 = vadd.xlane.f32.xlu1 %v2410_v1  ;;  %v2155_v11 = vmul.f32 %v4835_v31, %v2020_v60  ;;  %v2920_v61 = vadd.s32 4294967232, %v5069_v54 }
 0x24c   :  { %v2425_v7 = vsel %vm245_vm0, %v2157_v2, 0.0  ;;  %v2158_v8 = vmul.f32 %v4835_v31, %v2023_v0 }
 0x24d   :  { %v4047_v9 = vpop.f32.mrb[72].mxu1  ;;  %v2156_v17 = vmul.f32 %v4835_v31, %v2021_v4  ;;  %v2419_v30 = vsel %vm245_vm0, %v2155_v11, 0.0  ;;  %v5171_v32 = vsub.s32 %v2920_v61, %v5075_v63 }
 0x24e   :  { %v1738_v13 = vadd.f32 %v4047_v9, %v4828_v20  ;;  %v1729_v14 = vpop.f32.mrb[73].mxu1  ;;  %2426 = vadd.xlane.f32.xlu0 %v2425_v7  ;;  %v2428_v15 = vsel %vm245_vm0, %v2158_v8, 0.0 }
 0x24f   :  { %v1730_v18 = vadd.f32 %v4828_v20, %v1729_v14  ;;  %v4048_v19 = vpop.f32.mrb[74].mxu1  ;;  %2429 = vadd.xlane.f32.xlu1 %v2428_v15  ;;  %v2913_v20 = vadd.s32 4294967240, %v5069_v54  ;;  %v2422_v35 = vsel %vm245_vm0, %v2156_v17, 0.0 }
 0x250   :  { %v2026_v24 = vmax.f32 %v1738_v13, 0.0  ;;  %v1741_v31 = vadd.f32 %v5108_v25, %v4048_v19  ;;  %v1732_v26 = vpop.f32.mrb[75].mxu1  ;;  %v5159_v19 = vsub.s32 %v2934_v50, %v5075_v63  ;;  %v2969_v50 = vadd.s32 4294967176, %v5069_v54 }
 0x251   :  { %v2024_v28 = vmax.f32 %v1730_v18, 0.0  ;;  %v1733_v29 = vadd.f32 %v5108_v25, %v1732_v26  ;;  %v5129_v42 = vsub.s32 %v2913_v20, %v5075_v63 }
 0x252   :  { %v2027_v33 = vmax.f32 %v1741_v31, 0.0  ;;  %v2223_v34 = vpop.xlane.xlu1 %2222  ;;  %2420 = vadd.xlane.f32.xlu0 %v2419_v30  ;;  %v2161_v37 = vmul.f32 %v5120_v36, %v2026_v24 }
 0x253   :  { %v2025_v38 = vmax.f32 %v1733_v29, 0.0  ;;  %2423 = vadd.xlane.f32.xlu1 %v2422_v35  ;;  %v2217_v39 = vpop.xlane.xlu0 %2216  ;;  %v2159_v47 = vmul.f32 %v5120_v36, %v2024_v28  ;;  %v2611_v57 = vadd.f32 %v5084_v10, %v2223_v34 }
 0x254   :  { %v2437_v40 = vsel %vm245_vm0, %v2161_v37, 0.0  ;;  %v2162_v41 = vmul.f32 %v5120_v36, %v2027_v33  ;;  %v2609_v45 = vadd.f32 %v5084_v10, %v2217_v39  ;;  %v5174_v33 = vsub.s32 %v2927_v62, %v5075_v63 }
 0x255   :  { %v4051_v46 = vpop.f32.mrb[76].mxu1  ;;  %v2160_v55 = vmul.f32 %v5120_v36, %v2025_v38  ;;  %v2431_v8 = vsel %vm245_vm0, %v2159_v47, 0.0  ;;  %v2882_v15 = vrot.slane %v2611_v57, %v5094_v16  ;;  %v2962_v47 = vadd.s32 4294967184, %v5069_v54 }
 0x256   :  { %v1754_v51 = vadd.f32 %v5108_v25, %v4051_v46  ;;  %v2226_v52 = vpop.xlane.xlu1 %2225  ;;  %v1745_v53 = vpop.f32.mrb[77].mxu1  ;;  %2438 = vadd.xlane.f32.xlu0 %v2437_v40  ;;  %v2440_v44 = vsel %vm245_vm0, %v2162_v41, 0.0  ;;  %v2870_v5 = vrot.slane %v2609_v45, %v5089_v12 }
 0x257   :  { %v1746_v58 = vadd.f32 %v5108_v25, %v1745_v53  ;;  %v4052_v59 = vpop.f32.mrb[78].mxu1  ;;  %2441 = vadd.xlane.f32.xlu1 %v2440_v44  ;;  %v2220_v60 = vpop.xlane.xlu0 %2219  ;;  %v2612_v1 = vadd.f32 %v5084_v10, %v2226_v52  ;;  %v2434_v13 = vsel %vm245_vm0, %v2160_v55, 0.0 }
 0x258   :  { %v2030_v0 = vmax.f32 %v1754_v51, 0.0  ;;  %v1757_v2 = vadd.f32 %v5108_v25, %v4052_v59  ;;  %v2610_v3 = vadd.f32 %v5084_v10, %v2220_v60  ;;  %v1748_v4 = vpop.f32.mrb[79].mxu1 }
 0x259   :  { %v2028_v6 = vmax.f32 %v1746_v58, 0.0  ;;  %v1749_v7 = vadd.f32 %v5108_v25, %v1748_v4  ;;  %v2889_v24 = vrot.slane %v2612_v1, %v5099_v21 }
 0x25a   :  { %v2031_v9 = vmax.f32 %v1757_v2, 0.0  ;;  %v2875_v11 = vrot.slane %v2610_v3, %v5102_v22  ;;  %2432 = vadd.xlane.f32.xlu0 %v2431_v8  ;;  %v2165_v14 = vmul.f32 %v5120_v36, %v2030_v0 }
 0x25b   :  { %v2029_v17 = vmax.f32 %v1749_v7, 0.0  ;;  %2435 = vadd.xlane.f32.xlu1 %v2434_v13  ;;  %v2235_v18 = vpop.xlane.xlu0 %2234  ;;  %v2163_v30 = vmul.f32 %v5120_v36, %v2028_v6  ;;  %v5198_v6 = vsub.s32 %v2969_v50, %v5075_v63 }
 0x25c   :  { %v2877_v31 = vsel %vm2876_vm2, %v2875_v11, %v2870_v5  ;;  %v2238_v26 = vpop.xlane.xlu1 %2237  ;;  %v2449_v20 = vsel %vm245_vm0, %v2165_v14, 0.0  ;;  %v2166_v27 = vmul.f32 %v5120_v36, %v2031_v9  ;;  %v2615_v40 = vadd.f32 %v5084_v10, %v2235_v18 }
 0x25d   :  { %v2884_v28 = vsel %vm2883_vm3, %v2882_v15, %v2877_v31  ;;  %v4055_v29 = vpop.f32.mrb[80].mxu1  ;;  %v2164_v39 = vmul.f32 %v5120_v36, %v2029_v17  ;;  %v2616_v51 = vadd.f32 %v5084_v10, %v2238_v26  ;;  %v2443_v60 = vsel %vm245_vm0, %v2163_v30, 0.0 }
 0x25e   :  { %v1770_v34 = vadd.f32 %v5108_v25, %v4055_v29  ;;  %v1761_v35 = vpop.f32.mrb[81].mxu1  ;;  %2450 = vadd.xlane.f32.xlu0 %v2449_v20  ;;  %v2452_v37 = vsel %vm245_vm0, %v2166_v27, 0.0  ;;  %v2891_v38 = vsel %vm2890_vm4, %v2889_v24, %v2884_v28  ;;  %v5195_v5 = vsub.s32 %v2962_v47, %v5075_v63 }
 0x25f   :  { %v1762_v41 = vadd.f32 %v5108_v25, %v1761_v35  ;;  %v4056_v45 = vpop.f32.mrb[82].mxu1  ;;  %2453 = vadd.xlane.f32.xlu1 %v2452_v37  ;;  %v2229_v46 = vpop.xlane.xlu0 %2228  ;;  %v2446_v0 = vsel %vm245_vm0, %v2164_v39, 0.0  ;;  %v2910_v7 = vrot.slane %v2615_v40, %v5124_v49  ;;  %v2917_v14 = vrot.slane %v2616_v51, %v5129_v42 }
 0x260   :  { %v2034_v52 = vmax.f32 %v1770_v34, 0.0  ;;  %v1773_v53 = vadd.f32 %v5108_v25, %v4056_v45  ;;  %v2613_v44 = vadd.f32 %v5084_v10, %v2229_v46  ;;  %v1764_v55 = vpop.f32.mrb[83].mxu1  ;;  %v2232_v56 = vpop.xlane.xlu1 %2231  ;;  %v2948_v24 = vadd.s32 4294967200, %v5069_v54 }
 0x261   :  { %v2032_v57 = vmax.f32 %v1762_v41, 0.0  ;;  %v1765_v58 = vadd.f32 %v5108_v25, %v1764_v55  ;;  %v2614_v59 = vadd.f32 %v5084_v10, %v2232_v56 }
 0x262   :  { %v2035_v61 = vmax.f32 %v1773_v53, 0.0  ;;  %v2896_v62 = vrot.slane %v2613_v44, %v5132_v43  ;;  %2444 = vadd.xlane.f32.xlu0 %v2443_v60  ;;  %v2169_v1 = vmul.f32 %v5120_v36, %v2034_v52  ;;  %v5227_v60 = vsub.s32 %v2948_v24, %v5075_v63 }
 0x263   :  { %v2033_v2 = vmax.f32 %v1765_v58, 0.0  ;;  %v2903_v3 = vrot.slane %v2614_v59, %v5137_v48  ;;  %2447 = vadd.xlane.f32.xlu1 %v2446_v0  ;;  %v2247_v4 = vpop.xlane.xlu0 %2246  ;;  %v2167_v18 = vmul.f32 %v5120_v36, %v2032_v57 }
 0x264   :  { %v2898_v8 = vsel %vm2897_vm5, %v2896_v62, %v2891_v38  ;;  %v2250_v9 = vpop.xlane.xlu1 %2249  ;;  %v2461_v11 = vsel %vm245_vm0, %v2169_v1, 0.0  ;;  %v2170_v13 = vmul.f32 %v5120_v36, %v2035_v61  ;;  %v2619_v29 = vadd.f32 %v5084_v10, %v2247_v4 }
 0x265   :  { %v2905_v15 = vsel %vm2904_vm6, %v2903_v3, %v2898_v8  ;;  %v4059_v17 = vpop.f32.mrb[84].mxu1  ;;  %v2168_v28 = vmul.f32 %v5120_v36, %v2033_v2  ;;  %v2955_v38 = vadd.s32 4294967192, %v5069_v54  ;;  %v2620_v39 = vadd.f32 %v5084_v10, %v2250_v9 }
 0x266   :  { %v2912_v31 = vsel %vm2911_vm7, %v2910_v7, %v2905_v15  ;;  %v1786_v26 = vadd.f32 %v5108_v25, %v4059_v17  ;;  %v1777_v20 = vpop.f32.mrb[85].mxu1  ;;  %2462 = vadd.xlane.f32.xlu0 %v2461_v11  ;;  %v2464_v27 = vsel %vm245_vm0, %v2170_v13, 0.0  ;;  %v2455_v53 = vsel %vm245_vm0, %v2167_v18, 0.0 }
 0x267   :  { %v1778_v30 = vadd.f32 %v5108_v25, %v1777_v20  ;;  %v4060_v34 = vpop.f32.mrb[86].mxu1  ;;  %2465 = vadd.xlane.f32.xlu1 %v2464_v27  ;;  %v2919_v35 = vsel %vm2918_vm8, %v2917_v14, %v2912_v31  ;;  %v2241_v37 = vpop.xlane.xlu0 %2240  ;;  %v2458_v54 = vsel %vm245_vm0, %v2168_v28, 0.0  ;;  %v5230_v61 = vsub.s32 %v2955_v38, %v5075_v63 }
 0x268   :  { %v2038_v40 = vmax.f32 %v1786_v26, 0.0  ;;  %v1789_v41 = vadd.f32 %v5108_v25, %v4060_v34  ;;  %v2617_v45 = vadd.f32 %v5084_v10, %v2241_v37  ;;  %v1780_v46 = vpop.f32.mrb[87].mxu1  ;;  %v2244_v47 = vpop.xlane.xlu1 %2243  ;;  %v2938_v62 = vrot.slane %v2619_v29, %v5159_v19 }
 0x269   :  { %v2036_v50 = vmax.f32 %v1778_v30, 0.0  ;;  %v1781_v51 = vadd.f32 %v5108_v25, %v1780_v46  ;;  %v2618_v52 = vadd.f32 %v5084_v10, %v2244_v47  ;;  %v2945_v4 = vrot.slane %v2620_v39, %v5162_v23 }
 0x26a   :  { %v2039_v44 = vmax.f32 %v1789_v41, 0.0  ;;  %v2924_v55 = vrot.slane %v2617_v45, %v5171_v32  ;;  %2456 = vadd.xlane.f32.xlu0 %v2455_v53  ;;  %v2173_v56 = vmul.f32 %v5120_v36, %v2038_v40 }
 0x26b   :  { %v2037_v57 = vmax.f32 %v1781_v51, 0.0  ;;  %v2931_v58 = vrot.slane %v2618_v52, %v5174_v33  ;;  %2459 = vadd.xlane.f32.xlu1 %v2458_v54  ;;  %v2259_v59 = vpop.xlane.xlu0 %2258  ;;  %v2171_v9 = vmul.f32 %v5120_v36, %v2036_v50 }
 0x26c   :  { %v2926_v0 = vsel %vm2925_vm9, %v2924_v55, %v2919_v35  ;;  %v2262_v1 = vpop.xlane.xlu1 %2261  ;;  %v2473_v2 = vsel %vm245_vm0, %v2173_v56, 0.0  ;;  %v2174_v3 = vmul.f32 %v5120_v36, %v2039_v44  ;;  %v2623_v17 = vadd.f32 %v5084_v10, %v2259_v59 }
 0x26d   :  { %v2933_v7 = vsel %vm2932_vm10, %v2931_v58, %v2926_v0  ;;  %v4063_v8 = vpop.f32.mrb[88].mxu1  ;;  %v2172_v15 = vmul.f32 %v5120_v36, %v2037_v57  ;;  %v2624_v20 = vadd.f32 %v5084_v10, %v2262_v1  ;;  %v2467_v39 = vsel %vm245_vm0, %v2171_v9, 0.0 }
 0x26e   :  { %v2940_v63 = vsel %vm2939_vm11, %v2938_v62, %v2933_v7  ;;  %v1802_v11 = vadd.f32 %v5108_v25, %v4063_v8  ;;  %v1793_v13 = vpop.f32.mrb[89].mxu1  ;;  %2474 = vadd.xlane.f32.xlu0 %v2473_v2  ;;  %v2476_v14 = vsel %vm245_vm0, %v2174_v3, 0.0  ;;  %v2966_v52 = vrot.slane %v2623_v17, %v5195_v5 }
 0x26f   :  { %v1794_v18 = vadd.f32 %v5108_v25, %v1793_v13  ;;  %v4064_v24 = vpop.f32.mrb[90].mxu1  ;;  %2477 = vadd.xlane.f32.xlu1 %v2476_v14  ;;  %v2947_v31 = vsel %vm5797_vm12, %v2945_v4, %v2940_v63  ;;  %v2253_v26 = vpop.xlane.xlu0 %2252  ;;  %v2470_v45 = vsel %vm245_vm0, %v2172_v15, 0.0  ;;  %v2973_v56 = vrot.slane %v2624_v20, %v5198_v6 }
 0x270   :  { %v2042_v27 = vmax.f32 %v1802_v11, 0.0  ;;  %v1805_v28 = vadd.f32 %v5108_v25, %v4064_v24  ;;  %v2621_v29 = vadd.f32 %v5084_v10, %v2253_v26  ;;  %v1796_v30 = vpop.f32.mrb[91].mxu1  ;;  %v2256_v34 = vpop.xlane.xlu1 %2255 }
 0x271   :  { %v2040_v35 = vmax.f32 %v1794_v18, 0.0  ;;  %v1797_v37 = vadd.f32 %v5108_v25, %v1796_v30  ;;  %v2622_v38 = vadd.f32 %v5084_v10, %v2256_v34 }
 0x272   :  { %v2043_v40 = vmax.f32 %v1805_v28, 0.0  ;;  %v2952_v41 = vrot.slane %v2621_v29, %v5227_v60  ;;  %2468 = vadd.xlane.f32.xlu0 %v2467_v39  ;;  %v2177_v46 = vmul.f32 %v5120_v36, %v2042_v27 }
 0x273   :  { %v2041_v47 = vmax.f32 %v1797_v37, 0.0  ;;  %v2959_v50 = vrot.slane %v2622_v38, %v5230_v61  ;;  %2471 = vadd.xlane.f32.xlu1 %v2470_v45  ;;  %v2271_v51 = vpop.xlane.xlu0 %2270  ;;  %v2175_v59 = vmul.f32 %v5120_v36, %v2040_v35 }
 0x274   :  { %v2954_v53 = vsel %vm2953_vm13, %v2952_v41, %v2947_v31  ;;  %v2274_v44 = vpop.xlane.xlu1 %2273  ;;  %v2485_v55 = vsel %vm245_vm0, %v2177_v46, 0.0  ;;  %v2178_v54 = vmul.f32 %v5120_v36, %v2043_v40  ;;  %v2627_v63 = vadd.f32 %v5084_v10, %v2271_v51 }
 0x275   :  { %v2961_v57 = vsel %vm2960_vm14, %v2959_v50, %v2954_v53  ;;  %v4067_v58 = vpop.f32.mrb[92].mxu1  ;;  %v2176_v3 = vmul.f32 %v5120_v36, %v2041_v47  ;;  %v2628_v11 = vadd.f32 %v5084_v10, %v2274_v44  ;;  %v2479_v26 = vsel %vm245_vm0, %v2175_v59, 0.0 }
 0x276   :  { %v2968_v62 = vsel %vm2967_vm15, %v2966_v52, %v2961_v57  ;;  %v1818_v0 = vadd.f32 %v5108_v25, %v4067_v58  ;;  %v1809_v1 = vpop.f32.mrb[93].mxu1  ;;  %2486 = vadd.xlane.f32.xlu0 %v2485_v55  ;;  %v2488_v2 = vsel %vm245_vm0, %v2178_v54, 0.0  ;;  %v2988_v37 = vrot.slane %v2627_v63, %v5094_v16 }
 0x277   :  { %v5268_v4 = vsel %vm2974_vm1, %v2973_v56, %v2968_v62  ;;  %v1810_v7 = vadd.f32 %v5108_v25, %v1809_v1  ;;  %v5271_v8 = vpop.f32.mrb[94].mxu1  ;;  %2489 = vadd.xlane.f32.xlu1 %v2488_v2  ;;  %v2265_v9 = vpop.xlane.xlu0 %2264  ;;  %v2482_v27 = vsel %vm245_vm0, %v2176_v3, 0.0  ;;  %v2993_v39 = vrot.slane %v2628_v11, %v5099_v21 }
 0x278   :  { %v2046_v13 = vmax.f32 %v1818_v0, 0.0  ;;  %v2625_v14 = vadd.f32 %v5084_v10, %v2265_v9  ;;  %v1812_v15 = vpop.f32.mrb[95].mxu1  ;;  %v2268_v17 = vpop.xlane.xlu1 %2267 }
 0x279   :  { %v2044_v18 = vmax.f32 %v1810_v7, 0.0  ;;  %v1813_v24 = vadd.f32 %v5108_v25, %v1812_v15  ;;  %v2626_v31 = vadd.f32 %v5084_v10, %v2268_v17 }
 0x27a   :  { %v2979_v20 = vrot.slane %v2625_v14, %v5089_v12  ;;  %2480 = vadd.xlane.f32.xlu0 %v2479_v26  ;;  %v2181_v28 = vmul.f32 %v5120_v36, %v2046_v13 }
 0x27b   :  { %v2045_v29 = vmax.f32 %v1813_v24, 0.0  ;;  %v2983_v30 = vrot.slane %v2626_v31, %v5102_v22  ;;  %2483 = vadd.xlane.f32.xlu1 %v2482_v27  ;;  %v2283_v34 = vpop.xlane.xlu0 %2282  ;;  %v2179_v35 = vmul.f32 %v5120_v36, %v2044_v18 }
 0x27c   :  { %v2286_v38 = vpop.xlane.xlu1 %2285  ;;  %v2497_v51 = vsel %vm245_vm0, %v2181_v28, 0.0  ;;  %v2631_v56 = vadd.f32 %v5084_v10, %v2283_v34 }
 0x27d   :  { %v2984_v40 = vsel %vm2876_vm2, %v2983_v30, %v2979_v20  ;;  %v4071_v41 = vpop.f32.mrb[96].mxu1  ;;  %v2491_v45 = vsel %vm245_vm0, %v2179_v35, 0.0  ;;  %v2180_v52 = vmul.f32 %v5120_v36, %v2045_v29  ;;  %v2632_v1 = vadd.f32 %v5084_v10, %v2286_v38 }
 0x27e   :  { %v2989_v46 = vsel %vm2883_vm3, %v2988_v37, %v2984_v40  ;;  %v1834_v47 = vadd.f32 %v5108_v25, %v4071_v41  ;;  %v1825_v50 = vpop.f32.mrb[97].mxu1  ;;  %2492 = vadd.xlane.f32.xlu0 %v2491_v45  ;;  %v3008_v18 = vrot.slane %v2631_v56, %v5124_v49 }
 0x27f   :  { %v1826_v53 = vadd.f32 %v5108_v25, %v1825_v50  ;;  %v4072_v44 = vpop.f32.mrb[98].mxu1  ;;  %2498 = vadd.xlane.f32.xlu1 %v2497_v51  ;;  %v2994_v55 = vsel %vm2890_vm4, %v2993_v39, %v2989_v46  ;;  %v2277_v54 = vpop.xlane.xlu0 %2276  ;;  %v2494_v11 = vsel %vm245_vm0, %v2180_v52, 0.0  ;;  %v3013_v20 = vrot.slane %v2632_v1, %v5129_v42 }
 0x280   :  { %v2050_v57 = vmax.f32 %v1834_v47, 0.0  ;;  %v1837_v58 = vadd.f32 %v5108_v25, %v4072_v44  ;;  %v2629_v59 = vadd.f32 %v5084_v10, %v2277_v54  ;;  %v1828_v62 = vpop.f32.mrb[99].mxu1  ;;  %v2280_v0 = vpop.xlane.xlu1 %2279 }
 0x281   :  { %v2048_v2 = vmax.f32 %v1826_v53, 0.0  ;;  %v1829_v3 = vadd.f32 %v5108_v25, %v1828_v62  ;;  %v2630_v7 = vadd.f32 %v5084_v10, %v2280_v0 }
 0x282   :  { %v2051_v9 = vmax.f32 %v1837_v58, 0.0  ;;  %v2998_v63 = vrot.slane %v2629_v59, %v5132_v43  ;;  %v2185_v13 = vmul.f32 %v5120_v36, %v2050_v57 }
 0x283   :  { %v2049_v14 = vmax.f32 %v1829_v3, 0.0  ;;  %v3003_v15 = vrot.slane %v2630_v7, %v5137_v48  ;;  %2495 = vadd.xlane.f32.xlu1 %v2494_v11  ;;  %v2295_v17 = vpop.xlane.xlu0 %2294  ;;  %v2183_v27 = vmul.f32 %v5120_v36, %v2048_v2 }
 0x284   :  { %v2999_v24 = vsel %vm2897_vm5, %v2998_v63, %v2994_v55  ;;  %v2298_v31 = vpop.xlane.xlu1 %2297  ;;  %v2186_v26 = vmul.f32 %v5120_v36, %v2051_v9  ;;  %v2509_v38 = vsel %vm245_vm0, %v2185_v13, 0.0  ;;  %v2635_v47 = vadd.f32 %v5084_v10, %v2295_v17 }
 0x285   :  { %v2184_v28 = vmul.f32 %v5120_v36, %v2049_v14  ;;  %v3004_v29 = vsel %vm2904_vm6, %v3003_v15, %v2999_v24  ;;  %v4075_v30 = vpop.f32.mrb[100].mxu1  ;;  %v2636_v44 = vadd.f32 %v5084_v10, %v2298_v31  ;;  %v2503_v54 = vsel %vm245_vm0, %v2183_v27, 0.0 }
 0x286   :  { %v3009_v34 = vsel %vm2911_vm7, %v3008_v18, %v3004_v29  ;;  %v1850_v35 = vadd.f32 %v5108_v25, %v4075_v30  ;;  %v1841_v37 = vpop.f32.mrb[101].mxu1  ;;  %v2512_v39 = vsel %vm245_vm0, %v2186_v26, 0.0  ;;  %v3028_v2 = vrot.slane %v2635_v47, %v5159_v19 }
 0x287   :  { %v1842_v40 = vadd.f32 %v5108_v25, %v1841_v37  ;;  %v4076_v41 = vpop.f32.mrb[102].mxu1  ;;  %2510 = vadd.xlane.f32.xlu1 %v2509_v38  ;;  %2513 = vadd.xlane.f32.xlu0 %v2512_v39  ;;  %v3014_v45 = vsel %vm2918_vm8, %v3013_v20, %v3009_v34  ;;  %v2289_v46 = vpop.xlane.xlu0 %2288  ;;  %v2506_v56 = vsel %vm245_vm0, %v2184_v28, 0.0  ;;  %v3033_v9 = vrot.slane %v2636_v44, %v5162_v23 }
 0x288   :  { %v2054_v50 = vmax.f32 %v1850_v35, 0.0  ;;  %v2633_v51 = vadd.f32 %v5084_v10, %v2289_v46  ;;  %v1844_v52 = vpop.f32.mrb[103].mxu1  ;;  %v2292_v53 = vpop.xlane.xlu1 %2291  ;;  %v1853_v59 = vadd.f32 %v5108_v25, %v4076_v41 }
 0x289   :  { %v2634_v55 = vadd.f32 %v5084_v10, %v2292_v53  ;;  %v2052_v58 = vmax.f32 %v1842_v40, 0.0  ;;  %v1845_v63 = vadd.f32 %v5108_v25, %v1844_v52 }
 0x28a   :  { %v2189_v57 = vmul.f32 %v5120_v36, %v2054_v50  ;;  %v3018_v62 = vrot.slane %v2633_v51, %v5171_v32  ;;  %v2055_v15 = vmax.f32 %v1853_v59, 0.0 }
 0x28b   :  { %v3023_v0 = vrot.slane %v2634_v55, %v5174_v33  ;;  %2504 = vadd.xlane.f32.xlu1 %v2503_v54  ;;  %2507 = vadd.xlane.f32.xlu0 %v2506_v56  ;;  %v2307_v1 = vpop.xlane.xlu0 %2306  ;;  %v2187_v14 = vmul.f32 %v5120_v36, %v2052_v58  ;;  %v2053_v34 = vmax.f32 %v1845_v63, 0.0 }
 0x28c   :  { %v3019_v3 = vsel %vm2925_vm9, %v3018_v62, %v3014_v45  ;;  %v2310_v7 = vpop.xlane.xlu1 %2309  ;;  %v2521_v18 = vsel %vm245_vm0, %v2189_v57, 0.0  ;;  %v2639_v27 = vadd.f32 %v5084_v10, %v2307_v1  ;;  %v2190_v38 = vmul.f32 %v5120_v36, %v2055_v15 }
 0x28d   :  { %v3024_v11 = vsel %vm2932_vm10, %v3023_v0, %v3019_v3  ;;  %v4079_v13 = vpop.f32.mrb[104].mxu1  ;;  %v2640_v35 = vadd.f32 %v5084_v10, %v2310_v7  ;;  %v2515_v41 = vsel %vm245_vm0, %v2187_v14, 0.0  ;;  %v2188_v52 = vmul.f32 %v5120_v36, %v2053_v34 }
 0x28e   :  { %v3029_v17 = vsel %vm2939_vm11, %v3028_v2, %v3024_v11  ;;  %v1857_v24 = vpop.f32.mrb[105].mxu1  ;;  %v1866_v40 = vadd.f32 %v5108_v25, %v4079_v13  ;;  %v3048_v47 = vrot.slane %v2639_v27, %v5195_v5  ;;  %v2524_v59 = vsel %vm245_vm0, %v2190_v38, 0.0 }
 0x28f   :  { %2522 = vadd.xlane.f32.xlu1 %v2521_v18  ;;  %v3034_v31 = vsel %vm5797_vm12, %v3033_v9, %v3029_v17  ;;  %v2301_v26 = vpop.xlane.xlu0 %2300  ;;  %v4080_v20 = vpop.f32.mrb[106].mxu1  ;;  %v3053_v53 = vrot.slane %v2640_v35, %v5198_v6  ;;  %vm3529_vm12 = vcmask 1041409   ;;  %v1858_v57 = vadd.f32 %v5108_v25, %v1857_v24 }
 0x290   :  { %v2637_v28 = vadd.f32 %v5084_v10, %v2301_v26  ;;  %v2304_v29 = vpop.xlane.xlu1 %2303  ;;  %v1860_v30 = vpop.f32.mrb[107].mxu1  ;;  %v2058_v54 = vmax.f32 %v1866_v40, 0.0  ;;  %v2518_v15 = vsel %vm245_vm0, %v2188_v52, 0.0 }
 0x291   :  { %v2638_v37 = vadd.f32 %v5084_v10, %v2304_v29  ;;  %v2056_v18 = vmax.f32 %v1858_v57, 0.0  ;;  %v1861_v35 = vadd.f32 %v5108_v25, %v1860_v30 }
 0x292   :  { %v3038_v39 = vrot.slane %v2637_v28, %v5227_v60  ;;  %v2193_v17 = vmul.f32 %v5120_v36, %v2058_v54  ;;  %v1821_v28 = vadd.f32 %v5108_v25, %v5271_v8 }
 0x293   :  { %v3043_v45 = vrot.slane %v2638_v37, %v5230_v61  ;;  %2516 = vadd.xlane.f32.xlu1 %v2515_v41  ;;  %v2319_v46 = vpop.xlane.xlu0 %2318  ;;  %v2191_v40 = vmul.f32 %v5120_v36, %v2056_v18 }
 0x294   :  { %v3039_v50 = vsel %vm2953_vm13, %v3038_v39, %v3034_v31  ;;  %v2322_v51 = vpop.xlane.xlu1 %2321  ;;  %v2643_v3 = vadd.f32 %v5084_v10, %v2319_v46  ;;  %v2533_v8 = vsel %vm245_vm0, %v2193_v17, 0.0 }
 0x295   :  { %v3044_v44 = vsel %vm2960_vm14, %v3043_v45, %v3039_v50  ;;  %v5350_v55 = vpop.f32.mrb[108].mxu1  ;;  %v2644_v11 = vadd.f32 %v5084_v10, %v2322_v51 }
 0x296   :  { %v3049_v56 = vsel %vm2967_vm15, %v3048_v47, %v3044_v44  ;;  %v1873_v58 = vpop.f32.mrb[109].mxu1  ;;  %v3067_v29 = vrot.slane %v2643_v3, %v5094_v16 }
 0x297   :  { %v3054_v62 = vsel %vm2974_vm1, %v3053_v53, %v3049_v56  ;;  %v5356_v0 = vpop.f32.mrb[110].mxu1  ;;  %2525 = vadd.xlane.f32.xlu1 %v2524_v59  ;;  %v2313_v1 = vpop.xlane.xlu0 %2312  ;;  %v3072_v37 = vrot.slane %v2644_v11, %v5099_v21  ;;  %v2047_v53 = vmax.f32 %v1821_v28, 0.0  ;;  %v2057_v59 = vmax.f32 %v1861_v35, 0.0 }
 0x298   :  { %v5359_v2 = vsel %vm3529_vm12, %v3054_v62, %v5268_v4  ;;  %v2641_v7 = vadd.f32 %v5084_v10, %v2313_v1  ;;  %v1876_v9 = vpop.f32.mrb[111].mxu1  ;;  %v2316_v63 = vpop.xlane.xlu1 %2315  ;;  %v1869_v4 = vadd.f32 %v5108_v25, %v4080_v20  ;;  %v2527_v11 = vsel %vm245_vm0, %v2191_v40, 0.0 }
 0x299   :  { %v1877_v13 = vadd.f32 %v5108_v25, %v1876_v9  ;;  %v2642_v14 = vadd.f32 %v5084_v10, %v2316_v63  ;;  %v1874_v9 = vadd.f32 %v5108_v25, %v1873_v58  ;;  %v2182_v17 = vmul.f32 %v5120_v36, %v2047_v53 }
 0x29a   :  { %v3058_v24 = vrot.slane %v2641_v7, %v5089_v12  ;;  %v2059_v41 = vmax.f32 %v1869_v4, 0.0  ;;  %vm5798_vm12 = vcmask 786112  }
 0x29b   :  { %v2061_v31 = vmax.f32 %v1877_v13, 0.0  ;;  %v3062_v26 = vrot.slane %v2642_v14, %v5102_v22  ;;  %2519 = vadd.xlane.f32.xlu1 %v2518_v15  ;;  %v2331_v27 = vpop.xlane.xlu0 %2330 }
 0x29c   :  { %v2334_v34 = vpop.xlane.xlu1 %2333  ;;  %v2647_v44 = vadd.f32 %v5084_v10, %v2331_v27  ;;  %v2194_v7 = vmul.f32 %v5120_v36, %v2059_v41 }
 0x29d   :  { %v2196_v38 = vmul.f32 %v5120_v36, %v2061_v31  ;;  %v3063_v20 = vsel %vm2876_vm2, %v3062_v26, %v3058_v24  ;;  %v4087_v39 = vpop.f32.mrb[112].mxu1  ;;  %v2648_v62 = vadd.f32 %v5084_v10, %v2334_v34  ;;  %v2192_v31 = vmul.f32 %v5120_v36, %v2057_v59 }
 0x29e   :  { %v3068_v45 = vsel %vm2883_vm3, %v3067_v29, %v3063_v20  ;;  %v1889_v46 = vpop.f32.mrb[113].mxu1  ;;  %v3087_v18 = vrot.slane %v2647_v44, %v5124_v49  ;;  %v2060_v29 = vmax.f32 %v1874_v9, 0.0  ;;  %v1898_v34 = vadd.f32 %v5108_v25, %v4087_v39 }
 0x29f   :  { %v1890_v47 = vadd.f32 %v5108_v25, %v1889_v46  ;;  %2534 = vadd.xlane.f32.xlu1 %v2533_v8  ;;  %v3073_v30 = vsel %vm2890_vm4, %v3072_v37, %v3068_v45  ;;  %v2325_v50 = vpop.xlane.xlu0 %2324  ;;  %v2542_v51 = vsel %vm245_vm0, %v2196_v38, 0.0  ;;  %v5384_v52 = vpop.f32.mrb[114].mxu1  ;;  %v3092_v58 = vrot.slane %v2648_v62, %v5129_v42 }
 0x2a0   :  { %v2645_v54 = vadd.f32 %v5084_v10, %v2325_v50  ;;  %v2328_v56 = vpop.xlane.xlu1 %2327  ;;  %2543 = vadd.xlane.f32.xlu0 %v2542_v51  ;;  %v5388_v57 = vpop.f32.mrb[115].mxu1  ;;  %v2536_v37 = vsel %vm245_vm0, %v2194_v7, 0.0  ;;  %v1882_v39 = vadd.f32 %v5108_v25, %v5350_v55  ;;  %v2500_v51 = vsel %vm245_vm0, %v2182_v17, 0.0 }
 0x2a1   :  { %v2064_v1 = vmax.f32 %v1890_v47, 0.0  ;;  %v2646_v3 = vadd.f32 %v5084_v10, %v2328_v56  ;;  %v2195_v53 = vmul.f32 %v5120_v36, %v2060_v29  ;;  %v2066_v44 = vmax.f32 %v1898_v34, 0.0 }
 0x2a2   :  { %v3077_v63 = vrot.slane %v2645_v54, %v5132_v43  ;;  %v2530_v56 = vsel %vm245_vm0, %v2192_v31, 0.0  ;;  %v1885_v7 = vadd.f32 %v5108_v25, %v5356_v0 }
 0x2a3   :  { %v2199_v13 = vmul.f32 %v5120_v36, %v2064_v1  ;;  %v3082_v14 = vrot.slane %v2646_v3, %v5137_v48  ;;  %2528 = vadd.xlane.f32.xlu1 %v2527_v11  ;;  %v2343_v15 = vpop.xlane.xlu0 %2342 }
 0x2a4   :  { %v3078_v4 = vsel %vm2897_vm5, %v3077_v63, %v3073_v30  ;;  %v2346_v24 = vpop.xlane.xlu1 %2345  ;;  %v2651_v45 = vadd.f32 %v5084_v10, %v2343_v15  ;;  %v2063_v34 = vmax.f32 %v1885_v7, 0.0 }
 0x2a5   :  { %v3083_v26 = vsel %vm2904_vm6, %v3082_v14, %v3078_v4  ;;  %v2551_v27 = vsel %vm245_vm0, %v2199_v13, 0.0  ;;  %v5405_v28 = vpop.f32.mrb[116].mxu1  ;;  %v2652_v30 = vadd.f32 %v5084_v10, %v2346_v24  ;;  %v2062_v13 = vmax.f32 %v1882_v39, 0.0 }
 0x2a6   :  { %v3088_v35 = vsel %vm2911_vm7, %v3087_v18, %v3083_v26  ;;  %2552 = vadd.xlane.f32.xlu0 %v2551_v27  ;;  %v5410_v38 = vpop.f32.mrb[117].mxu1  ;;  %v3107_v55 = vrot.slane %v2651_v45, %v5159_v19  ;;  %v2201_v14 = vmul.f32 %v5120_v36, %v2066_v44  ;;  %v2539_v18 = vsel %vm245_vm0, %v2195_v53, 0.0 }
 0x2a7   :  { %2537 = vadd.xlane.f32.xlu1 %v2536_v37  ;;  %v3093_v20 = vsel %vm2918_vm8, %v3092_v58, %v3088_v35  ;;  %v2337_v40 = vpop.xlane.xlu0 %2336  ;;  %v5413_v41 = vpop.f32.mrb[118].mxu1  ;;  %v3112_v9 = vrot.slane %v2652_v30, %v5162_v23  ;;  %v1901_v45 = vadd.f32 %v5108_v25, %v5384_v52  ;;  %v2198_v52 = vmul.f32 %v5120_v36, %v2063_v34 }
 0x2a8   :  { %v2649_v46 = vadd.f32 %v5084_v10, %v2337_v40  ;;  %v2340_v8 = vpop.xlane.xlu1 %2339  ;;  %v5417_v47 = vpop.f32.mrb[119].mxu1  ;;  %v2197_v40 = vmul.f32 %v5120_v36, %v2062_v13 }
 0x2a9   :  { %v2650_v50 = vadd.f32 %v5084_v10, %v2340_v8  ;;  %v2557_v8 = vsel %vm245_vm0, %v2201_v14, 0.0 }
 0x2aa   :  { %v3097_v54 = vrot.slane %v2649_v46, %v5171_v32  ;;  %2501 = vadd.xlane.f32.xlu0 %v2500_v51  ;;  %v1893_v51 = vadd.f32 %v5108_v25, %v5388_v57 }
 0x2ab   :  { %v3102_v59 = vrot.slane %v2650_v50, %v5174_v33  ;;  %2531 = vadd.xlane.f32.xlu1 %v2530_v56  ;;  %v2355_v62 = vpop.xlane.xlu0 %2354 }
 0x2ac   :  { %v3098_v1 = vsel %vm2925_vm9, %v3097_v54, %v3093_v20  ;;  %v2358_v3 = vpop.xlane.xlu1 %2357  ;;  %v2655_v58 = vadd.f32 %v5084_v10, %v2355_v62 }
 0x2ad   :  { %v3103_v63 = vsel %vm2932_vm10, %v3102_v59, %v3098_v1  ;;  %v5434_v11 = vpop.f32.mrb[120].mxu1  ;;  %v2656_v35 = vadd.f32 %v5084_v10, %v2358_v3  ;;  %v2067_v1 = vmax.f32 %v1901_v45, 0.0 }
 0x2ae   :  { %v3108_v15 = vsel %vm2939_vm11, %v3107_v55, %v3103_v63  ;;  %v1921_v17 = vpop.f32.mrb[121].mxu1  ;;  %v3127_v53 = vrot.slane %v2655_v58, %v5195_v5 }
 0x2af   :  { %v1922_v4 = vadd.f32 %v5108_v25, %v1921_v17  ;;  %2540 = vadd.xlane.f32.xlu1 %v2539_v18  ;;  %v3113_v24 = vsel %vm5798_vm12, %v3112_v9, %v3108_v15  ;;  %v2349_v0 = vpop.xlane.xlu0 %2348  ;;  %v5441_v31 = vpop.f32.mrb[122].mxu1  ;;  %vm3531_vm12 = vcmask 1042434   ;;  %v3132_v56 = vrot.slane %v2656_v35, %v5198_v6 }
 0x2b0   :  { %v2653_v26 = vadd.f32 %v5084_v10, %v2349_v0  ;;  %v2352_v27 = vpop.xlane.xlu1 %2351  ;;  %v5445_v29 = vpop.f32.mrb[123].mxu1  ;;  %v2545_v9 = vsel %vm245_vm0, %v2197_v40, 0.0  ;;  %v2065_v15 = vmax.f32 %v1893_v51, 0.0  ;;  %v2202_v35 = vmul.f32 %v5120_v36, %v2067_v1 }
 0x2b1   :  { %v2072_v37 = vmax.f32 %v1922_v4, 0.0  ;;  %v2654_v20 = vadd.f32 %v5084_v10, %v2352_v27  ;;  %v2548_v40 = vsel %vm245_vm0, %v2198_v52, 0.0 }
 0x2b2   :  { %v3117_v46 = vrot.slane %v2653_v26, %v5227_v60 }
 0x2b3   :  { %v2207_v39 = vmul.f32 %v5120_v36, %v2072_v37  ;;  %v3122_v30 = vrot.slane %v2654_v20, %v5230_v61  ;;  %2558 = vadd.xlane.f32.xlu1 %v2557_v8  ;;  %v2367_v50 = vpop.xlane.xlu0 %2366  ;;  %v2200_v8 = vmul.f32 %v5120_v36, %v2065_v15 }
 0x2b4   :  { %v3118_v44 = vsel %vm2953_vm13, %v3117_v46, %v3113_v24  ;;  %v2370_v54 = vpop.xlane.xlu1 %2369  ;;  %v2659_v18 = vadd.f32 %v5084_v10, %v2367_v50 }
 0x2b5   :  { %v3123_v59 = vsel %vm2960_vm14, %v3122_v30, %v3118_v44  ;;  %v4099_v62 = vpop.f32.mrb[124].mxu1  ;;  %v2575_v55 = vsel %vm245_vm0, %v2207_v39, 0.0  ;;  %v2660_v58 = vadd.f32 %v5084_v10, %v2370_v54 }
 0x2b6   :  { %v3128_v3 = vsel %vm2967_vm15, %v3127_v53, %v3123_v59  ;;  %v1946_v57 = vadd.f32 %v5108_v25, %v4099_v62  ;;  %v5466_v7 = vpop.f32.mrb[125].mxu1  ;;  %2576 = vadd.xlane.f32.xlu0 %v2575_v55  ;;  %v3146_v39 = vrot.slane %v2659_v18, %v5094_v16 }
 0x2b7   :  { %v3133_v63 = vsel %vm2974_vm1, %v3132_v56, %v3128_v3  ;;  %v5470_v13 = vpop.f32.mrb[126].mxu1  ;;  %2546 = vadd.xlane.f32.xlu1 %v2545_v9  ;;  %v2361_v14 = vpop.xlane.xlu0 %2360  ;;  %v3151_v50 = vrot.slane %v2660_v58, %v5099_v21  ;;  %v2560_v56 = vsel %vm245_vm0, %v2202_v35, 0.0 }
 0x2b8   :  { %v5474_v17 = vsel %vm3531_vm12, %v3133_v63, %v5359_v2  ;;  %v2657_v4 = vadd.f32 %v5084_v10, %v2361_v14  ;;  %v1940_v24 = vpop.f32.mrb[127].mxu1  ;;  %v2364_v0 = vpop.xlane.xlu1 %2363  ;;  %v2078_v26 = vmax.f32 %v1946_v57, 0.0  ;;  %v5485_v2 = vld [vmem:[%s5793_s4] ss:$0 sm:$0xff]  ;;  %v2554_v63 = vsel %vm245_vm0, %v2200_v8, 0.0 }
 0x2b9   :  { %v1941_v27 = vadd.f32 %v5108_v25, %v1940_v24  ;;  %v2658_v34 = vadd.f32 %v5084_v10, %v2364_v0  ;;  %v1914_v37 = vadd.f32 %v5485_v2, %v5405_v28  ;;  %v5498_v28 = vld [vmem:[%s5794_s5] ss:$0 sm:$0xff]  ;;  %v1906_v36 = vadd.f32 %v5485_v2, %v5410_v38 }
 0x2ba   :  { %v3137_v20 = vrot.slane %v2657_v4, %v5089_v12  ;;  %v2213_v51 = vmul.f32 %v5498_v28, %v2078_v26  ;;  %v1917_v4 = vadd.f32 %v5485_v2, %v5413_v41  ;;  %v1909_v35 = vadd.f32 %v5485_v2, %v5417_v47 }
 0x2bb   :  { %v2077_v45 = vmax.f32 %v1941_v27, 0.0  ;;  %v3141_v46 = vrot.slane %v2658_v34, %v5102_v22  ;;  %2549 = vadd.xlane.f32.xlu1 %v2548_v40  ;;  %v2379_v25 = vpop.xlane.xlu0 %2378  ;;  %v2070_v54 = vmax.f32 %v1914_v37, 0.0  ;;  %v2068_v18 = vmax.f32 %v1906_v36, 0.0 }
 0x2bc   :  { %v2382_v30 = vpop.xlane.xlu1 %2381  ;;  %v2663_v1 = vadd.f32 %v5084_v10, %v2379_v25  ;;  %v2593_v14 = vsel %vm245_vm0, %v2213_v51, 0.0  ;;  %v2071_v40 = vmax.f32 %v1917_v4, 0.0  ;;  %vm5799_vm12 = vcmask 786112  }
 0x2bd   :  { %v2212_v53 = vmul.f32 %v5498_v28, %v2077_v45  ;;  %v3142_v44 = vsel %vm2876_vm2, %v3141_v46, %v3137_v20  ;;  %v2664_v9 = vadd.f32 %v5084_v10, %v2382_v30  ;;  %v2205_v15 = vmul.f32 %v5498_v28, %v2070_v54 }
 0x2be   :  { %v3147_v52 = vsel %vm2883_vm3, %v3146_v39, %v3142_v44  ;;  %v3166_v26 = vrot.slane %v2663_v1, %v5124_v49  ;;  %v2203_v41 = vmul.f32 %v5498_v28, %v2068_v18  ;;  %v2206_v44 = vmul.f32 %v5498_v28, %v2071_v40 }
 0x2bf   :  { %2561 = vadd.xlane.f32.xlu1 %v2560_v56  ;;  %v3152_v59 = vsel %vm2890_vm4, %v3151_v50, %v3147_v52  ;;  %v2373_v62 = vpop.xlane.xlu0 %2372  ;;  %v2590_v55 = vsel %vm245_vm0, %v2212_v53, 0.0  ;;  %v3171_v37 = vrot.slane %v2664_v9, %v5129_v42  ;;  %v2569_v46 = vsel %vm245_vm0, %v2205_v15, 0.0 }
 0x2c0   :  { %v2661_v3 = vadd.f32 %v5084_v10, %v2373_v62  ;;  %v2376_v57 = vpop.xlane.xlu1 %2375  ;;  %2591 = vadd.xlane.f32.xlu0 %v2590_v55  ;;  %v2069_v50 = vmax.f32 %v1909_v35, 0.0  ;;  %v1930_v54 = vadd.f32 %v5485_v2, %v5434_v11  ;;  %v2563_v52 = vsel %vm245_vm0, %v2203_v41, 0.0 }
 0x2c1   :  { %v2662_v38 = vadd.f32 %v5084_v10, %v2376_v57 }
 0x2c2   :  { %v3156_v24 = vrot.slane %v2661_v3, %v5132_v43  ;;  %v2204_v3 = vmul.f32 %v5498_v28, %v2069_v50  ;;  %v2074_v11 = vmax.f32 %v1930_v54, 0.0 }
 0x2c3   :  { %v3161_v0 = vrot.slane %v2662_v38, %v5137_v48  ;;  %2555 = vadd.xlane.f32.xlu1 %v2554_v63  ;;  %v2391_v58 = vpop.xlane.xlu0 %2390  ;;  %v1933_v38 = vadd.f32 %v5485_v2, %v5441_v31 }
 0x2c4   :  { %v3157_v27 = vsel %vm2897_vm5, %v3156_v24, %v3152_v59  ;;  %v2394_v34 = vpop.xlane.xlu1 %2393  ;;  %2594 = vadd.xlane.f32.xlu0 %v2593_v14  ;;  %v2667_v39 = vadd.f32 %v5084_v10, %v2391_v58  ;;  %v2572_v14 = vsel %vm245_vm0, %v2206_v44, 0.0  ;;  %v1925_v58 = vadd.f32 %v5485_v2, %v5445_v29 }
 0x2c5   :  { %v3162_v20 = vsel %vm2904_vm6, %v3161_v0, %v3157_v27  ;;  %v2668_v51 = vadd.f32 %v5084_v10, %v2394_v34  ;;  %v2209_v27 = vmul.f32 %v5498_v28, %v2074_v11  ;;  %v2075_v34 = vmax.f32 %v1933_v38, 0.0 }
 0x2c6   :  { %v3167_v45 = vsel %vm2911_vm7, %v3166_v26, %v3162_v20  ;;  %v3186_v62 = vrot.slane %v2667_v39, %v5159_v19 }
 0x2c7   :  { %2570 = vadd.xlane.f32.xlu1 %v2569_v46  ;;  %v3172_v25 = vsel %vm2918_vm8, %v3171_v37, %v3167_v45  ;;  %v2385_v8 = vpop.xlane.xlu0 %2384  ;;  %v3191_v57 = vrot.slane %v2668_v51, %v5162_v23  ;;  %v2566_v37 = vsel %vm245_vm0, %v2204_v3, 0.0  ;;  %v2073_v46 = vmax.f32 %v1925_v58, 0.0 }
 0x2c8   :  { %v2665_v30 = vadd.f32 %v5084_v10, %v2385_v8  ;;  %v2388_v47 = vpop.xlane.xlu1 %2387  ;;  %v2210_v39 = vmul.f32 %v5498_v28, %v2075_v34  ;;  %v2581_v50 = vsel %vm245_vm0, %v2209_v27, 0.0 }
 0x2c9   :  { %v2666_v53 = vadd.f32 %v5084_v10, %v2388_v47 }
 0x2ca   :  { %v3176_v36 = vrot.slane %v2665_v30, %v5171_v32  ;;  %v1938_v30 = vadd.f32 %v5485_v2, %v5466_v7  ;;  %v2584_v3 = vsel %vm245_vm0, %v2210_v39, 0.0 }
 0x2cb   :  { %v3181_v56 = vrot.slane %v2666_v53, %v5174_v33  ;;  %2564 = vadd.xlane.f32.xlu1 %v2563_v52  ;;  %v2403_v59 = vpop.xlane.xlu0 %2402 }
 0x2cc   :  { %v3177_v55 = vsel %vm2925_vm9, %v3176_v36, %v3172_v25  ;;  %v2406_v1 = vpop.xlane.xlu1 %2405  ;;  %v2671_v4 = vadd.f32 %v5084_v10, %v2403_v59 }
 0x2cd   :  { %v3182_v9 = vsel %vm2932_vm10, %v3181_v56, %v3177_v55  ;;  %v2672_v26 = vadd.f32 %v5084_v10, %v2406_v1  ;;  %v2208_v56 = vmul.f32 %v5498_v28, %v2073_v46  ;;  %v1949_v55 = vadd.f32 %v5485_v2, %v5470_v13 }
 0x2ce   :  { %v3187_v63 = vsel %vm2939_vm11, %v3186_v62, %v3182_v9  ;;  %v3206_v40 = vrot.slane %v2671_v4, %v5195_v5  ;;  %v2076_v62 = vmax.f32 %v1938_v30, 0.0 }
 0x2cf   :  { %2573 = vadd.xlane.f32.xlu1 %v2572_v14  ;;  %v3192_v15 = vsel %vm5799_vm12, %v3191_v57, %v3187_v63  ;;  %v2397_v18 = vpop.xlane.xlu0 %2396  ;;  %v3211_v25 = vrot.slane %v2672_v26, %v5198_v6  ;;  %vm3533_vm12 = vcmask 1043459   ;;  %v2578_v2 = vsel %vm245_vm0, %v2208_v56, 0.0 }
 0x2d0   :  { %v2669_v24 = vadd.f32 %v5084_v10, %v2397_v18  ;;  %v2400_v0 = vpop.xlane.xlu1 %2399  ;;  %v2211_v14 = vmul.f32 %v5498_v28, %v2076_v62 }
 0x2d1   :  { %v2670_v31 = vadd.f32 %v5084_v10, %v2400_v0 }
 0x2d2   :  { %v3196_v35 = vrot.slane %v2669_v24, %v5227_v60 }
 0x2d3   :  { %v3201_v20 = vrot.slane %v2670_v31, %v5230_v61  ;;  %2567 = vadd.xlane.f32.xlu1 %v2566_v37  ;;  %v2415_v41 = vpop.xlane.xlu0 %2414 }
 0x2d4   :  { %v3197_v45 = vsel %vm2953_vm13, %v3196_v35, %v3192_v15  ;;  %v2418_v29 = vpop.xlane.xlu1 %2417  ;;  %v2675_v44 = vadd.f32 %v5084_v10, %v2415_v41  ;;  %v2079_v15 = vmax.f32 %v1949_v55, 0.0  ;;  %v2587_v35 = vsel %vm245_vm0, %v2211_v14, 0.0 }
 0x2d5   :  { %v3202_v8 = vsel %vm2960_vm14, %v3201_v20, %v3197_v45  ;;  %v2676_v7 = vadd.f32 %v5084_v10, %v2418_v29 }
 0x2d6   :  { %v3207_v47 = vsel %vm2967_vm15, %v3206_v40, %v3202_v8  ;;  %v2214_v27 = vmul.f32 %v5498_v28, %v2079_v15 }
 0x2d7   :  { %v3212_v51 = vsel %vm2974_vm1, %v3211_v25, %v3207_v47  ;;  %2582 = vadd.xlane.f32.xlu1 %v2581_v50  ;;  %v2409_v53 = vpop.xlane.xlu0 %2408  ;;  %v3230_v38 = vrot.slane %v2676_v7, %v5099_v21 }
 0x2d8   :  { %v2673_v54 = vadd.f32 %v5084_v10, %v2409_v53  ;;  %v2412_v36 = vpop.xlane.xlu1 %2411  ;;  %v5573_v52 = vsel %vm3533_vm12, %v3212_v51, %v5474_v17  ;;  %v3225_v17 = vrot.slane %v2675_v44, %v5094_v16  ;;  %v2596_v28 = vsel %vm245_vm0, %v2214_v27, 0.0 }
 0x2d9   :  { %v2674_v59 = vadd.f32 %v5084_v10, %v2412_v36  ;;  %vm5800_vm0 = vcmask 786112   ;;  %vm3535_vm12 = vcmask 1044484  }
 0x2da   :  { %v3216_v1 = vrot.slane %v2673_v54, %v5089_v12 }
 0x2db   :  { %v3220_v57 = vrot.slane %v2674_v59, %v5102_v22  ;;  %2585 = vadd.xlane.f32.xlu1 %v2584_v3  ;;  %v2427_v9 = vpop.xlane.xlu0 %2426 }
 0x2dc   :  { %v2430_v11 = vpop.xlane.xlu1 %2429  ;;  %v2679_v24 = vadd.f32 %v5084_v10, %v2427_v9 }
 0x2dd   :  { %v3221_v63 = vsel %vm2876_vm2, %v3220_v57, %v3216_v1  ;;  %v2680_v26 = vadd.f32 %v5084_v10, %v2430_v11 }
 0x2de   :  { %v3226_v13 = vsel %vm2883_vm3, %v3225_v17, %v3221_v63  ;;  %v3245_v41 = vrot.slane %v2679_v24, %v5124_v49 }
 0x2df   :  { %2579 = vadd.xlane.f32.xlu1 %v2578_v2  ;;  %v3231_v18 = vsel %vm2890_vm4, %v3230_v38, %v3226_v13  ;;  %v2421_v4 = vpop.xlane.xlu0 %2420  ;;  %v3250_v29 = vrot.slane %v2680_v26, %v5129_v42 }
 0x2e0   :  { %v2677_v0 = vadd.f32 %v5084_v10, %v2421_v4  ;;  %v2424_v58 = vpop.xlane.xlu1 %2423 }
 0x2e1   :  { %v2678_v31 = vadd.f32 %v5084_v10, %v2424_v58 }
 0x2e2   :  { %v3235_v34 = vrot.slane %v2677_v0, %v5132_v43 }
 0x2e3   :  { %v3240_v37 = vrot.slane %v2678_v31, %v5137_v48  ;;  %2588 = vadd.xlane.f32.xlu1 %v2587_v35  ;;  %v2439_v20 = vpop.xlane.xlu0 %2438 }
 0x2e4   :  { %v3236_v40 = vsel %vm2897_vm5, %v3235_v34, %v3231_v18  ;;  %v2442_v45 = vpop.xlane.xlu1 %2441  ;;  %v2683_v30 = vadd.f32 %v5084_v10, %v2439_v20 }
 0x2e5   :  { %v3241_v46 = vsel %vm2904_vm6, %v3240_v37, %v3236_v40  ;;  %v2684_v51 = vadd.f32 %v5084_v10, %v2442_v45 }
 0x2e6   :  { %v3246_v25 = vsel %vm2911_vm7, %v3245_v41, %v3241_v46  ;;  %v3265_v56 = vrot.slane %v2683_v30, %v5159_v19 }
 0x2e7   :  { %2597 = vadd.xlane.f32.xlu1 %v2596_v28  ;;  %v3251_v8 = vsel %vm2918_vm8, %v3250_v29, %v3246_v25  ;;  %v2433_v39 = vpop.xlane.xlu0 %2432  ;;  %v3270_v62 = vrot.slane %v2684_v51, %v5162_v23 }
 0x2e8   :  { %v2681_v47 = vadd.f32 %v5084_v10, %v2433_v39  ;;  %v2436_v50 = vpop.xlane.xlu1 %2435 }
 0x2e9   :  { %v2682_v53 = vadd.f32 %v5084_v10, %v2436_v50 }
 0x2ea   :  { %v3255_v44 = vrot.slane %v2681_v47, %v5171_v32 }
 0x2eb   :  { %v3260_v54 = vrot.slane %v2682_v53, %v5174_v33  ;;  %v2451_v36 = vpop.xlane.xlu0 %2450 }
 0x2ec   :  { %v3256_v7 = vsel %vm2925_vm9, %v3255_v44, %v3251_v8  ;;  %v2454_v59 = vpop.xlane.xlu1 %2453  ;;  %v2687_v9 = vadd.f32 %v5084_v10, %v2451_v36 }
 0x2ed   :  { %v3261_v55 = vsel %vm2932_vm10, %v3260_v54, %v3256_v7  ;;  %v2688_v38 = vadd.f32 %v5084_v10, %v2454_v59 }
 0x2ee   :  { %v3266_v1 = vsel %vm2939_vm11, %v3265_v56, %v3261_v55  ;;  %v3285_v2 = vrot.slane %v2687_v9, %v5195_v5 }
 0x2ef   :  { %v3271_v3 = vsel %vm5800_vm0, %v3270_v62, %v3266_v1  ;;  %v2445_v57 = vpop.xlane.xlu0 %2444  ;;  %v3290_v24 = vrot.slane %v2688_v38, %v5198_v6 }
 0x2f0   :  { %v2685_v17 = vadd.f32 %v5084_v10, %v2445_v57  ;;  %v2448_v11 = vpop.xlane.xlu1 %2447 }
 0x2f1   :  { %v2686_v63 = vadd.f32 %v5084_v10, %v2448_v11 }
 0x2f2   :  { %v3275_v14 = vrot.slane %v2685_v17, %v5227_v60 }
 0x2f3   :  { %v3280_v15 = vrot.slane %v2686_v63, %v5230_v61  ;;  %v2463_v13 = vpop.xlane.xlu0 %2462 }
 0x2f4   :  { %v3276_v18 = vsel %vm2953_vm13, %v3275_v14, %v3271_v3  ;;  %v2466_v4 = vpop.xlane.xlu1 %2465  ;;  %v2691_v27 = vadd.f32 %v5084_v10, %v2463_v13 }
 0x2f5   :  { %v3281_v0 = vsel %vm2960_vm14, %v3280_v15, %v3276_v18  ;;  %v2692_v20 = vadd.f32 %v5084_v10, %v2466_v4 }
 0x2f6   :  { %v3286_v58 = vsel %vm2967_vm15, %v3285_v2, %v3281_v0  ;;  %v3304_v46 = vrot.slane %v2691_v27, %v5094_v16 }
 0x2f7   :  { %v3291_v26 = vsel %vm2974_vm1, %v3290_v24, %v3286_v58  ;;  %v2457_v31 = vpop.xlane.xlu0 %2456  ;;  %v3309_v28 = vrot.slane %v2692_v20, %v5099_v21 }
 0x2f8   :  { %v2689_v34 = vadd.f32 %v5084_v10, %v2457_v31  ;;  %v2460_v35 = vpop.xlane.xlu1 %2459  ;;  %v5632_v37 = vsel %vm3535_vm12, %v3291_v26, %v5573_v52  ;;  %vm3537_vm12 = vcmask 1045509  }
 0x2f9   :  { %v2690_v41 = vadd.f32 %v5084_v10, %v2460_v35 }
 0x2fa   :  { %v3295_v40 = vrot.slane %v2689_v34, %v5089_v12 }
 0x2fb   :  { %v3299_v45 = vrot.slane %v2690_v41, %v5102_v22  ;;  %v2475_v29 = vpop.xlane.xlu0 %2474 }
 0x2fc   :  { %v2478_v25 = vpop.xlane.xlu1 %2477  ;;  %v2695_v47 = vadd.f32 %v5084_v10, %v2475_v29 }
 0x2fd   :  { %v3300_v8 = vsel %vm2876_vm2, %v3299_v45, %v3295_v40  ;;  %v2696_v53 = vadd.f32 %v5084_v10, %v2478_v25 }
 0x2fe   :  { %v3305_v39 = vsel %vm2883_vm3, %v3304_v46, %v3300_v8  ;;  %v3324_v7 = vrot.slane %v2695_v47, %v5124_v49 }
 0x2ff   :  { %v3310_v52 = vsel %vm2890_vm4, %v3309_v28, %v3305_v39  ;;  %v2469_v30 = vpop.xlane.xlu0 %2468  ;;  %v3329_v55 = vrot.slane %v2696_v53, %v5129_v42 }
 0x300   :  { %v2693_v50 = vadd.f32 %v5084_v10, %v2469_v30  ;;  %v2472_v51 = vpop.xlane.xlu1 %2471 }
 0x301   :  { %v2694_v44 = vadd.f32 %v5084_v10, %v2472_v51 }
 0x302   :  { %v3314_v54 = vrot.slane %v2693_v50, %v5132_v43 }
 0x303   :  { %v3319_v36 = vrot.slane %v2694_v44, %v5137_v48  ;;  %v2487_v56 = vpop.xlane.xlu0 %2486 }
 0x304   :  { %v3315_v59 = vsel %vm2897_vm5, %v3314_v54, %v3310_v52  ;;  %v2490_v62 = vpop.xlane.xlu1 %2489  ;;  %v2699_v17 = vadd.f32 %v5084_v10, %v2487_v56 }
 0x305   :  { %v3320_v1 = vsel %vm2904_vm6, %v3319_v36, %v3315_v59  ;;  %v2700_v63 = vadd.f32 %v5084_v10, %v2490_v62 }
 0x306   :  { %v3325_v3 = vsel %vm2911_vm7, %v3324_v7, %v3320_v1  ;;  %v3344_v18 = vrot.slane %v2699_v17, %v5159_v19 }
 0x307   :  { %v3330_v57 = vsel %vm2918_vm8, %v3329_v55, %v3325_v3  ;;  %v2481_v9 = vpop.xlane.xlu0 %2480  ;;  %v3349_v58 = vrot.slane %v2700_v63, %v5162_v23 }
 0x308   :  { %v2697_v11 = vadd.f32 %v5084_v10, %v2481_v9  ;;  %v2484_v38 = vpop.xlane.xlu1 %2483 }
 0x309   :  { %v2698_v14 = vadd.f32 %v5084_v10, %v2484_v38 }
 0x30a   :  { %v3334_v15 = vrot.slane %v2697_v11, %v5171_v32 }
 0x30b   :  { %v3339_v13 = vrot.slane %v2698_v14, %v5174_v33  ;;  %v2493_v2 = vpop.xlane.xlu0 %2492 }
 0x30c   :  { %v3335_v4 = vsel %vm2925_vm9, %v3334_v15, %v3330_v57  ;;  %v2701_v24 = vadd.f32 %v5084_v10, %v2493_v2  ;;  %v2499_v0 = vpop.xlane.xlu1 %2498 }
 0x30d   :  { %v3340_v26 = vsel %vm2932_vm10, %v3339_v13, %v3335_v4  ;;  %v2703_v35 = vadd.f32 %v5084_v10, %v2499_v0 }
 0x30e   :  { %v3345_v31 = vsel %vm2939_vm11, %v3344_v18, %v3340_v26  ;;  %v3354_v34 = vrot.slane %v2701_v24, %v5227_v60 }
 0x30f   :  { %v3350_v27 = vsel %vm5800_vm0, %v3349_v58, %v3345_v31  ;;  %v3364_v29 = vrot.slane %v2703_v35, %v5195_v5 }
 0x310   :  { %v2496_v20 = vpop.xlane.xlu1 %2495  ;;  %v3355_v45 = vsel %vm2953_vm13, %v3354_v34, %v3350_v27 }
 0x311   :  { %v2702_v41 = vadd.f32 %v5084_v10, %v2496_v20 }
 0x313   :  { %v3359_v40 = vrot.slane %v2702_v41, %v5230_v61 }
 0x314   :  { %v2511_v46 = vpop.xlane.xlu1 %2510  ;;  %v2514_v25 = vpop.xlane.xlu0 %2513 }
 0x315   :  { %v3360_v28 = vsel %vm2960_vm14, %v3359_v40, %v3355_v45  ;;  %v2707_v39 = vadd.f32 %v5084_v10, %v2511_v46  ;;  %v2708_v56 = vadd.f32 %v5084_v10, %v2514_v25 }
 0x316   :  { %v3365_v8 = vsel %vm2967_vm15, %v3364_v29, %v3360_v28 }
 0x317   :  { %v3383_v44 = vrot.slane %v2707_v39, %v5094_v16  ;;  %v3388_v55 = vrot.slane %v2708_v56, %v5099_v21 }
 0x318   :  { %v2505_v52 = vpop.xlane.xlu1 %2504  ;;  %v2508_v30 = vpop.xlane.xlu0 %2507 }
 0x319   :  { %v2705_v47 = vadd.f32 %v5084_v10, %v2505_v52  ;;  %v2706_v50 = vadd.f32 %v5084_v10, %v2508_v30 }
 0x31b   :  { %v3374_v51 = vrot.slane %v2705_v47, %v5089_v12  ;;  %v3378_v53 = vrot.slane %v2706_v50, %v5102_v22 }
 0x31c   :  { %v2523_v54 = vpop.xlane.xlu1 %2522 }
 0x31d   :  { %v3379_v36 = vsel %vm2876_vm2, %v3378_v53, %v3374_v51  ;;  %v2711_v17 = vadd.f32 %v5084_v10, %v2523_v54 }
 0x31e   :  { %v3384_v7 = vsel %vm2883_vm3, %v3383_v44, %v3379_v36 }
 0x31f   :  { %v3389_v3 = vsel %vm2890_vm4, %v3388_v55, %v3384_v7  ;;  %v3403_v15 = vrot.slane %v2711_v17, %v5124_v49 }
 0x320   :  { %v2517_v59 = vpop.xlane.xlu1 %2516 }
 0x321   :  { %v2709_v62 = vadd.f32 %v5084_v10, %v2517_v59 }
 0x323   :  { %v3393_v1 = vrot.slane %v2709_v62, %v5132_v43 }
 0x324   :  { %v2526_v57 = vpop.xlane.xlu1 %2525 }
 0x325   :  { %v3394_v9 = vsel %vm2897_vm5, %v3393_v1, %v3389_v3  ;;  %v2712_v38 = vadd.f32 %v5084_v10, %v2526_v57 }
 0x327   :  { %v3408_v2 = vrot.slane %v2712_v38, %v5129_v42 }
 0x328   :  { %v2520_v11 = vpop.xlane.xlu1 %2519 }
 0x329   :  { %v2710_v63 = vadd.f32 %v5084_v10, %v2520_v11 }
 0x32b   :  { %v3398_v14 = vrot.slane %v2710_v63, %v5137_v48 }
 0x32c   :  { %v2535_v13 = vpop.xlane.xlu1 %2534 }
 0x32d   :  { %v3399_v18 = vsel %vm2904_vm6, %v3398_v14, %v3394_v9  ;;  %v2544_v24 = vpop.xlane.xlu0 %2543  ;;  %v2715_v35 = vadd.f32 %v5084_v10, %v2535_v13 }
 0x32e   :  { %v3404_v4 = vsel %vm2911_vm7, %v3403_v15, %v3399_v18  ;;  %v2718_v7 = vadd.f32 %v5084_v10, %v2544_v24 }
 0x32f   :  { %v3409_v0 = vsel %vm2918_vm8, %v3408_v2, %v3404_v4  ;;  %v3423_v25 = vrot.slane %v2715_v35, %v5159_v19 }
 0x330   :  { %v2529_v58 = vpop.xlane.xlu1 %2528  ;;  %v3438_v1 = vrot.slane %v2718_v7, %v5230_v61 }
 0x331   :  { %v2713_v31 = vadd.f32 %v5084_v10, %v2529_v58 }
 0x333   :  { %v2553_v26 = vpop.xlane.xlu0 %2552  ;;  %v3413_v20 = vrot.slane %v2713_v31, %v5171_v32 }
 0x334   :  { %v2538_v27 = vpop.xlane.xlu1 %2537  ;;  %v2721_v18 = vadd.f32 %v5084_v10, %v2553_v26 }
 0x335   :  { %v3414_v28 = vsel %vm2925_vm9, %v3413_v20, %v3409_v0  ;;  %v2716_v51 = vadd.f32 %v5084_v10, %v2538_v27 }
 0x336   :  { %v3453_v58 = vrot.slane %v2721_v18, %v5089_v12 }
 0x337   :  { %v2502_v34 = vpop.xlane.xlu0 %2501  ;;  %v3428_v54 = vrot.slane %v2716_v51, %v5162_v23 }
 0x338   :  { %v2704_v41 = vadd.f32 %v5084_v10, %v2502_v34  ;;  %v2532_v40 = vpop.xlane.xlu1 %2531 }
 0x339   :  { %v2714_v45 = vadd.f32 %v5084_v10, %v2532_v40 }
 0x33a   :  { %v3369_v29 = vrot.slane %v2704_v41, %v5198_v6 }
 0x33b   :  { %v3418_v46 = vrot.slane %v2714_v45, %v5174_v33 }
 0x33c   :  { %v3370_v39 = vsel %vm2974_vm1, %v3369_v29, %v3365_v8  ;;  %v2541_v52 = vpop.xlane.xlu1 %2540 }
 0x33d   :  { %v3538_v30 = vsel %vm3537_vm12, %v3370_v39, %v5632_v37  ;;  %v3419_v47 = vsel %vm2932_vm10, %v3418_v46, %v3414_v28  ;;  %v2717_v53 = vadd.f32 %v5084_v10, %v2541_v52  ;;  %vm3539_vm12 = vcmask 1046534  }
 0x33e   :  { %v3424_v50 = vsel %vm2939_vm11, %v3423_v25, %v3419_v47 }
 0x33f   :  { %v3433_v36 = vrot.slane %v2717_v53, %v5227_v60  ;;  %v3429_v8 = vsel %vm5800_vm0, %v3428_v54, %v3424_v50 }
 0x340   :  { %v2559_v44 = vpop.xlane.xlu1 %2558 }
 0x341   :  { %v3434_v59 = vsel %vm2953_vm13, %v3433_v36, %v3429_v8  ;;  %v2723_v24 = vadd.f32 %v5084_v10, %v2559_v44 }
 0x342   :  { %v3439_v57 = vsel %vm2960_vm14, %v3438_v1, %v3434_v59 }
 0x343   :  { %v3462_v35 = vrot.slane %v2723_v24, %v5094_v16  ;;  %v2577_v12 = vpop.xlane.xlu0 %2576 }
 0x344   :  { %v2547_v56 = vpop.xlane.xlu1 %2546 }
 0x345   :  { %v2719_v37 = vadd.f32 %v5084_v10, %v2547_v56 }
 0x347   :  { %v3443_v62 = vrot.slane %v2719_v37, %v5195_v5 }
 0x348   :  { %v2550_v55 = vpop.xlane.xlu1 %2549 }
 0x349   :  { %v2720_v3 = vadd.f32 %v5084_v10, %v2550_v55  ;;  %v3444_v17 = vsel %vm2967_vm15, %v3443_v62, %v3439_v57 }
 0x34b   :  { %v3448_v9 = vrot.slane %v2720_v3, %v5198_v6 }
 0x34c   :  { %v2562_v11 = vpop.xlane.xlu1 %2561 }
 0x34d   :  { %v3449_v38 = vsel %vm2974_vm1, %v3448_v9, %v3444_v17  ;;  %v2724_v27 = vadd.f32 %v5084_v10, %v2562_v11  ;;  %v2592_v52 = vpop.xlane.xlu0 %2591 }
 0x34e   :  { %v5727_v63 = vsel %vm3539_vm12, %v3449_v38, %v3538_v30  ;;  %v2734_v7 = vadd.f32 %v5084_v10, %v2592_v52 }
 0x34f   :  { %v3467_v40 = vrot.slane %v2724_v27, %v5099_v21  ;;  %v2729_v21 = vadd.f32 %v5084_v10, %v2577_v12 }
 0x350   :  { %v2556_v14 = vpop.xlane.xlu1 %2555  ;;  %v3517_v57 = vrot.slane %v2734_v7, %v5230_v61 }
 0x351   :  { %v2722_v13 = vadd.f32 %v5084_v10, %v2556_v14  ;;  %v3492_v36 = vrot.slane %v2729_v21, %v5171_v32  ;;  %v2595_v56 = vpop.xlane.xlu0 %2594 }
 0x352   :  { %v2735_v59 = vadd.f32 %v5084_v10, %v2595_v56 }
 0x353   :  { %v3457_v4 = vrot.slane %v2722_v13, %v5102_v22 }
 0x354   :  { %v2571_v15 = vpop.xlane.xlu1 %2570  ;;  %v3522_v9 = vrot.slane %v2735_v59, %v5195_v5 }
 0x355   :  { %v3458_v34 = vsel %vm2876_vm2, %v3457_v4, %v3453_v58  ;;  %v2727_v29 = vadd.f32 %v5084_v10, %v2571_v15  ;;  %vm5801_vm2 = vmmov %vm5800_vm0 }
 0x356   :  { %v3463_v26 = vsel %vm2883_vm3, %v3462_v35, %v3458_v34  ;;  %vm3541_vm3 = vcmask 1047559  }
 0x357   :  { %v3468_v25 = vsel %vm2890_vm4, %v3467_v40, %v3463_v26  ;;  %v3482_v30 = vrot.slane %v2727_v29, %v5124_v49 }
 0x358   :  { %v2565_v2 = vpop.xlane.xlu1 %2564 }
 0x359   :  { %v2725_v31 = vadd.f32 %v5084_v10, %v2565_v2 }
 0x35b   :  { %v3472_v22 = vrot.slane %v2725_v31, %v5132_v43 }
 0x35c   :  { %v2574_v0 = vpop.xlane.xlu1 %2573 }
 0x35d   :  { %v3473_v28 = vsel %vm2897_vm5, %v3472_v22, %v3468_v25  ;;  %v2728_v16 = vadd.f32 %v5084_v10, %v2574_v0 }
 0x35f   :  { %v3487_v47 = vrot.slane %v2728_v16, %v5129_v42 }
 0x360   :  { %v2568_v20 = vpop.xlane.xlu1 %2567 }
 0x361   :  { %v2726_v41 = vadd.f32 %v5084_v10, %v2568_v20 }
 0x363   :  { %v3477_v45 = vrot.slane %v2726_v41, %v5137_v48 }
 0x364   :  { %v2583_v46 = vpop.xlane.xlu1 %2582 }
 0x365   :  { %v3478_v39 = vsel %vm2904_vm6, %v3477_v45, %v3473_v28  ;;  %v2731_v50 = vadd.f32 %v5084_v10, %v2583_v46 }
 0x366   :  { %v3483_v48 = vsel %vm2911_vm7, %v3482_v30, %v3478_v39 }
 0x367   :  { %v3488_v54 = vsel %vm2918_vm8, %v3487_v47, %v3483_v48  ;;  %v3502_v8 = vrot.slane %v2731_v50, %v5159_v19 }
 0x368   :  { %v2586_v43 = vpop.xlane.xlu1 %2585  ;;  %v3493_v42 = vsel %vm2925_vm9, %v3492_v36, %v3488_v54 }
 0x369   :  { %v2732_v53 = vadd.f32 %v5084_v10, %v2586_v43 }
 0x36b   :  { %v3507_v62 = vrot.slane %v2732_v53, %v5162_v23 }
 0x36c   :  { %v2580_v51 = vpop.xlane.xlu1 %2579 }
 0x36d   :  { %v2730_v44 = vadd.f32 %v5084_v10, %v2580_v51 }
 0x36f   :  { %v3497_v49 = vrot.slane %v2730_v44, %v5174_v33 }
 0x370   :  { %v2589_v37 = vpop.xlane.xlu1 %2588 }
 0x371   :  { %v3498_v55 = vsel %vm2932_vm10, %v3497_v49, %v3493_v42  ;;  %v2733_v1 = vadd.f32 %v5084_v10, %v2589_v37 }
 0x372   :  { %v3503_v32 = vsel %vm2939_vm11, %v3502_v8, %v3498_v55 }
 0x373   :  { %v3508_v3 = vsel %vm5801_vm2, %v3507_v62, %v3503_v32  ;;  %v3512_v33 = vrot.slane %v2733_v1, %v5227_v60 }
 0x374   :  { %v2598_v19 = vpop.xlane.xlu1 %2597 }
 0x375   :  { %v3513_v17 = vsel %vm2953_vm13, %v3512_v33, %v3508_v3  ;;  %v2736_v11 = vadd.f32 %v5084_v10, %v2598_v19 }
 0x376   :  { %v3518_v23 = vsel %vm2960_vm14, %v3517_v57, %v3513_v17 }
 0x377   :  { %v3523_v38 = vsel %vm2967_vm15, %v3522_v9, %v3518_v23  ;;  %v3527_v14 = vrot.slane %v2736_v11, %v5198_v6 }
 0x379   :  { %v3528_v15 = vsel %vm2974_vm1, %v3527_v14, %v3523_v38 }
 0x37a   :  { %v3542_v60 = vsel %vm3541_vm3, %v3528_v15, %v5727_v63 }
 0x37b   :  { %3544 = vst [vmem:[#allocation3] sm:$0xff] %v3542_v60 }
 0x37c   :  { %3549 = vsyncadd [#allocation4], 112  ;;  %s4142_s5 = smov [#allocation3]  }
 0x37d   :  { %s3550_s25 = sshll.u32 %s4142_s5, 4  ;;  %s3551_s25 = int_to_ptr.vmem [resolvable:$true] %s3550_s25 }
 0x37e   :  { %s4117_s26 = scalar_lea.vmem %s3551_s25, 16  ;;  %s4121_s27 = scalar_lea.vmem %s3551_s25, 128 }
 0x37f   :  { %p4118_p0 = scmp.ne.s32.totalorder %s3551_s25, %s4117_s26  ;;  %p4122_p1 = scmp.lt.s32.totalorder %s3551_s25, %s3551_s25 }
 0x380   :  { %p4123_p2 = scmp.lt.s32.totalorder %s4121_s27, %s4117_s26 }
 0x382   :  { %p4124_p3 = por %p4123_p2, %p4122_p1 }
 0x384   :  { %p4125_p4 = pnand %p4124_p3, %p4118_p0 }
 0x386   :  { %4128 = shalt.err (!%p4125_p4)
}
 0x387   :  { %s4129_s30 = scalar_lea.hbm %s5796_s7, 16 }
 0x388   :  { %p4130_p5 = scmp.ne.s32.totalorder %s5796_s7, %s4129_s30  ;;  %p4133_p6 = scmp.lt.u32.totalorder %s4129_s30, %s5796_s7 }
 0x38a   :  { %p4135_p7 = pnand %p4133_p6, %p4130_p5 }
 0x38c   :  { %4138 = shalt.err (!%p4135_p7)
}
 0x38d   :  { %s4143_s11 = smov 16   ;;  %s4144_s12 = smov 1  }
 0x38e   :  { %3556 = dma.vmem_to_hbm [thread:$0]  %s3551_s25, 16, %s5796_s7, [#allocation4], %s4143_s11, %s4143_s11, %s4144_s12  }
 0x38f   :  { %4139 = dma.done.wait [#allocation4], 128  }
 0x390   :  { %4140 = vsyncadd [#allocation4], 4294967168 }
 0x391   :  { %3560 = vsyncpa [#allocation4], 1 }

</bundles_post_ra>
